<compile_context>
chip_gen: v7x
topology: tpu7x:2x2x1
jax: 0.10.0
libtpu: 0.0.40
codegen_flags: <defaults>
</compile_context>

<pallas_src>
import math
import functools

import jax
import jax.numpy as jnp
from jax.experimental import pallas as pl
from jax.experimental.pallas import tpu as pltpu

EPS = 1e-6                                # Norm eps (matches the reference Norm)
_VMEM_LIMIT_BYTES = 64 * 1024 * 1024      # explicit scoped-VMEM budget (<= v7x physical)


# ---------------------------------------------------------------------------
# Shared math helpers (used inside kernels and in the pure-JAX reference)
# ---------------------------------------------------------------------------
def _layer_norm(x, alpha, bias, d):
    # PyTorch Norm: alpha * (x - mean) / (x.std(dim=-1, unbiased=True) + eps) + bias
    mean = jnp.mean(x, axis=-1, keepdims=True)
    var = jnp.sum((x - mean) ** 2, axis=-1, keepdims=True) / (d - 1)
    return alpha * (x - mean) / (jnp.sqrt(var) + EPS) + bias


def _mha(q3, k3, v3, bias, wo, num_heads):
    """Multi-head attention + fused output projection (inside kernel).

    q3:(Bb,Sq,D) f32, already scaled by 1/sqrt(dh).  k3/v3:(Bb,Sk,D) f32.
    bias: additive f32 mask, broadcastable to (Bb,Sq,Sk).  wo:(D,D) bf16.
    Returns sum_h softmax(q_h k_h^T + bias) v_h @ wo[h-rows]  == concat(heads) @ wo,
    shape (Bb*Sq, D) f32 (no bias added here).
    """
    bb, sq, d = q3.shape
    sk = k3.shape[1]
    dh = d // num_heads
    qb = q3.astype(jnp.bfloat16)
    kb = k3.astype(jnp.bfloat16)
    vb = v3.astype(jnp.bfloat16)
    out = jnp.zeros((bb * sq, d), jnp.float32)
    for h in range(num_heads):
        sl = slice(h * dh, (h + 1) * dh)
        sc = jnp.einsum("bqd,bkd->bqk", qb[..., sl], kb[..., sl],
                        preferred_element_type=jnp.float32)
        sc = sc + bias
        sc = sc - jnp.max(sc, axis=-1, keepdims=True)
        p = jnp.exp(sc)
        p = p / jnp.sum(p, axis=-1, keepdims=True)          # exact f32 softmax
        ov = jnp.einsum("bqk,bkd->bqd", p.astype(jnp.bfloat16), vb[..., sl],
                        preferred_element_type=jnp.float32)  # (Bb,Sq,dh)
        out = out + jnp.dot(ov.reshape(bb * sq, dh).astype(jnp.bfloat16),
                            wo[sl, :], preferred_element_type=jnp.float32)
    return out


# ---------------------------------------------------------------------------
# Pallas kernels
# ---------------------------------------------------------------------------
def encoder_stack_kernel(x_ref, bias_ref,
                         a1_ref, c1_ref, a2_ref, c2_ref,
                         wqkv_ref, bqkv_ref, wo_ref, bo_ref,
                         w1_ref, b1_ref, w2_ref, b2_ref,
                         fa_ref, fc_ref,
                         o_ref, x_carry,
                         *, num_heads):
    """Grid = (batch_block, layer). One program = one encoder layer for a batch block."""
    l = pl.program_id(1)
    bb, s, d = x_carry.shape
    dh = d // num_heads
    inv = 1.0 / math.sqrt(dh)

    @pl.when(l == 0)
    def _():
        x_carry[...] = x_ref[...]

    x = x_carry[...].reshape(bb * s, d)                      # (R, D) f32 rows
    bias = bias_ref[...]                                     # (Bb, 1, S) additive mask

    # --- sublayer 1: pre-norm + fused-QKV multi-head self-attention + residual ---
    x2 = _layer_norm(x, a1_ref[0], c1_ref[0], d)
    qkv = jnp.dot(x2.astype(jnp.bfloat16), wqkv_ref[0],
                  preferred_element_type=jnp.float32) + bqkv_ref[0]
    q3 = (qkv[:, :d] * inv).reshape(bb, s, d)
    k3 = qkv[:, d:2 * d].reshape(bb, s, d)
    v3 = qkv[:, 2 * d:].reshape(bb, s, d)
    attn = _mha(q3, k3, v3, bias, wo_ref[0], num_heads)      # includes @Wo
    x = x + attn + bo_ref[0]                                 # dropout_1 == identity

    # --- sublayer 2: pre-norm + feed-forward + residual ---
    x2 = _layer_norm(x, a2_ref[0], c2_ref[0], d)
    h = jnp.maximum(jnp.dot(x2.astype(jnp.bfloat16), w1_ref[0],
                            preferred_element_type=jnp.float32) + b1_ref[0], 0.0)
    ff = jnp.dot(h.astype(jnp.bfloat16), w2_ref[0],
                 preferred_element_type=jnp.float32) + b2_ref[0]
    x = x + ff                                               # dropout_2 == identity
    x_carry[...] = x.reshape(bb, s, d)

    # fused final Norm on the last layer step
    @pl.when(l == pl.num_programs(1) - 1)
    def _():
        o_ref[...] = _layer_norm(x, fa_ref[...], fc_ref[...], d).reshape(bb, s, d)


def decoder_stack_kernel(x_ref, e_ref, sbias_ref, tbias_ref,
                         a1_ref, c1_ref, a2_ref, c2_ref, a3_ref, c3_ref,
                         wqkv1_ref, bqkv1_ref, wo1_ref, bo1_ref,
                         wq2_ref, bq2_ref, wkv2_ref, bkv2_ref, wo2_ref, bo2_ref,
                         w1_ref, b1_ref, w2_ref, b2_ref,
                         fa_ref, fc_ref,
                         o_ref, x_carry,
                         *, num_heads):
    """Grid = (batch_block, layer). Decoder layer + (last step) fused final Norm."""
    l = pl.program_id(1)
    bb, st, d = x_carry.shape
    ss = e_ref.shape[1]
    dh = d // num_heads
    inv = 1.0 / math.sqrt(dh)

    @pl.when(l == 0)
    def _():
        x_carry[...] = x_ref[...]

    x = x_carry[...].reshape(bb * st, d)
    e = e_ref[...].reshape(bb * ss, d)
    self_bias = tbias_ref[...]                               # (Bb, St, St)
    cross_bias = sbias_ref[...]                              # (Bb, 1, Ss)

    # --- sublayer 1: pre-norm + masked self-attention + residual ---
    x2 = _layer_norm(x, a1_ref[0], c1_ref[0], d)
    qkv = jnp.dot(x2.astype(jnp.bfloat16), wqkv1_ref[0],
                  preferred_element_type=jnp.float32) + bqkv1_ref[0]
    q3 = (qkv[:, :d] * inv).reshape(bb, st, d)
    k3 = qkv[:, d:2 * d].reshape(bb, st, d)
    v3 = qkv[:, 2 * d:].reshape(bb, st, d)
    x = x + _mha(q3, k3, v3, self_bias, wo1_ref[0], num_heads) + bo1_ref[0]

    # --- sublayer 2: pre-norm + cross-attention over encoder output + residual ---
    x2 = _layer_norm(x, a2_ref[0], c2_ref[0], d)
    q3 = ((jnp.dot(x2.astype(jnp.bfloat16), wq2_ref[0],
                   preferred_element_type=jnp.float32) + bq2_ref[0]) * inv
          ).reshape(bb, st, d)
    kv = jnp.dot(e.astype(jnp.bfloat16), wkv2_ref[0],
                 preferred_element_type=jnp.float32) + bkv2_ref[0]
    k3 = kv[:, :d].reshape(bb, ss, d)
    v3 = kv[:, d:].reshape(bb, ss, d)
    x = x + _mha(q3, k3, v3, cross_bias, wo2_ref[0], num_heads) + bo2_ref[0]

    # --- sublayer 3: pre-norm + feed-forward + residual ---
    x2 = _layer_norm(x, a3_ref[0], c3_ref[0], d)
    h = jnp.maximum(jnp.dot(x2.astype(jnp.bfloat16), w1_ref[0],
                            preferred_element_type=jnp.float32) + b1_ref[0], 0.0)
    x = x + jnp.dot(h.astype(jnp.bfloat16), w2_ref[0],
                    preferred_element_type=jnp.float32) + b2_ref[0]
    x_carry[...] = x.reshape(bb, st, d)

    # last layer: fused final Norm (vocab projection runs in its own kernel)
    @pl.when(l == pl.num_programs(1) - 1)
    def _():
        o_ref[...] = _layer_norm(x, fa_ref[...], fc_ref[...], d).reshape(bb, st, d)


def out_proj_kernel(x_ref, w_ref, b_ref, o_ref):
    """Vocab projection, tiled over (rows, padded-vocab): lane-dense output stores."""
    o_ref[...] = (jnp.dot(x_ref[...].astype(jnp.bfloat16), w_ref[...],
                          preferred_element_type=jnp.float32) + b_ref[...])


# ---------------------------------------------------------------------------
# Wrappers (pallas_call plumbing)
# ---------------------------------------------------------------------------
def _compiler_params():
    return pltpu.CompilerParams(
        dimension_semantics=("parallel", "arbitrary"),
        vmem_limit_bytes=_VMEM_LIMIT_BYTES)


def encoder_call(x_emb, src_bias, p, num_heads, block_b):
    B, S, D = x_emb.shape
    N = p["wqkv"].shape[0]
    assert B % block_b == 0
    nb = B // block_b
    layer_args = [p["a1"], p["c1"], p["a2"], p["c2"],
                  p["wqkv"], p["bqkv"], p["wo"], p["bo"],
                  p["w1"], p["b1"], p["w2"], p["b2"]]
    shared_args = [p["norm_alpha"], p["norm_bias"]]
    in_specs = (
        [pl.BlockSpec((block_b, S, D), lambda b, l: (b, 0, 0)),
         pl.BlockSpec((block_b, 1, S), lambda b, l: (b, 0, 0))]
        + [pl.BlockSpec((1,) + a.shape[1:], lambda b, l: (l, 0, 0)) for a in layer_args]
        + [pl.BlockSpec(a.shape, lambda b, l: (0, 0)) for a in shared_args])
    return pl.pallas_call(
        functools.partial(encoder_stack_kernel, num_heads=num_heads),
        out_shape=jax.ShapeDtypeStruct((B, S, D), jnp.float32),
        grid_spec=pltpu.PrefetchScalarGridSpec(
            num_scalar_prefetch=0,
            grid=(nb, N),
            in_specs=in_specs,
            out_specs=pl.BlockSpec((block_b, S, D), lambda b, l: (b, 0, 0)),
            scratch_shapes=[pltpu.VMEM((block_b, S, D), jnp.float32)]),
        compiler_params=_compiler_params(),
    )(x_emb, src_bias, *layer_args, *shared_args)


def decoder_call(x_emb, e_out, src_bias, trg_bias, p, num_heads, block_b):
    B, St, D = x_emb.shape
    N = p["wqkv1"].shape[0]
    assert B % block_b == 0
    nb = B // block_b
    layer_args = [p["a1"], p["c1"], p["a2"], p["c2"], p["a3"], p["c3"],
                  p["wqkv1"], p["bqkv1"], p["wo1"], p["bo1"],
                  p["wq2"], p["bq2"], p["wkv2"], p["bkv2"], p["wo2"], p["bo2"],
                  p["w1"], p["b1"], p["w2"], p["b2"]]
    shared_args = [p["norm_alpha"], p["norm_bias"]]
    in_specs = (
        [pl.BlockSpec((block_b,) + x_emb.shape[1:], lambda b, l: (b, 0, 0)),
         pl.BlockSpec((block_b,) + e_out.shape[1:], lambda b, l: (b, 0, 0)),
         pl.BlockSpec((block_b,) + src_bias.shape[1:], lambda b, l: (b, 0, 0)),
         pl.BlockSpec((block_b,) + trg_bias.shape[1:], lambda b, l: (b, 0, 0))]
        + [pl.BlockSpec((1,) + a.shape[1:], lambda b, l: (l, 0, 0)) for a in layer_args]
        + [pl.BlockSpec(a.shape, lambda b, l: (0, 0)) for a in shared_args])
    return pl.pallas_call(
        functools.partial(decoder_stack_kernel, num_heads=num_heads),
        out_shape=jax.ShapeDtypeStruct((B, St, D), jnp.float32),
        grid_spec=pltpu.PrefetchScalarGridSpec(
            num_scalar_prefetch=0,
            grid=(nb, N),
            in_specs=in_specs,
            out_specs=pl.BlockSpec((block_b, St, D), lambda b, l: (b, 0, 0)),
            scratch_shapes=[pltpu.VMEM((block_b, St, D), jnp.float32)]),
        compiler_params=_compiler_params(),
    )(x_emb, e_out, src_bias, trg_bias, *layer_args, *shared_args)


def out_projection_call(x, w, b, *, tile_v=128):
    """x:(B,St,D) f32, w:(D,V) bf16, b:(1,V) f32 -> logits (B,St,V) f32.

    Vocab is zero-padded to a 128 multiple and tiled so every output store is
    lane-dense and the resident weight block stays small (v7x VMEM budget).
    """
    B, St, D = x.shape
    V = w.shape[1]
    Vp = ((V + tile_v - 1) // tile_v) * tile_v
    R = B * St
    w_p = jnp.zeros((D, Vp), jnp.bfloat16).at[:, :V].set(w.astype(jnp.bfloat16))
    b_p = jnp.zeros((1, Vp), jnp.float32).at[:, :V].set(b.astype(jnp.float32))
    x2 = x.reshape(R, D)
    out = pl.pallas_call(
        out_proj_kernel,
        out_shape=jax.ShapeDtypeStruct((R, Vp), jnp.float32),
        grid_spec=pltpu.PrefetchScalarGridSpec(
            num_scalar_prefetch=0,
            grid=(1, Vp // tile_v),                 # row dim fits in one block here
            in_specs=[pl.BlockSpec((R, D), lambda i, j: (i, 0)),
                      pl.BlockSpec((D, tile_v), lambda i, j: (0, j)),
                      pl.BlockSpec((1, tile_v), lambda i, j: (0, j))],
            out_specs=pl.BlockSpec((R, tile_v), lambda i, j: (i, j))),
        compiler_params=pltpu.CompilerParams(
            dimension_semantics=("parallel", "parallel"),
            vmem_limit_bytes=_VMEM_LIMIT_BYTES),
    )(x2, w_p, b_p)
    return out[:, :V].reshape(B, St, V)


def transformer_forward(src, trg, src_mask, trg_mask, params, num_heads, block_b=None):
    # Embedding lookup is glue (gather) in plain JAX; all matmuls / norms /
    # attention / the vocab Linear run inside the Pallas kernels.
    enc_p, dec_p, out_p = params["encoder"], params["decoder"], params["out"]
    B = src.shape[0]
    bb = B if block_b is None else block_b     # whole batch per layer step by default
    # Additive mask biases computed once (not per layer step inside the kernel).
    src_bias = jnp.where(src_mask == 0.0, -1e9, 0.0).astype(jnp.float32)
    trg_bias = jnp.where(trg_mask == 0.0, -1e9, 0.0).astype(jnp.float32)
    x_src = jnp.take(enc_p["embed"], src, axis=0).astype(jnp.float32)   # (B, Ss, D)
    e_out = encoder_call(x_src, src_bias, enc_p, num_heads, bb)
    x_trg = jnp.take(dec_p["embed"], trg, axis=0).astype(jnp.float32)   # (B, St, D)
    d_out = decoder_call(x_trg, e_out, src_bias, trg_bias, dec_p, num_heads, bb)
    return out_projection_call(d_out, out_p["w"], out_p["b"])


# ---------------------------------------------------------------------------
# Deterministic parameter init (shapes follow the PyTorch module __init__).
# MXU weights are stored bf16; biases / norm params / embeddings stay f32.
# ---------------------------------------------------------------------------
def _uniform(key, shape, fan_in, dtype=jnp.float32):
    s = 1.0 / math.sqrt(fan_in)
    return jax.random.uniform(key, shape, jnp.float32, -s, s).astype(dtype)


def init_encoder_params(key, vocab, D, N, F):
    ks = jax.random.split(key, 9)
    bf = jnp.bfloat16
    return {
        "embed": jax.random.normal(ks[0], (vocab, D), jnp.float32),
        "a1": jnp.ones((N, 1, D), jnp.float32), "c1": jnp.zeros((N, 1, D), jnp.float32),
        "a2": jnp.ones((N, 1, D), jnp.float32), "c2": jnp.zeros((N, 1, D), jnp.float32),
        "wqkv": _uniform(ks[1], (N, D, 3 * D), D, bf),
        "bqkv": _uniform(ks[2], (N, 1, 3 * D), D),
        "wo": _uniform(ks[3], (N, D, D), D, bf),
        "bo": _uniform(ks[4], (N, 1, D), D),
        "w1": _uniform(ks[5], (N, D, F), D, bf),
        "b1": _uniform(ks[6], (N, 1, F), D),
        "w2": _uniform(ks[7], (N, F, D), F, bf),
        "b2": _uniform(ks[8], (N, 1, D), F),
        "norm_alpha": jnp.ones((1, D), jnp.float32),
        "norm_bias": jnp.zeros((1, D), jnp.float32),
    }


def init_decoder_params(key, vocab, D, N, F):
    ks = jax.random.split(key, 15)
    bf = jnp.bfloat16
    return {
        "embed": jax.random.normal(ks[0], (vocab, D), jnp.float32),
        "a1": jnp.ones((N, 1, D), jnp.float32), "c1": jnp.zeros((N, 1, D), jnp.float32),
        "a2": jnp.ones((N, 1, D), jnp.float32), "c2": jnp.zeros((N, 1, D), jnp.float32),
        "a3": jnp.ones((N, 1, D), jnp.float32), "c3": jnp.zeros((N, 1, D), jnp.float32),
        "wqkv1": _uniform(ks[1], (N, D, 3 * D), D, bf),
        "bqkv1": _uniform(ks[2], (N, 1, 3 * D), D),
        "wo1": _uniform(ks[3], (N, D, D), D, bf),
        "bo1": _uniform(ks[4], (N, 1, D), D),
        "wq2": _uniform(ks[5], (N, D, D), D, bf),
        "bq2": _uniform(ks[6], (N, 1, D), D),
        "wkv2": _uniform(ks[7], (N, D, 2 * D), D, bf),
        "bkv2": _uniform(ks[8], (N, 1, 2 * D), D),
        "wo2": _uniform(ks[9], (N, D, D), D, bf),
        "bo2": _uniform(ks[10], (N, 1, D), D),
        "w1": _uniform(ks[11], (N, D, F), D, bf),
        "b1": _uniform(ks[12], (N, 1, F), D),
        "w2": _uniform(ks[13], (N, F, D), F, bf),
        "b2": _uniform(ks[14], (N, 1, D), F),
        "norm_alpha": jnp.ones((1, D), jnp.float32),
        "norm_bias": jnp.zeros((1, D), jnp.float32),
    }


def init_params(key, src_vocab, trg_vocab, D, N, F):
    k_enc, k_dec, k_ow, k_ob = jax.random.split(key, 4)
    return {
        "encoder": init_encoder_params(k_enc, src_vocab, D, N, F),
        "decoder": init_decoder_params(k_dec, trg_vocab, D, N, F),
        "out": {"w": _uniform(k_ow, (D, trg_vocab), D, jnp.bfloat16),
                "b": _uniform(k_ob, (1, trg_vocab), D)},
    }


# ---------------------------------------------------------------------------
# Pure-JAX reference (mirrors the PyTorch forward, full f32 math) for checking
# ---------------------------------------------------------------------------
def _mha_ref(xq, xkv, wq, bq, wk, bk, wv, bv, wo, bo, mask, H):
    B, Sq, D = xq.shape
    Sk = xkv.shape[1]
    dh = D // H
    q = (xq @ wq + bq).reshape(B, Sq, H, dh).transpose(0, 2, 1, 3)
    k = (xkv @ wk + bk).reshape(B, Sk, H, dh).transpose(0, 2, 1, 3)
    v = (xkv @ wv + bv).reshape(B, Sk, H, dh).transpose(0, 2, 1, 3)
    sc = jnp.einsum("bhqd,bhkd->bhqk", q, k) / math.sqrt(dh)
    sc = jnp.where(mask[:, None] == 0.0, -1e9, sc)
    p = jax.nn.softmax(sc, axis=-1)
    out = jnp.einsum("bhqk,bhkd->bhqd", p, v).transpose(0, 2, 1, 3).reshape(B, Sq, D)
    return out @ wo + bo


def reference_forward(src, trg, src_mask, trg_mask, params, H):
    ep, dp, op = params["encoder"], params["decoder"], params["out"]
    D = ep["embed"].shape[1]

    # Encoder
    x = jnp.take(ep["embed"], src, axis=0).astype(jnp.float32)
    for i in range(ep["a1"].shape[0]):
        wqkv = ep["wqkv"][i].astype(jnp.float32)
        bqkv = ep["bqkv"][i]
        x2 = _layer_norm(x, ep["a1"][i], ep["c1"][i], D)
        x = x + _mha_ref(x2, x2,
                         wqkv[:, :D], bqkv[:, :D], wqkv[:, D:2 * D], bqkv[:, D:2 * D],
                         wqkv[:, 2 * D:], bqkv[:, 2 * D:],
                         ep["wo"][i].astype(jnp.float32), ep["bo"][i], src_mask, H)
        x2 = _layer_norm(x, ep["a2"][i], ep["c2"][i], D)
        x = (x + jnp.maximum(x2 @ ep["w1"][i].astype(jnp.float32) + ep["b1"][i], 0.0)
             @ ep["w2"][i].astype(jnp.float32) + ep["b2"][i])
    e_out = _layer_norm(x, ep["norm_alpha"], ep["norm_bias"], D)

    # Decoder
    x = jnp.take(dp["embed"], trg, axis=0).astype(jnp.float32)
    for i in range(dp["a1"].shape[0]):
        wqkv = dp["wqkv1"][i].astype(jnp.float32)
        bqkv = dp["bqkv1"][i]
        x2 = _layer_norm(x, dp["a1"][i], dp["c1"][i], D)
        x = x + _mha_ref(x2, x2,
                         wqkv[:, :D], bqkv[:, :D], wqkv[:, D:2 * D], bqkv[:, D:2 * D],
                         wqkv[:, 2 * D:], bqkv[:, 2 * D:],
                         dp["wo1"][i].astype(jnp.float32), dp["bo1"][i], trg_mask, H)
        wkv = dp["wkv2"][i].astype(jnp.float32)
        bkv = dp["bkv2"][i]
        x2 = _layer_norm(x, dp["a2"][i], dp["c2"][i], D)
        x = x + _mha_ref(x2, e_out,
                         dp["wq2"][i].astype(jnp.float32), dp["bq2"][i],
                         wkv[:, :D], bkv[:, :D], wkv[:, D:], bkv[:, D:],
                         dp["wo2"][i].astype(jnp.float32), dp["bo2"][i], src_mask, H)
        x2 = _layer_norm(x, dp["a3"][i], dp["c3"][i], D)
        x = (x + jnp.maximum(x2 @ dp["w1"][i].astype(jnp.float32) + dp["b1"][i], 0.0)
             @ dp["w2"][i].astype(jnp.float32) + dp["b2"][i])
    x = _layer_norm(x, dp["norm_alpha"], dp["norm_bias"], D)
    return x @ op["w"].astype(jnp.float32) + op["b"]


# ---------------------------------------------------------------------------
if __name__ == "__main__":
    # Small shapes consistent with the module; D=128 keeps the model dim and
    # the QKV split lane-aligned (per perf review).  num_h=4 -> dh=32.
    src_vocab, trg_vocab = 11, 13
    emb_dim, N_layers, num_h = 128, 2, 4
    d_ff = 2048                    # FeedForward default hidden size
    B, S_src, S_trg = 2, 8, 8

    key = jax.random.PRNGKey(0)
    k_par, k_src, k_trg = jax.random.split(key, 3)
    params = init_params(k_par, src_vocab, trg_vocab, emb_dim, N_layers, d_ff)

    src = jax.random.randint(k_src, (B, S_src), 0, src_vocab, dtype=jnp.int32)
    trg = jax.random.randint(k_trg, (B, S_trg), 0, trg_vocab, dtype=jnp.int32)

    # src_mask: (B, 1, S_src) pad mask; trg_mask: (B, S_trg, S_trg) causal (+pad)
    src_mask = jnp.ones((B, 1, S_src), jnp.float32)
    src_mask = src_mask.at[1, 0, -2:].set(0.0)          # pad last two src keys, batch 1
    causal = jnp.tril(jnp.ones((S_trg, S_trg), jnp.float32))
    trg_mask = jnp.broadcast_to(causal, (B, S_trg, S_trg))
    trg_mask = trg_mask.at[1, :, -1].set(0.0)           # also pad-mask last trg key, batch 1

    out = transformer_forward(src, trg, src_mask, trg_mask, params, num_h)
    out = jax.block_until_ready(out)

    ref = reference_forward(src, trg, src_mask, trg_mask, params, num_h)
    assert out.shape == (B, S_trg, trg_vocab)
    assert bool(jnp.all(jnp.isfinite(out)))
    # Tolerance covers bf16 MXU operands in the kernel vs. the f32 reference
    # (softmax / layer-norm / residuals are exact f32 in both).
    max_err = float(jnp.max(jnp.abs(out - ref)))
    assert bool(jnp.allclose(out, ref, rtol=5e-2, atol=5e-2)), f"max abs err = {max_err}"

    print("KERNEL_OK")
</pallas_src>

<mosaic_0001>
module attributes {stable_mosaic.version = 11 : i64} {
  func.func @encoder_stack_kernel(%arg0: i32, %arg1: i32, %arg2: memref<2x8x128xf32, #tpu.memory_space<vmem>>, %arg3: memref<2x1x8xf32, #tpu.memory_space<vmem>>, %arg4: memref<1x1x128xf32, #tpu.memory_space<vmem>>, %arg5: memref<1x1x128xf32, #tpu.memory_space<vmem>>, %arg6: memref<1x1x128xf32, #tpu.memory_space<vmem>>, %arg7: memref<1x1x128xf32, #tpu.memory_space<vmem>>, %arg8: memref<1x128x384xbf16, #tpu.memory_space<vmem>>, %arg9: memref<1x1x384xf32, #tpu.memory_space<vmem>>, %arg10: memref<1x128x128xbf16, #tpu.memory_space<vmem>>, %arg11: memref<1x1x128xf32, #tpu.memory_space<vmem>>, %arg12: memref<1x128x2048xbf16, #tpu.memory_space<vmem>>, %arg13: memref<1x1x2048xf32, #tpu.memory_space<vmem>>, %arg14: memref<1x2048x128xbf16, #tpu.memory_space<vmem>>, %arg15: memref<1x1x128xf32, #tpu.memory_space<vmem>>, %arg16: memref<1x128xf32, #tpu.memory_space<vmem>>, %arg17: memref<1x128xf32, #tpu.memory_space<vmem>>, %arg18: memref<2x8x128xf32, #tpu.memory_space<vmem>>, %arg19: memref<2x8x128xf32, #tpu.memory_space<vmem>>) attributes {dimension_semantics = [#tpu.dimension_semantics<parallel>, #tpu.dimension_semantics<arbitrary>], iteration_bounds = array<i64: 1, 2>, scalar_prefetch = 0 : i64, scratch_operands = 1 : i64, tpu.core_type = #tpu.core_type<tc>, window_params = [{transform_indices = @transform_0, window_bounds = array<i64: 2, 8, 128>}, {transform_indices = @transform_1, window_bounds = array<i64: 2, 1, 8>}, {transform_indices = @transform_2, window_bounds = array<i64: 1, 1, 128>}, {transform_indices = @transform_3, window_bounds = array<i64: 1, 1, 128>}, {transform_indices = @transform_4, window_bounds = array<i64: 1, 1, 128>}, {transform_indices = @transform_5, window_bounds = array<i64: 1, 1, 128>}, {transform_indices = @transform_6, window_bounds = array<i64: 1, 128, 384>}, {transform_indices = @transform_7, window_bounds = array<i64: 1, 1, 384>}, {transform_indices = @transform_8, window_bounds = array<i64: 1, 128, 128>}, {transform_indices = @transform_9, window_bounds = array<i64: 1, 1, 128>}, {transform_indices = @transform_10, window_bounds = array<i64: 1, 128, 2048>}, {transform_indices = @transform_11, window_bounds = array<i64: 1, 1, 2048>}, {transform_indices = @transform_12, window_bounds = array<i64: 1, 2048, 128>}, {transform_indices = @transform_13, window_bounds = array<i64: 1, 1, 128>}, {pipeline_mode = #tpu.pipeline_mode<synchronous>, transform_indices = @transform_14, window_bounds = array<i64: 1, 128>}, {pipeline_mode = #tpu.pipeline_mode<synchronous>, transform_indices = @transform_15, window_bounds = array<i64: 1, 128>}, {transform_indices = @transform_16, window_bounds = array<i64: 2, 8, 128>}]} {
    %c0_i32 = arith.constant 0 : i32
    %0 = arith.cmpi eq, %arg1, %c0_i32 : i32
    %1 = arith.extui %0 : i1 to i32
    %c0_i32_0 = arith.constant 0 : i32
    %2 = arith.cmpi ne, %1, %c0_i32_0 : i32
    scf.if %2 {
      %c0_81 = arith.constant 0 : index
      %c0_82 = arith.constant 0 : index
      %c0_83 = arith.constant 0 : index
      %197 = vector.load %arg2[%c0_81, %c0_82, %c0_83] : memref<2x8x128xf32, #tpu.memory_space<vmem>>, vector<2x8x128xf32>
      %c0_84 = arith.constant 0 : index
      %c0_85 = arith.constant 0 : index
      %c0_86 = arith.constant 0 : index
      %198 = vector.load %arg19[%c0_84, %c0_85, %c0_86] : memref<2x8x128xf32, #tpu.memory_space<vmem>>, vector<2x8x128xf32>
      tpu.vector_store %arg19[%c0_84, %c0_85, %c0_86], %197 {strides = array<i32>} : memref<2x8x128xf32, #tpu.memory_space<vmem>>, vector<2x8x128xf32>,
    } else {
    }
    %c0 = arith.constant 0 : index
    %c0_1 = arith.constant 0 : index
    %c0_2 = arith.constant 0 : index
    %3 = vector.load %arg19[%c0, %c0_1, %c0_2] : memref<2x8x128xf32, #tpu.memory_space<vmem>>, vector<2x8x128xf32>
    %4 = vector.shape_cast %3 : vector<2x8x128xf32> to vector<16x128xf32>
    %c0_3 = arith.constant 0 : index
    %c0_4 = arith.constant 0 : index
    %c0_5 = arith.constant 0 : index
    %5 = vector.load %arg3[%c0_3, %c0_4, %c0_5] : memref<2x1x8xf32, #tpu.memory_space<vmem>>, vector<2x1x8xf32>
    %c0_6 = arith.constant 0 : index
    %c0_7 = arith.constant 0 : index
    %c0_8 = arith.constant 0 : index
    %6 = vector.load %arg4[%c0_6, %c0_7, %c0_8] : memref<1x1x128xf32, #tpu.memory_space<vmem>>, vector<1x1x128xf32>
    %7 = vector.shape_cast %6 : vector<1x1x128xf32> to vector<1x128xf32>
    %c0_9 = arith.constant 0 : index
    %c0_10 = arith.constant 0 : index
    %c0_11 = arith.constant 0 : index
    %8 = vector.load %arg5[%c0_9, %c0_10, %c0_11] : memref<1x1x128xf32, #tpu.memory_space<vmem>>, vector<1x1x128xf32>
    %9 = vector.shape_cast %8 : vector<1x1x128xf32> to vector<1x128xf32>
    %cst = arith.constant dense<0.000000e+00> : vector<16xf32>
    %10 = vector.multi_reduction <add>, %4, %cst [1] : vector<16x128xf32> to vector<16xf32>
    %11 = vector.shape_cast %10 : vector<16xf32> to vector<16x1xf32>
    %cst_12 = arith.constant 1.280000e+02 : f32
    %12 = vector.broadcast %cst_12 : f32 to vector<16x1xf32>
    %13 = arith.divf %11, %12 : vector<16x1xf32>
    %14 = vector.broadcast %13 : vector<16x1xf32> to vector<16x128xf32>
    %15 = arith.subf %4, %14 : vector<16x128xf32>
    %16 = arith.mulf %15, %15 : vector<16x128xf32>
    %cst_13 = arith.constant dense<0.000000e+00> : vector<16xf32>
    %17 = vector.multi_reduction <add>, %16, %cst_13 [1] : vector<16x128xf32> to vector<16xf32>
    %18 = vector.shape_cast %17 : vector<16xf32> to vector<16x1xf32>
    %cst_14 = arith.constant 1.270000e+02 : f32
    %19 = vector.broadcast %cst_14 : f32 to vector<16x1xf32>
    %20 = arith.divf %18, %19 : vector<16x1xf32>
    %21 = vector.broadcast %13 : vector<16x1xf32> to vector<16x128xf32>
    %22 = arith.subf %4, %21 : vector<16x128xf32>
    %23 = vector.broadcast %7 : vector<1x128xf32> to vector<16x128xf32>
    %24 = arith.mulf %23, %22 : vector<16x128xf32>
    %25 = math.sqrt %20 : vector<16x1xf32>
    %cst_15 = arith.constant 9.99999997E-7 : f32
    %26 = vector.broadcast %cst_15 : f32 to vector<16x1xf32>
    %27 = arith.addf %25, %26 : vector<16x1xf32>
    %28 = vector.broadcast %27 : vector<16x1xf32> to vector<16x128xf32>
    %29 = arith.divf %24, %28 : vector<16x128xf32>
    %30 = vector.broadcast %9 : vector<1x128xf32> to vector<16x128xf32>
    %31 = arith.addf %29, %30 : vector<16x128xf32>
    %32 = arith.truncf %31 : vector<16x128xf32> to vector<16x128xbf16>
    %c0_16 = arith.constant 0 : index
    %c0_17 = arith.constant 0 : index
    %c0_18 = arith.constant 0 : index
    %33 = vector.load %arg8[%c0_16, %c0_17, %c0_18] : memref<1x128x384xbf16, #tpu.memory_space<vmem>>, vector<1x128x384xbf16>
    %34 = vector.shape_cast %33 : vector<1x128x384xbf16> to vector<128x384xbf16>
    %cst_19 = arith.constant dense<0.000000e+00> : vector<16x384xf32>
    %35 = tpu.matmul %32, %34, %cst_19 {dimension_numbers = #tpu.dot_dimension_numbers<[1], [0], [0], [1], [0, 0, 1, 1], [], []>} : vector<16x128xbf16>, vector<128x384xbf16>, vector<16x384xf32> -> vector<16x384xf32>
    %c0_20 = arith.constant 0 : index
    %c0_21 = arith.constant 0 : index
    %c0_22 = arith.constant 0 : index
    %36 = vector.load %arg9[%c0_20, %c0_21, %c0_22] : memref<1x1x384xf32, #tpu.memory_space<vmem>>, vector<1x1x384xf32>
    %37 = vector.shape_cast %36 : vector<1x1x384xf32> to vector<1x384xf32>
    %38 = vector.broadcast %37 : vector<1x384xf32> to vector<16x384xf32>
    %39 = arith.addf %35, %38 : vector<16x384xf32>
    %40 = vector.extract_strided_slice %39 {offsets = [0, 0], sizes = [16, 128], strides = [1, 1]} : vector<16x384xf32> to vector<16x128xf32>
    %cst_23 = arith.constant 0.176776692 : f32
    %41 = vector.broadcast %cst_23 : f32 to vector<16x128xf32>
    %42 = arith.mulf %40, %41 : vector<16x128xf32>
    %43 = vector.shape_cast %42 : vector<16x128xf32> to vector<2x8x128xf32>
    %44 = vector.extract_strided_slice %39 {offsets = [0, 128], sizes = [16, 128], strides = [1, 1]} : vector<16x384xf32> to vector<16x128xf32>
    %45 = vector.shape_cast %44 : vector<16x128xf32> to vector<2x8x128xf32>
    %46 = vector.extract_strided_slice %39 {offsets = [0, 256], sizes = [16, 128], strides = [1, 1]} : vector<16x384xf32> to vector<16x128xf32>
    %47 = vector.shape_cast %46 : vector<16x128xf32> to vector<2x8x128xf32>
    %c0_24 = arith.constant 0 : index
    %c0_25 = arith.constant 0 : index
    %c0_26 = arith.constant 0 : index
    %48 = vector.load %arg10[%c0_24, %c0_25, %c0_26] : memref<1x128x128xbf16, #tpu.memory_space<vmem>>, vector<1x128x128xbf16>
    %49 = vector.shape_cast %48 : vector<1x128x128xbf16> to vector<128x128xbf16>
    %50 = arith.truncf %43 : vector<2x8x128xf32> to vector<2x8x128xbf16>
    %51 = arith.truncf %45 : vector<2x8x128xf32> to vector<2x8x128xbf16>
    %52 = arith.truncf %47 : vector<2x8x128xf32> to vector<2x8x128xbf16>
    %cst_27 = arith.constant 0.000000e+00 : f32
    %53 = vector.broadcast %cst_27 : f32 to vector<16x128xf32>
    %54 = vector.extract_strided_slice %50 {offsets = [0, 0, 0], sizes = [2, 8, 32], strides = [1, 1, 1]} : vector<2x8x128xbf16> to vector<2x8x32xbf16>
    %55 = vector.extract_strided_slice %51 {offsets = [0, 0, 0], sizes = [2, 8, 32], strides = [1, 1, 1]} : vector<2x8x128xbf16> to vector<2x8x32xbf16>
    "tpu.trace_start"() <{level = 10 : i32, message = "bqd,bkd->bqk"}> : () -> ()
    %cst_28 = arith.constant dense<0.000000e+00> : vector<2x8x8xf32>
    %56 = tpu.matmul %54, %55, %cst_28 {dimension_numbers = #tpu.dot_dimension_numbers<[2], [2], [1], [1], [0, 0, 0, 1, 1, 1], [0], [0]>} : vector<2x8x32xbf16>, vector<2x8x32xbf16>, vector<2x8x8xf32> -> vector<2x8x8xf32>
    "tpu.trace_stop"() : () -> ()
    %57 = vector.broadcast %5 : vector<2x1x8xf32> to vector<2x8x8xf32>
    %58 = arith.addf %56, %57 : vector<2x8x8xf32>
    %cst_29 = arith.constant dense<0xFF800000> : vector<2x8xf32>
    %59 = vector.multi_reduction <maximumf>, %58, %cst_29 [2] : vector<2x8x8xf32> to vector<2x8xf32>
    %60 = vector.shape_cast %59 : vector<2x8xf32> to vector<2x8x1xf32>
    %61 = vector.broadcast %60 : vector<2x8x1xf32> to vector<2x8x8xf32>
    %62 = arith.subf %58, %61 : vector<2x8x8xf32>
    %63 = math.exp %62 : vector<2x8x8xf32>
    %cst_30 = arith.constant dense<0.000000e+00> : vector<2x8xf32>
    %64 = vector.multi_reduction <add>, %63, %cst_30 [2] : vector<2x8x8xf32> to vector<2x8xf32>
    %65 = vector.shape_cast %64 : vector<2x8xf32> to vector<2x8x1xf32>
    %66 = vector.broadcast %65 : vector<2x8x1xf32> to vector<2x8x8xf32>
    %67 = arith.divf %63, %66 : vector<2x8x8xf32>
    %68 = arith.truncf %67 : vector<2x8x8xf32> to vector<2x8x8xbf16>
    %69 = vector.extract_strided_slice %52 {offsets = [0, 0, 0], sizes = [2, 8, 32], strides = [1, 1, 1]} : vector<2x8x128xbf16> to vector<2x8x32xbf16>
    "tpu.trace_start"() <{level = 10 : i32, message = "bqk,bkd->bqd"}> : () -> ()
    %cst_31 = arith.constant dense<0.000000e+00> : vector<2x8x32xf32>
    %70 = tpu.matmul %68, %69, %cst_31 {dimension_numbers = #tpu.dot_dimension_numbers<[2], [1], [1], [2], [0, 0, 0, 1, 1, 2], [0], [0]>} : vector<2x8x8xbf16>, vector<2x8x32xbf16>, vector<2x8x32xf32> -> vector<2x8x32xf32>
    "tpu.trace_stop"() : () -> ()
    %71 = vector.shape_cast %70 : vector<2x8x32xf32> to vector<16x32xf32>
    %72 = arith.truncf %71 : vector<16x32xf32> to vector<16x32xbf16>
    %73 = vector.extract_strided_slice %49 {offsets = [0, 0], sizes = [32, 128], strides = [1, 1]} : vector<128x128xbf16> to vector<32x128xbf16>
    %cst_32 = arith.constant dense<0.000000e+00> : vector<16x128xf32>
    %74 = tpu.matmul %72, %73, %cst_32 {dimension_numbers = #tpu.dot_dimension_numbers<[1], [0], [0], [1], [0, 0, 1, 1], [], []>} : vector<16x32xbf16>, vector<32x128xbf16>, vector<16x128xf32> -> vector<16x128xf32>
    %75 = arith.addf %53, %74 : vector<16x128xf32>
    %76 = vector.extract_strided_slice %50 {offsets = [0, 0, 32], sizes = [2, 8, 32], strides = [1, 1, 1]} : vector<2x8x128xbf16> to vector<2x8x32xbf16>
    %77 = vector.extract_strided_slice %51 {offsets = [0, 0, 32], sizes = [2, 8, 32], strides = [1, 1, 1]} : vector<2x8x128xbf16> to vector<2x8x32xbf16>
    "tpu.trace_start"() <{level = 10 : i32, message = "bqd,bkd->bqk"}> : () -> ()
    %cst_33 = arith.constant dense<0.000000e+00> : vector<2x8x8xf32>
    %78 = tpu.matmul %76, %77, %cst_33 {dimension_numbers = #tpu.dot_dimension_numbers<[2], [2], [1], [1], [0, 0, 0, 1, 1, 1], [0], [0]>} : vector<2x8x32xbf16>, vector<2x8x32xbf16>, vector<2x8x8xf32> -> vector<2x8x8xf32>
    "tpu.trace_stop"() : () -> ()
    %79 = vector.broadcast %5 : vector<2x1x8xf32> to vector<2x8x8xf32>
    %80 = arith.addf %78, %79 : vector<2x8x8xf32>
    %cst_34 = arith.constant dense<0xFF800000> : vector<2x8xf32>
    %81 = vector.multi_reduction <maximumf>, %80, %cst_34 [2] : vector<2x8x8xf32> to vector<2x8xf32>
    %82 = vector.shape_cast %81 : vector<2x8xf32> to vector<2x8x1xf32>
    %83 = vector.broadcast %82 : vector<2x8x1xf32> to vector<2x8x8xf32>
    %84 = arith.subf %80, %83 : vector<2x8x8xf32>
    %85 = math.exp %84 : vector<2x8x8xf32>
    %cst_35 = arith.constant dense<0.000000e+00> : vector<2x8xf32>
    %86 = vector.multi_reduction <add>, %85, %cst_35 [2] : vector<2x8x8xf32> to vector<2x8xf32>
    %87 = vector.shape_cast %86 : vector<2x8xf32> to vector<2x8x1xf32>
    %88 = vector.broadcast %87 : vector<2x8x1xf32> to vector<2x8x8xf32>
    %89 = arith.divf %85, %88 : vector<2x8x8xf32>
    %90 = arith.truncf %89 : vector<2x8x8xf32> to vector<2x8x8xbf16>
    %91 = vector.extract_strided_slice %52 {offsets = [0, 0, 32], sizes = [2, 8, 32], strides = [1, 1, 1]} : vector<2x8x128xbf16> to vector<2x8x32xbf16>
    "tpu.trace_start"() <{level = 10 : i32, message = "bqk,bkd->bqd"}> : () -> ()
    %cst_36 = arith.constant dense<0.000000e+00> : vector<2x8x32xf32>
    %92 = tpu.matmul %90, %91, %cst_36 {dimension_numbers = #tpu.dot_dimension_numbers<[2], [1], [1], [2], [0, 0, 0, 1, 1, 2], [0], [0]>} : vector<2x8x8xbf16>, vector<2x8x32xbf16>, vector<2x8x32xf32> -> vector<2x8x32xf32>
    "tpu.trace_stop"() : () -> ()
    %93 = vector.shape_cast %92 : vector<2x8x32xf32> to vector<16x32xf32>
    %94 = arith.truncf %93 : vector<16x32xf32> to vector<16x32xbf16>
    %95 = vector.extract_strided_slice %49 {offsets = [32, 0], sizes = [32, 128], strides = [1, 1]} : vector<128x128xbf16> to vector<32x128xbf16>
    %cst_37 = arith.constant dense<0.000000e+00> : vector<16x128xf32>
    %96 = tpu.matmul %94, %95, %cst_37 {dimension_numbers = #tpu.dot_dimension_numbers<[1], [0], [0], [1], [0, 0, 1, 1], [], []>} : vector<16x32xbf16>, vector<32x128xbf16>, vector<16x128xf32> -> vector<16x128xf32>
    %97 = arith.addf %75, %96 : vector<16x128xf32>
    %98 = vector.extract_strided_slice %50 {offsets = [0, 0, 64], sizes = [2, 8, 32], strides = [1, 1, 1]} : vector<2x8x128xbf16> to vector<2x8x32xbf16>
    %99 = vector.extract_strided_slice %51 {offsets = [0, 0, 64], sizes = [2, 8, 32], strides = [1, 1, 1]} : vector<2x8x128xbf16> to vector<2x8x32xbf16>
    "tpu.trace_start"() <{level = 10 : i32, message = "bqd,bkd->bqk"}> : () -> ()
    %cst_38 = arith.constant dense<0.000000e+00> : vector<2x8x8xf32>
    %100 = tpu.matmul %98, %99, %cst_38 {dimension_numbers = #tpu.dot_dimension_numbers<[2], [2], [1], [1], [0, 0, 0, 1, 1, 1], [0], [0]>} : vector<2x8x32xbf16>, vector<2x8x32xbf16>, vector<2x8x8xf32> -> vector<2x8x8xf32>
    "tpu.trace_stop"() : () -> ()
    %101 = vector.broadcast %5 : vector<2x1x8xf32> to vector<2x8x8xf32>
    %102 = arith.addf %100, %101 : vector<2x8x8xf32>
    %cst_39 = arith.constant dense<0xFF800000> : vector<2x8xf32>
    %103 = vector.multi_reduction <maximumf>, %102, %cst_39 [2] : vector<2x8x8xf32> to vector<2x8xf32>
    %104 = vector.shape_cast %103 : vector<2x8xf32> to vector<2x8x1xf32>
    %105 = vector.broadcast %104 : vector<2x8x1xf32> to vector<2x8x8xf32>
    %106 = arith.subf %102, %105 : vector<2x8x8xf32>
    %107 = math.exp %106 : vector<2x8x8xf32>
    %cst_40 = arith.constant dense<0.000000e+00> : vector<2x8xf32>
    %108 = vector.multi_reduction <add>, %107, %cst_40 [2] : vector<2x8x8xf32> to vector<2x8xf32>
    %109 = vector.shape_cast %108 : vector<2x8xf32> to vector<2x8x1xf32>
    %110 = vector.broadcast %109 : vector<2x8x1xf32> to vector<2x8x8xf32>
    %111 = arith.divf %107, %110 : vector<2x8x8xf32>
    %112 = arith.truncf %111 : vector<2x8x8xf32> to vector<2x8x8xbf16>
    %113 = vector.extract_strided_slice %52 {offsets = [0, 0, 64], sizes = [2, 8, 32], strides = [1, 1, 1]} : vector<2x8x128xbf16> to vector<2x8x32xbf16>
    "tpu.trace_start"() <{level = 10 : i32, message = "bqk,bkd->bqd"}> : () -> ()
    %cst_41 = arith.constant dense<0.000000e+00> : vector<2x8x32xf32>
    %114 = tpu.matmul %112, %113, %cst_41 {dimension_numbers = #tpu.dot_dimension_numbers<[2], [1], [1], [2], [0, 0, 0, 1, 1, 2], [0], [0]>} : vector<2x8x8xbf16>, vector<2x8x32xbf16>, vector<2x8x32xf32> -> vector<2x8x32xf32>
    "tpu.trace_stop"() : () -> ()
    %115 = vector.shape_cast %114 : vector<2x8x32xf32> to vector<16x32xf32>
    %116 = arith.truncf %115 : vector<16x32xf32> to vector<16x32xbf16>
    %117 = vector.extract_strided_slice %49 {offsets = [64, 0], sizes = [32, 128], strides = [1, 1]} : vector<128x128xbf16> to vector<32x128xbf16>
    %cst_42 = arith.constant dense<0.000000e+00> : vector<16x128xf32>
    %118 = tpu.matmul %116, %117, %cst_42 {dimension_numbers = #tpu.dot_dimension_numbers<[1], [0], [0], [1], [0, 0, 1, 1], [], []>} : vector<16x32xbf16>, vector<32x128xbf16>, vector<16x128xf32> -> vector<16x128xf32>
    %119 = arith.addf %97, %118 : vector<16x128xf32>
    %120 = vector.extract_strided_slice %50 {offsets = [0, 0, 96], sizes = [2, 8, 32], strides = [1, 1, 1]} : vector<2x8x128xbf16> to vector<2x8x32xbf16>
    %121 = vector.extract_strided_slice %51 {offsets = [0, 0, 96], sizes = [2, 8, 32], strides = [1, 1, 1]} : vector<2x8x128xbf16> to vector<2x8x32xbf16>
    "tpu.trace_start"() <{level = 10 : i32, message = "bqd,bkd->bqk"}> : () -> ()
    %cst_43 = arith.constant dense<0.000000e+00> : vector<2x8x8xf32>
    %122 = tpu.matmul %120, %121, %cst_43 {dimension_numbers = #tpu.dot_dimension_numbers<[2], [2], [1], [1], [0, 0, 0, 1, 1, 1], [0], [0]>} : vector<2x8x32xbf16>, vector<2x8x32xbf16>, vector<2x8x8xf32> -> vector<2x8x8xf32>
    "tpu.trace_stop"() : () -> ()
    %123 = vector.broadcast %5 : vector<2x1x8xf32> to vector<2x8x8xf32>
    %124 = arith.addf %122, %123 : vector<2x8x8xf32>
    %cst_44 = arith.constant dense<0xFF800000> : vector<2x8xf32>
    %125 = vector.multi_reduction <maximumf>, %124, %cst_44 [2] : vector<2x8x8xf32> to vector<2x8xf32>
    %126 = vector.shape_cast %125 : vector<2x8xf32> to vector<2x8x1xf32>
    %127 = vector.broadcast %126 : vector<2x8x1xf32> to vector<2x8x8xf32>
    %128 = arith.subf %124, %127 : vector<2x8x8xf32>
    %129 = math.exp %128 : vector<2x8x8xf32>
    %cst_45 = arith.constant dense<0.000000e+00> : vector<2x8xf32>
    %130 = vector.multi_reduction <add>, %129, %cst_45 [2] : vector<2x8x8xf32> to vector<2x8xf32>
    %131 = vector.shape_cast %130 : vector<2x8xf32> to vector<2x8x1xf32>
    %132 = vector.broadcast %131 : vector<2x8x1xf32> to vector<2x8x8xf32>
    %133 = arith.divf %129, %132 : vector<2x8x8xf32>
    %134 = arith.truncf %133 : vector<2x8x8xf32> to vector<2x8x8xbf16>
    %135 = vector.extract_strided_slice %52 {offsets = [0, 0, 96], sizes = [2, 8, 32], strides = [1, 1, 1]} : vector<2x8x128xbf16> to vector<2x8x32xbf16>
    "tpu.trace_start"() <{level = 10 : i32, message = "bqk,bkd->bqd"}> : () -> ()
    %cst_46 = arith.constant dense<0.000000e+00> : vector<2x8x32xf32>
    %136 = tpu.matmul %134, %135, %cst_46 {dimension_numbers = #tpu.dot_dimension_numbers<[2], [1], [1], [2], [0, 0, 0, 1, 1, 2], [0], [0]>} : vector<2x8x8xbf16>, vector<2x8x32xbf16>, vector<2x8x32xf32> -> vector<2x8x32xf32>
    "tpu.trace_stop"() : () -> ()
    %137 = vector.shape_cast %136 : vector<2x8x32xf32> to vector<16x32xf32>
    %138 = arith.truncf %137 : vector<16x32xf32> to vector<16x32xbf16>
    %139 = vector.extract_strided_slice %49 {offsets = [96, 0], sizes = [32, 128], strides = [1, 1]} : vector<128x128xbf16> to vector<32x128xbf16>
    %cst_47 = arith.constant dense<0.000000e+00> : vector<16x128xf32>
    %140 = tpu.matmul %138, %139, %cst_47 {dimension_numbers = #tpu.dot_dimension_numbers<[1], [0], [0], [1], [0, 0, 1, 1], [], []>} : vector<16x32xbf16>, vector<32x128xbf16>, vector<16x128xf32> -> vector<16x128xf32>
    %141 = arith.addf %119, %140 : vector<16x128xf32>
    %142 = arith.addf %4, %141 : vector<16x128xf32>
    %c0_48 = arith.constant 0 : index
    %c0_49 = arith.constant 0 : index
    %c0_50 = arith.constant 0 : index
    %143 = vector.load %arg11[%c0_48, %c0_49, %c0_50] : memref<1x1x128xf32, #tpu.memory_space<vmem>>, vector<1x1x128xf32>
    %144 = vector.shape_cast %143 : vector<1x1x128xf32> to vector<1x128xf32>
    %145 = vector.broadcast %144 : vector<1x128xf32> to vector<16x128xf32>
    %146 = arith.addf %142, %145 : vector<16x128xf32>
    %c0_51 = arith.constant 0 : index
    %c0_52 = arith.constant 0 : index
    %c0_53 = arith.constant 0 : index
    %147 = vector.load %arg6[%c0_51, %c0_52, %c0_53] : memref<1x1x128xf32, #tpu.memory_space<vmem>>, vector<1x1x128xf32>
    %148 = vector.shape_cast %147 : vector<1x1x128xf32> to vector<1x128xf32>
    %c0_54 = arith.constant 0 : index
    %c0_55 = arith.constant 0 : index
    %c0_56 = arith.constant 0 : index
    %149 = vector.load %arg7[%c0_54, %c0_55, %c0_56] : memref<1x1x128xf32, #tpu.memory_space<vmem>>, vector<1x1x128xf32>
    %150 = vector.shape_cast %149 : vector<1x1x128xf32> to vector<1x128xf32>
    %cst_57 = arith.constant dense<0.000000e+00> : vector<16xf32>
    %151 = vector.multi_reduction <add>, %146, %cst_57 [1] : vector<16x128xf32> to vector<16xf32>
    %152 = vector.shape_cast %151 : vector<16xf32> to vector<16x1xf32>
    %cst_58 = arith.constant 1.280000e+02 : f32
    %153 = vector.broadcast %cst_58 : f32 to vector<16x1xf32>
    %154 = arith.divf %152, %153 : vector<16x1xf32>
    %155 = vector.broadcast %154 : vector<16x1xf32> to vector<16x128xf32>
    %156 = arith.subf %146, %155 : vector<16x128xf32>
    %157 = arith.mulf %156, %156 : vector<16x128xf32>
    %cst_59 = arith.constant dense<0.000000e+00> : vector<16xf32>
    %158 = vector.multi_reduction <add>, %157, %cst_59 [1] : vector<16x128xf32> to vector<16xf32>
    %159 = vector.shape_cast %158 : vector<16xf32> to vector<16x1xf32>
    %cst_60 = arith.constant 1.270000e+02 : f32
    %160 = vector.broadcast %cst_60 : f32 to vector<16x1xf32>
    %161 = arith.divf %159, %160 : vector<16x1xf32>
    %162 = vector.broadcast %154 : vector<16x1xf32> to vector<16x128xf32>
    %163 = arith.subf %146, %162 : vector<16x128xf32>
    %164 = vector.broadcast %148 : vector<1x128xf32> to vector<16x128xf32>
    %165 = arith.mulf %164, %163 : vector<16x128xf32>
    %166 = math.sqrt %161 : vector<16x1xf32>
    %cst_61 = arith.constant 9.99999997E-7 : f32
    %167 = vector.broadcast %cst_61 : f32 to vector<16x1xf32>
    %168 = arith.addf %166, %167 : vector<16x1xf32>
    %169 = vector.broadcast %168 : vector<16x1xf32> to vector<16x128xf32>
    %170 = arith.divf %165, %169 : vector<16x128xf32>
    %171 = vector.broadcast %150 : vector<1x128xf32> to vector<16x128xf32>
    %172 = arith.addf %170, %171 : vector<16x128xf32>
    %173 = arith.truncf %172 : vector<16x128xf32> to vector<16x128xbf16>
    %c0_62 = arith.constant 0 : index
    %c0_63 = arith.constant 0 : index
    %c0_64 = arith.constant 0 : index
    %174 = vector.load %arg12[%c0_62, %c0_63, %c0_64] : memref<1x128x2048xbf16, #tpu.memory_space<vmem>>, vector<1x128x2048xbf16>
    %175 = vector.shape_cast %174 : vector<1x128x2048xbf16> to vector<128x2048xbf16>
    %cst_65 = arith.constant dense<0.000000e+00> : vector<16x2048xf32>
    %176 = tpu.matmul %173, %175, %cst_65 {dimension_numbers = #tpu.dot_dimension_numbers<[1], [0], [0], [1], [0, 0, 1, 1], [], []>} : vector<16x128xbf16>, vector<128x2048xbf16>, vector<16x2048xf32> -> vector<16x2048xf32>
    %c0_66 = arith.constant 0 : index
    %c0_67 = arith.constant 0 : index
    %c0_68 = arith.constant 0 : index
    %177 = vector.load %arg13[%c0_66, %c0_67, %c0_68] : memref<1x1x2048xf32, #tpu.memory_space<vmem>>, vector<1x1x2048xf32>
    %178 = vector.shape_cast %177 : vector<1x1x2048xf32> to vector<1x2048xf32>
    %179 = vector.broadcast %178 : vector<1x2048xf32> to vector<16x2048xf32>
    %180 = arith.addf %176, %179 : vector<16x2048xf32>
    %cst_69 = arith.constant 0.000000e+00 : f32
    %181 = vector.broadcast %cst_69 : f32 to vector<16x2048xf32>
    %182 = arith.maximumf %180, %181 : vector<16x2048xf32>
    %183 = arith.truncf %182 : vector<16x2048xf32> to vector<16x2048xbf16>
    %c0_70 = arith.constant 0 : index
    %c0_71 = arith.constant 0 : index
    %c0_72 = arith.constant 0 : index
    %184 = vector.load %arg14[%c0_70, %c0_71, %c0_72] : memref<1x2048x128xbf16, #tpu.memory_space<vmem>>, vector<1x2048x128xbf16>
    %185 = vector.shape_cast %184 : vector<1x2048x128xbf16> to vector<2048x128xbf16>
    %cst_73 = arith.constant dense<0.000000e+00> : vector<16x128xf32>
    %186 = tpu.matmul %183, %185, %cst_73 {dimension_numbers = #tpu.dot_dimension_numbers<[1], [0], [0], [1], [0, 0, 1, 1], [], []>} : vector<16x2048xbf16>, vector<2048x128xbf16>, vector<16x128xf32> -> vector<16x128xf32>
    %c0_74 = arith.constant 0 : index
    %c0_75 = arith.constant 0 : index
    %c0_76 = arith.constant 0 : index
    %187 = vector.load %arg15[%c0_74, %c0_75, %c0_76] : memref<1x1x128xf32, #tpu.memory_space<vmem>>, vector<1x1x128xf32>
    %188 = vector.shape_cast %187 : vector<1x1x128xf32> to vector<1x128xf32>
    %189 = vector.broadcast %188 : vector<1x128xf32> to vector<16x128xf32>
    %190 = arith.addf %186, %189 : vector<16x128xf32>
    %191 = arith.addf %146, %190 : vector<16x128xf32>
    %192 = vector.shape_cast %191 : vector<16x128xf32> to vector<2x8x128xf32>
    %c0_77 = arith.constant 0 : index
    %c0_78 = arith.constant 0 : index
    %c0_79 = arith.constant 0 : index
    %193 = vector.load %arg19[%c0_77, %c0_78, %c0_79] : memref<2x8x128xf32, #tpu.memory_space<vmem>>, vector<2x8x128xf32>
    tpu.vector_store %arg19[%c0_77, %c0_78, %c0_79], %192 {strides = array<i32>} : memref<2x8x128xf32, #tpu.memory_space<vmem>>, vector<2x8x128xf32>,
    %c1_i32 = arith.constant 1 : i32
    %194 = arith.cmpi eq, %arg1, %c1_i32 : i32
    %195 = arith.extui %194 : i1 to i32
    %c0_i32_80 = arith.constant 0 : i32
    %196 = arith.cmpi ne, %195, %c0_i32_80 : i32
    scf.if %196 {
      %c0_81 = arith.constant 0 : index
      %c0_82 = arith.constant 0 : index
      %197 = vector.load %arg16[%c0_81, %c0_82] : memref<1x128xf32, #tpu.memory_space<vmem>>, vector<1x128xf32>
      %c0_83 = arith.constant 0 : index
      %c0_84 = arith.constant 0 : index
      %198 = vector.load %arg17[%c0_83, %c0_84] : memref<1x128xf32, #tpu.memory_space<vmem>>, vector<1x128xf32>
      %cst_85 = arith.constant dense<0.000000e+00> : vector<16xf32>
      %199 = vector.multi_reduction <add>, %191, %cst_85 [1] : vector<16x128xf32> to vector<16xf32>
      %200 = vector.shape_cast %199 : vector<16xf32> to vector<16x1xf32>
      %cst_86 = arith.constant 1.280000e+02 : f32
      %201 = vector.broadcast %cst_86 : f32 to vector<16x1xf32>
      %202 = arith.divf %200, %201 : vector<16x1xf32>
      %203 = vector.broadcast %202 : vector<16x1xf32> to vector<16x128xf32>
      %204 = arith.subf %191, %203 : vector<16x128xf32>
      %205 = arith.mulf %204, %204 : vector<16x128xf32>
      %cst_87 = arith.constant dense<0.000000e+00> : vector<16xf32>
      %206 = vector.multi_reduction <add>, %205, %cst_87 [1] : vector<16x128xf32> to vector<16xf32>
      %207 = vector.shape_cast %206 : vector<16xf32> to vector<16x1xf32>
      %cst_88 = arith.constant 1.270000e+02 : f32
      %208 = vector.broadcast %cst_88 : f32 to vector<16x1xf32>
      %209 = arith.divf %207, %208 : vector<16x1xf32>
      %210 = vector.broadcast %202 : vector<16x1xf32> to vector<16x128xf32>
      %211 = arith.subf %191, %210 : vector<16x128xf32>
      %212 = vector.broadcast %197 : vector<1x128xf32> to vector<16x128xf32>
      %213 = arith.mulf %212, %211 : vector<16x128xf32>
      %214 = math.sqrt %209 : vector<16x1xf32>
      %cst_89 = arith.constant 9.99999997E-7 : f32
      %215 = vector.broadcast %cst_89 : f32 to vector<16x1xf32>
      %216 = arith.addf %214, %215 : vector<16x1xf32>
      %217 = vector.broadcast %216 : vector<16x1xf32> to vector<16x128xf32>
      %218 = arith.divf %213, %217 : vector<16x128xf32>
      %219 = vector.broadcast %198 : vector<1x128xf32> to vector<16x128xf32>
      %220 = arith.addf %218, %219 : vector<16x128xf32>
      %221 = vector.shape_cast %220 : vector<16x128xf32> to vector<2x8x128xf32>
      %c0_90 = arith.constant 0 : index
      %c0_91 = arith.constant 0 : index
      %c0_92 = arith.constant 0 : index
      %222 = vector.load %arg18[%c0_90, %c0_91, %c0_92] : memref<2x8x128xf32, #tpu.memory_space<vmem>>, vector<2x8x128xf32>
      tpu.vector_store %arg18[%c0_90, %c0_91, %c0_92], %221 {strides = array<i32>} : memref<2x8x128xf32, #tpu.memory_space<vmem>>, vector<2x8x128xf32>,
    } else {
    }
    return
  }
  func.func @transform_0(%arg0: i32, %arg1: i32) -> (i32, i32, i32) {
    %c0_i32 = arith.constant 0 : i32
    %c0_i32_0 = arith.constant 0 : i32
    %c0_i32_1 = arith.constant 0 : i32
    return %arg0, %c0_i32, %c0_i32_0 : i32, i32, i32
  }
  func.func @transform_1(%arg0: i32, %arg1: i32) -> (i32, i32, i32) {
    %c0_i32 = arith.constant 0 : i32
    %c0_i32_0 = arith.constant 0 : i32
    %c0_i32_1 = arith.constant 0 : i32
    return %arg0, %c0_i32, %c0_i32_0 : i32, i32, i32
  }
  func.func @transform_2(%arg0: i32, %arg1: i32) -> (i32, i32, i32) {
    %c0_i32 = arith.constant 0 : i32
    %c0_i32_0 = arith.constant 0 : i32
    %c0_i32_1 = arith.constant 0 : i32
    return %arg1, %c0_i32, %c0_i32_0 : i32, i32, i32
  }
  func.func @transform_3(%arg0: i32, %arg1: i32) -> (i32, i32, i32) {
    %c0_i32 = arith.constant 0 : i32
    %c0_i32_0 = arith.constant 0 : i32
    %c0_i32_1 = arith.constant 0 : i32
    return %arg1, %c0_i32, %c0_i32_0 : i32, i32, i32
  }
  func.func @transform_4(%arg0: i32, %arg1: i32) -> (i32, i32, i32) {
    %c0_i32 = arith.constant 0 : i32
    %c0_i32_0 = arith.constant 0 : i32
    %c0_i32_1 = arith.constant 0 : i32
    return %arg1, %c0_i32, %c0_i32_0 : i32, i32, i32
  }
  func.func @transform_5(%arg0: i32, %arg1: i32) -> (i32, i32, i32) {
    %c0_i32 = arith.constant 0 : i32
    %c0_i32_0 = arith.constant 0 : i32
    %c0_i32_1 = arith.constant 0 : i32
    return %arg1, %c0_i32, %c0_i32_0 : i32, i32, i32
  }
  func.func @transform_6(%arg0: i32, %arg1: i32) -> (i32, i32, i32) {
    %c0_i32 = arith.constant 0 : i32
    %c0_i32_0 = arith.constant 0 : i32
    %c0_i32_1 = arith.constant 0 : i32
    return %arg1, %c0_i32, %c0_i32_0 : i32, i32, i32
  }
  func.func @transform_7(%arg0: i32, %arg1: i32) -> (i32, i32, i32) {
    %c0_i32 = arith.constant 0 : i32
    %c0_i32_0 = arith.constant 0 : i32
    %c0_i32_1 = arith.constant 0 : i32
    return %arg1, %c0_i32, %c0_i32_0 : i32, i32, i32
  }
  func.func @transform_8(%arg0: i32, %arg1: i32) -> (i32, i32, i32) {
    %c0_i32 = arith.constant 0 : i32
    %c0_i32_0 = arith.constant 0 : i32
    %c0_i32_1 = arith.constant 0 : i32
    return %arg1, %c0_i32, %c0_i32_0 : i32, i32, i32
  }
  func.func @transform_9(%arg0: i32, %arg1: i32) -> (i32, i32, i32) {
    %c0_i32 = arith.constant 0 : i32
    %c0_i32_0 = arith.constant 0 : i32
    %c0_i32_1 = arith.constant 0 : i32
    return %arg1, %c0_i32, %c0_i32_0 : i32, i32, i32
  }
  func.func @transform_10(%arg0: i32, %arg1: i32) -> (i32, i32, i32) {
    %c0_i32 = arith.constant 0 : i32
    %c0_i32_0 = arith.constant 0 : i32
    %c0_i32_1 = arith.constant 0 : i32
    return %arg1, %c0_i32, %c0_i32_0 : i32, i32, i32
  }
  func.func @transform_11(%arg0: i32, %arg1: i32) -> (i32, i32, i32) {
    %c0_i32 = arith.constant 0 : i32
    %c0_i32_0 = arith.constant 0 : i32
    %c0_i32_1 = arith.constant 0 : i32
    return %arg1, %c0_i32, %c0_i32_0 : i32, i32, i32
  }
  func.func @transform_12(%arg0: i32, %arg1: i32) -> (i32, i32, i32) {
    %c0_i32 = arith.constant 0 : i32
    %c0_i32_0 = arith.constant 0 : i32
    %c0_i32_1 = arith.constant 0 : i32
    return %arg1, %c0_i32, %c0_i32_0 : i32, i32, i32
  }
  func.func @transform_13(%arg0: i32, %arg1: i32) -> (i32, i32, i32) {
    %c0_i32 = arith.constant 0 : i32
    %c0_i32_0 = arith.constant 0 : i32
    %c0_i32_1 = arith.constant 0 : i32
    return %arg1, %c0_i32, %c0_i32_0 : i32, i32, i32
  }
  func.func @transform_14(%arg0: i32, %arg1: i32) -> (i32, i32) {
    %c0_i32 = arith.constant 0 : i32
    %c0_i32_0 = arith.constant 0 : i32
    %c0_i32_1 = arith.constant 0 : i32
    return %c0_i32, %c0_i32_0 : i32, i32
  }
  func.func @transform_15(%arg0: i32, %arg1: i32) -> (i32, i32) {
    %c0_i32 = arith.constant 0 : i32
    %c0_i32_0 = arith.constant 0 : i32
    %c0_i32_1 = arith.constant 0 : i32
    return %c0_i32, %c0_i32_0 : i32, i32
  }
  func.func @transform_16(%arg0: i32, %arg1: i32) -> (i32, i32, i32) {
    %c0_i32 = arith.constant 0 : i32
    %c0_i32_0 = arith.constant 0 : i32
    %c0_i32_1 = arith.constant 0 : i32
    return %arg0, %c0_i32, %c0_i32_0 : i32, i32, i32
  }
}

</mosaic_0001>

<bundles_post_ra>
// kernel: tpu_custom_call.1
= control target key start
LH: loop header
LB: loop body
LE: loop exit
PB: predicated region body
PF: predicated region fallthrough
CT: control target
= control target key end

     0   :  { %s8589_s0 = inlined_call_operand.hbm [shape: f32[2,8,128], index: 0, kind: input, shape index: {}]   ;;  %s8590_s1 = inlined_call_operand.hbm [shape: f32[2,1,8], index: 1, kind: input, shape index: {}]   ;;  %s8591_s2 = inlined_call_operand.hbm [shape: f32[2,1,128], index: 2, kind: input, shape index: {}]   ;;  %s8592_s3 = inlined_call_operand.hbm [shape: f32[2,1,128], index: 3, kind: input, shape index: {}]   ;;  %s8593_s4 = inlined_call_operand.hbm [shape: f32[2,1,128], index: 4, kind: input, shape index: {}]   ;;  %s8594_s5 = inlined_call_operand.hbm [shape: f32[2,1,128], index: 5, kind: input, shape index: {}]   ;;  %s8595_s6 = inlined_call_operand.hbm [shape: bf16[2,128,384], index: 6, kind: input, shape index: {}]   ;;  %s8596_s7 = inlined_call_operand.hbm [shape: f32[2,1,384], index: 7, kind: input, shape index: {}]   ;;  %s8597_s8 = inlined_call_operand.hbm [shape: bf16[2,128,128], index: 8, kind: input, shape index: {}]   ;;  %s8598_s9 = inlined_call_operand.hbm [shape: f32[2,1,128], index: 9, kind: input, shape index: {}]   ;;  %s8599_s10 = inlined_call_operand.hbm [shape: bf16[2,128,2048], index: 10, kind: input, shape index: {}]   ;;  %s8600_s11 = inlined_call_operand.hbm [shape: f32[2,1,2048], index: 11, kind: input, shape index: {}]   ;;  %s8601_s12 = inlined_call_operand.hbm [shape: bf16[2,2048,128], index: 12, kind: input, shape index: {}]   ;;  %s8602_s13 = inlined_call_operand.hbm [shape: f32[2,1,128], index: 13, kind: input, shape index: {}]   ;;  %s8603_s14 = inlined_call_operand.hbm [shape: f32[1,128], index: 14, kind: input, shape index: {}]   ;;  %s8604_s15 = inlined_call_operand.hbm [shape: f32[1,128], index: 15, kind: input, shape index: {}]   ;;  %s8605_s16 = inlined_call_operand.hbm [shape: f32[2,8,128], index: 16, kind: output, shape index: {}]  }
   0x1   :  { %8641 = sst [smem:[#allocation40_spill]] %s8589_s0 }
   0x2   :  { %8642 = sst [smem:[#allocation41_spill]] %s8590_s1 }
   0x3   :  { %8643 = sst [smem:[#allocation42_spill]] %s8591_s2 }
   0x4   :  { %8644 = sst [smem:[#allocation43_spill]] %s8592_s3 }
   0x5   :  { %8645 = sst [smem:[#allocation44_spill]] %s8593_s4 }
   0x6   :  { %8646 = sst [smem:[#allocation45_spill]] %s8594_s5 }
   0x7   :  { %8647 = sst [smem:[#allocation46_spill]] %s8595_s6 }
   0x8   :  { %8648 = sst [smem:[#allocation47_spill]] %s8601_s12 }
   0x9   :  { %8649 = sst [smem:[#allocation48_spill]] %s8602_s13 }
   0xa   :  { %8650 = sst [smem:[#allocation49_spill]] %s8603_s14 }
   0xb   :  { %8651 = sst [smem:[#allocation50_spill]] %s8604_s15 }
   0xc   :  { %8652 = sst [smem:[#allocation51_spill]] %s8605_s16 }
   0xd   :  { %21 = vsyncpa [#allocation4], 0 }
   0xe   :  { %22 = vsyncpa [#allocation7], 0 }
   0xf   :  { %23 = vsyncpa [#allocation22], 0 }
  0x10   :  { %24 = vsyncpa [#allocation5], 0  ;;  %s7346_s21 = smov 0   ;;  %s7348_s22 = smov 0  }
  0x11   :  { %s7350_s23 = smov 0   ;;  %s7352_s24 = smov 0  }
  0x12   :  { %s7354_s25 = smov 0   ;;  %s7356_s26 = smov 0  }
  0x13 LB: > { %8653 = sst [smem:[#allocation30_spill]] %s7209_s22  ;;  %s7375_s27 = sadd.s32 4294967295, %s7225_s26   ;;  %s7225_s26 = sphi %s7356_s26, %s30_s26   ;;  %s7221_s25 = sphi %s7354_s25, %s8724_s25   ;;  %s7217_s24 = sphi %s7352_s24, %s8723_s24   ;;  %s7213_s23 = sphi %s7350_s23, %s8721_s23   ;;  %s7209_s22 = sphi %s7348_s22, %s8720_s22   ;;  %s7205_s21 = sphi %s7346_s21, %s8719_s21  }
  0x14   : > { %8654 = sst [smem:[#allocation31_spill]] %s7213_s23  ;;  %s39_s28 = sadd.s32 1, %s7221_s25 }
  0x15   : > { %8655 = sst [smem:[#allocation32_spill]] %s7217_s24  ;;  %p40_p0 = scmp.ge.s32.totalorder %s39_s28, 2 }
  0x16   : > { %8656 = sst [smem:[#allocation33_spill]] %s7225_s26  ;;  %s101_s29 = sadd.s32 1, %s7213_s23 }
  0x17   : > { %8657 = sst [smem:[#allocation34_spill]] %s7375_s27  ;;  %p108_p1 = scmp.ne.s32.totalorder %s7213_s23, %s7209_s22 }
  0x18   : > { %p109_p2 = scmp.eq.s32.totalorder %s7225_s26, 0  ;;  %s8726_s28 = smov (%p40_p0, %s39_s28), 0 }
  0x19   : > { %8658 = sst [smem:[#allocation35_spill]] %s8726_s28  ;;  %p114_p4 = scmp.ne.s32.totalorder %s7209_s22, %s7205_s21 }
  0x1a   : > { %p7384_p3 = por %p109_p2, %p108_p1  ;;  %s98_s0 = ssub.s32 %s7221_s25, %s8726_s28 }
  0x1b   : > { %p8618_p5 = scmp.eq.s32.totalorder %s7375_s27, 0  ;;  %p99_p6 = scmp.eq.s32.totalorder %s98_s0, 0 }
  0x1c   : > { %s8659_s30 = scalar_select %p7384_p3, 1, 0 }
  0x1d   : > { %p5510_p7 = scmp.ge.s32.totalorder %s7225_s26, 1  ;;  %p7395_p8 = por %p8618_p5, %p114_p4 }
  0x1e   : > { %p479_p9 = scmp.lt.s32.totalorder %s7225_s26, 3  ;;  %s7227_s20 = smov [#allocation3]  }
  0x1f   : > { %s8660_s17 = scalar_select %p7395_p8, 1, 0 }
  0x20   : > { %s7401_s18 = scalar_select %p99_p6, %s7213_s23, %s101_s29  }
  0x21   : > { %8661 = sst [smem:[#allocation36_spill]] %s8660_s17  ;;  %p7403_p10 = pnand %p5510_p7, %p479_p9 }
  0x22   : > { %8662 = sst [smem:[#allocation37_spill]] %s7401_s18  ;;  %s494_s21 = sshll.u32 %s7227_s20, 4  ;;  %s495_s21 = int_to_ptr.vmem [resolvable:$true] %s494_s21 }
  0x23   : > { %s8663_s19 = scalar_select %p7403_p10, 1, 0 }
  0x24   : > { %p6300_p11 = pneg %p7403_p10  ;;  %s7417_s28 = sand.u32 1, %s7213_s23  }
  0x25   : > { %8664 = sst [smem:[#allocation38_spill]] %s8663_s19  ;;  %s546_s29 = sand.u32 1, %s7225_s26  }
  0x26   : > { %p7411_p12 = pnand %p6300_p11, %p8618_p5  ;;  %s8667_s24 = sld [smem:[#allocation40_spill]] }
  0x28   : > { %s8665_s0 = scalar_select %p7411_p12, 1, 0 }
  0x29   : > { %p7428_p1 = pneg %p7411_p12 }
  0x2a   : > { %8666 = sst [smem:[#allocation39_spill]] %s8665_s0 }
  0x2b   : > { %s8669_s20 = scalar_select %p7428_p1, 1, 0 }
  0x2c   : > { %s8668_s17 = smov %s8667_s24  ;;  %s6657_s22 = scalar_lea.hbm %s8667_s24, 256 }
  0x2d   : > { %p6658_p0 = scmp.ne.s32.totalorder %s8668_s17, %s6657_s22  ;;  %p6664_p6 = scmp.lt.u32.totalorder %s6657_s22, %s8668_s17 }
  0x2f   : > { %p6660_p2 = pnand %p7428_p1, %p6658_p0 }
  0x31   : > { %p6661_p4 = pneg %p6660_p2 }
  0x33   : > { %p6666_p7 = pnand %p6664_p6, %p6661_p4 }
  0x35   : > { %6669 = shalt.err (!%p6666_p7)
}
  0x36   : > { %s6670_s16 = scalar_lea.vmem %s495_s21, 256  ;;  %p6678_p13 = scmp.lt.s32.totalorder %s495_s21, %s495_s21 }
  0x37   : > { %p6671_p9 = scmp.ne.s32.totalorder %s495_s21, %s6670_s16  ;;  %p6679_p8 = scmp.lt.s32.totalorder %s6670_s16, %s6670_s16 }
  0x39   : > { %p6673_p11 = pnand %p6671_p9, %p7428_p1  ;;  %p6680_p10 = por %p6679_p8, %p6678_p13 }
  0x3b   : > { %p6674_p5 = pneg %p6673_p11 }
  0x3d   : > { %p6681_p3 = pnand %p6680_p10, %p6674_p5 }
  0x3f   : > { %6684 = shalt.err (!%p6681_p3)
}
  0x40   : > { %s7228_s15 = smov 128   ;;  %s7229_s22 = smov 8  }
  0x41   : > { %6303 = dma.hbm_to_vmem [thread:$0]  (!%p7411_p12), %s8668_s17, 256, %s495_s21, [#allocation4], %s7228_s15, %s7228_s15, %s7229_s22  }
  0x42   : > { %p8670_p0 = scmp.ne.s32.totalorder %s8659_s30, 0  ;;  %p8671_p2 = scmp.lt.s32.totalorder %s7225_s26, 2 }
  0x43   : > { %s7453_s18 = sshll.u32 %s7221_s25, 4  ;;  %s8673_s2 = sld [smem:[#allocation42_spill]] }
  0x44   : > { %p7448_p4 = pnand %p8671_p2, %p8670_p0  ;;  %s549_s30 = scalar_lea.vmem [#allocation8], %s7417_s28 }
  0x45   : > { %s556_s21 = sshll.u32 %s549_s30, 4  ;;  %s8674_s3 = sld [smem:[#allocation43_spill]]  ;;  %s7462_s21 = int_to_ptr.vmem [resolvable:$true] %s556_s21 }
  0x46   : > { %s8672_s27 = scalar_select %p7448_p4, 1, 0 }
  0x47   : > { %s7470_s24 = scalar_lea.sflag [#allocation4], %s546_s29  ;;  %p7476_p5 = pneg %p7448_p4 }
  0x49   : > { %s7459_s13 = scalar_lea.hbm %s8673_s2, %s7453_s18  ;;  %s6690_s26 = scalar_lea.hbm %s8673_s2, 32 }
  0x4a   : > { %s6685_s17 = scalar_lea.hbm %s7459_s13, 16  ;;  %p6691_p13 = scmp.lt.u32.totalorder %s7459_s13, %s8673_s2 }
  0x4b   : > { %s7468_s23 = scalar_lea.hbm %s8674_s3, %s7453_s18  ;;  %p6686_p3 = scmp.ne.s32.totalorder %s7459_s13, %s6685_s17 }
  0x4c   : > { %s8675_s19 = scalar_select %p7476_p5, 1, 0 }
  0x4d   : > { %p6688_p8 = pnand %p7476_p5, %p6686_p3  ;;  %p6692_p6 = scmp.lt.u32.totalorder %s6690_s26, %s6685_s17 }
  0x4e   : > { %p6694_p9 = scmp.lt.u32.totalorder %s6685_s17, %s7459_s13 }
  0x4f   : > { %p6689_p10 = pneg %p6688_p8  ;;  %p6693_p7 = por %p6692_p6, %p6691_p13 }
  0x51   : > { %p6695_p11 = por %p6694_p9, %p6693_p7 }
  0x53   : > { %p6696_p0 = pnand %p6695_p11, %p6689_p10 }
  0x55   : > { %6699 = shalt.err (!%p6696_p0)
}
  0x56   : > { %s6700_s29 = scalar_lea.vmem %s7462_s21, 16  ;;  %s7230_s16 = smov [#allocation8]  }
  0x57   : > { %p6701_p2 = scmp.ne.s32.totalorder %s7462_s21, %s6700_s29  ;;  %s6705_s30 = sshll.u32 %s7230_s16, 4  ;;  %s6706_s30 = int_to_ptr.vmem [resolvable:$false] %s6705_s30 }
  0x58   : > { %s6707_s15 = scalar_lea.vmem %s6706_s30, 32  ;;  %p6708_p12 = scmp.lt.s32.totalorder %s7462_s21, %s6706_s30 }
  0x59   : > { %p6703_p3 = pnand %p6701_p2, %p7476_p5  ;;  %p6709_p1 = scmp.lt.s32.totalorder %s6707_s15, %s6700_s29 }
  0x5b   : > { %p6704_p8 = pneg %p6703_p3  ;;  %p6710_p13 = por %p6709_p1, %p6708_p12 }
  0x5d   : > { %p6711_p6 = pnand %p6710_p13, %p6704_p8 }
  0x5f   : > { %6714 = shalt.err (!%p6711_p6)
}
  0x60   : > { %6316 = dma.hbm_to_vmem [thread:$0]  (!%p7448_p4), %s7459_s13, 16, %s7462_s21, %s7470_s24  }
  0x61   : > { %s566_s26 = scalar_lea.vmem [#allocation9], %s7417_s28  ;;  %s8676_s4 = sld [smem:[#allocation44_spill]] }
  0x62   : > { %s573_s17 = sshll.u32 %s566_s26, 4  ;;  %s6715_s30 = scalar_lea.hbm %s7468_s23, 16  ;;  %s574_s17 = int_to_ptr.vmem [resolvable:$true] %s573_s17 }
  0x63   : > { %p6716_p12 = scmp.ne.s32.totalorder %s7468_s23, %s6715_s30  ;;  %s6720_s14 = scalar_lea.hbm %s8674_s3, 32 }
  0x64   : > { %p6721_p7 = scmp.lt.u32.totalorder %s7468_s23, %s8674_s3  ;;  %p6722_p9 = scmp.lt.u32.totalorder %s6720_s14, %s6715_s30 }
  0x65   : > { %p6718_p1 = pnand %p6716_p12, %p7476_p5  ;;  %p6724_p0 = scmp.lt.u32.totalorder %s6715_s30, %s7468_s23 }
  0x66   : > { %p6723_p11 = por %p6722_p9, %p6721_p7 }
  0x67   : > { %s7505_s16 = scalar_lea.hbm %s8676_s4, %s7453_s18  ;;  %p6719_p10 = pneg %p6718_p1 }
  0x68   : > { %p6725_p2 = por %p6724_p0, %p6723_p11 }
  0x6a   : > { %p6726_p3 = pnand %p6725_p2, %p6719_p10 }
  0x6c   : > { %6729 = shalt.err (!%p6726_p3)
}
  0x6d   : > { %s6730_s13 = scalar_lea.vmem %s574_s17, 16  ;;  %s7231_s21 = smov [#allocation9]  }
  0x6e   : > { %p6731_p8 = scmp.ne.s32.totalorder %s574_s17, %s6730_s13  ;;  %s6735_s26 = sshll.u32 %s7231_s21, 4  ;;  %s6736_s26 = int_to_ptr.vmem [resolvable:$false] %s6735_s26 }
  0x6f   : > { %s6737_s2 = scalar_lea.vmem %s6736_s26, 32  ;;  %p6738_p12 = scmp.lt.s32.totalorder %s574_s17, %s6736_s26 }
  0x70   : > { %p6733_p13 = pnand %p6731_p8, %p7476_p5  ;;  %p6739_p1 = scmp.lt.s32.totalorder %s6737_s2, %s6730_s13 }
  0x72   : > { %p6734_p6 = pneg %p6733_p13  ;;  %p6740_p4 = por %p6739_p1, %p6738_p12 }
  0x74   : > { %p6741_p7 = pnand %p6740_p4, %p6734_p6 }
  0x76   : > { %6744 = shalt.err (!%p6741_p7)
}
  0x77   : > { %p8677_p9 = scmp.ne.s32.totalorder %s8672_s27, 0  ;;  %s583_s12 = scalar_lea.vmem [#allocation10], %s7417_s28 }
  0x78   : > { %s590_s14 = sshll.u32 %s583_s12, 4  ;;  %s8678_s5 = sld [smem:[#allocation45_spill]]  ;;  %s591_s14 = int_to_ptr.vmem [resolvable:$true] %s590_s14 }
  0x79   : > { %6319 = dma.hbm_to_vmem [thread:$0]  (!%p8677_p9), %s7468_s23, 16, %s574_s17, %s7470_s24  }
  0x7a   : > { %s6745_s30 = scalar_lea.hbm %s7505_s16, 16  ;;  %s6750_s21 = scalar_lea.hbm %s8676_s4, 32 }
  0x7b   : > { %p6746_p4 = scmp.ne.s32.totalorder %s7505_s16, %s6745_s30  ;;  %p6751_p0 = scmp.lt.u32.totalorder %s7505_s16, %s8676_s4 }
  0x7c   : > { %p6752_p2 = scmp.lt.u32.totalorder %s6750_s21, %s6745_s30  ;;  %p6754_p8 = scmp.lt.u32.totalorder %s6745_s30, %s7505_s16 }
  0x7d   : > { %p6748_p10 = pnand %p6746_p4, %p7476_p5 }
  0x7e   : > { %s7530_s29 = scalar_lea.hbm %s8678_s5, %s7453_s18  ;;  %p6753_p3 = por %p6752_p2, %p6751_p0 }
  0x7f   : > { %p6749_p11 = pneg %p6748_p10 }
  0x80   : > { %p6755_p13 = por %p6754_p8, %p6753_p3 }
  0x82   : > { %p6756_p6 = pnand %p6755_p13, %p6749_p11 }
  0x84   : > { %6759 = shalt.err (!%p6756_p6)
}
  0x85   : > { %s6760_s23 = scalar_lea.vmem %s591_s14, 16  ;;  %s7232_s17 = smov [#allocation10]  }
  0x86   : > { %p6761_p12 = scmp.ne.s32.totalorder %s591_s14, %s6760_s23  ;;  %s6765_s12 = sshll.u32 %s7232_s17, 4  ;;  %s6766_s12 = int_to_ptr.vmem [resolvable:$false] %s6765_s12 }
  0x87   : > { %s6767_s0 = scalar_lea.vmem %s6766_s12, 32  ;;  %p6768_p4 = scmp.lt.s32.totalorder %s591_s14, %s6766_s12 }
  0x88   : > { %p6763_p1 = pnand %p6761_p12, %p7476_p5  ;;  %p6769_p10 = scmp.lt.s32.totalorder %s6767_s0, %s6760_s23 }
  0x8a   : > { %p6764_p7 = pneg %p6763_p1  ;;  %p6770_p9 = por %p6769_p10, %p6768_p4 }
  0x8c   : > { %p6771_p0 = pnand %p6770_p9, %p6764_p7 }
  0x8e   : > { %6774 = shalt.err (!%p6771_p0)
}
  0x8f   : > { %p8679_p2 = scmp.ne.s32.totalorder %s8672_s27, 0  ;;  %s600_s22 = scalar_lea.vmem [#allocation11], %s7417_s28 }
  0x90   : > { %s607_s30 = sshll.u32 %s600_s22, 4  ;;  %s6250_s15 = smul.u32 192, %s7417_s28  ;;  %s608_s30 = int_to_ptr.vmem [resolvable:$true] %s607_s30 }
  0x91   : > { %6322 = dma.hbm_to_vmem [thread:$0]  (!%p8679_p2), %s7505_s16, 16, %s591_s14, %s7470_s24  }
  0x92   : > { %s6251_s13 = smul.u32 3072, %s7221_s25  ;;  %s6775_s21 = scalar_lea.hbm %s7530_s29, 16 }
  0x93   : > { %p6776_p9 = scmp.ne.s32.totalorder %s7530_s29, %s6775_s21  ;;  %s6780_s23 = scalar_lea.hbm %s8678_s5, 32 }
  0x94   : > { %p6781_p8 = scmp.lt.u32.totalorder %s7530_s29, %s8678_s5  ;;  %p6782_p13 = scmp.lt.u32.totalorder %s6780_s23, %s6775_s21 }
  0x95   : > { %p6778_p11 = pnand %p6776_p9, %p7476_p5  ;;  %p6784_p12 = scmp.lt.u32.totalorder %s6775_s21, %s7530_s29 }
  0x96   : > { %p6783_p6 = por %p6782_p13, %p6781_p8 }
  0x97   : > { %p6779_p3 = pneg %p6778_p11 }
  0x98   : > { %p6785_p1 = por %p6784_p12, %p6783_p6 }
  0x9a   : > { %p6786_p7 = pnand %p6785_p1, %p6779_p3 }
  0x9c   : > { %6789 = shalt.err (!%p6786_p7)
}
  0x9d   : > { %s6790_s16 = scalar_lea.vmem %s608_s30, 16  ;;  %s7233_s14 = smov [#allocation11]  }
  0x9e   : > { %p6791_p4 = scmp.ne.s32.totalorder %s608_s30, %s6790_s16  ;;  %s6795_s0 = sshll.u32 %s7233_s14, 4  ;;  %s6796_s0 = int_to_ptr.vmem [resolvable:$false] %s6795_s0 }
  0x9f   : > { %s6797_s22 = scalar_lea.vmem %s6796_s0, 32  ;;  %p6798_p9 = scmp.lt.s32.totalorder %s608_s30, %s6796_s0 }
  0xa0   : > { %p6793_p10 = pnand %p6791_p4, %p7476_p5  ;;  %p6799_p11 = scmp.lt.s32.totalorder %s6797_s22, %s6790_s16 }
  0xa2   : > { %p6794_p0 = pneg %p6793_p10  ;;  %p6800_p2 = por %p6799_p11, %p6798_p9 }
  0xa4   : > { %p6801_p8 = pnand %p6800_p2, %p6794_p0 }
  0xa6   : > { %6804 = shalt.err (!%p6801_p8)
}
  0xa7   : > { %p8680_p13 = scmp.ne.s32.totalorder %s8672_s27, 0  ;;  %s8681_s6 = sld [smem:[#allocation46_spill]] }
  0xa8   : > { %s618_s23 = scalar_lea.vmem [#allocation12], %s6250_s15 }
  0xa9   : > { %6325 = dma.hbm_to_vmem [thread:$0]  (!%p8680_p13), %s7530_s29, 16, %s608_s30, %s7470_s24  }
  0xaa   : > { %s625_s17 = sshll.u32 %s618_s23, 4  ;;  %s7578_s17 = int_to_ptr.vmem [resolvable:$true] %s625_s17 }
  0xad   : > { %s7574_s2 = scalar_lea.hbm %s8681_s6, %s6251_s13  ;;  %s6810_s16 = scalar_lea.hbm %s8681_s6, 6144 }
  0xae   : > { %s6805_s12 = scalar_lea.hbm %s7574_s2, 3072  ;;  %p6811_p12 = scmp.lt.u32.totalorder %s7574_s2, %s8681_s6 }
  0xaf   : > { %p6806_p2 = scmp.ne.s32.totalorder %s7574_s2, %s6805_s12  ;;  %p6812_p1 = scmp.lt.u32.totalorder %s6810_s16, %s6805_s12 }
  0xb0   : > { %p6814_p4 = scmp.lt.u32.totalorder %s6805_s12, %s7574_s2 }
  0xb1   : > { %p6808_p3 = pnand %p6806_p2, %p7476_p5  ;;  %p6813_p7 = por %p6812_p1, %p6811_p12 }
  0xb3   : > { %p6809_p6 = pneg %p6808_p3  ;;  %p6815_p10 = por %p6814_p4, %p6813_p7 }
  0xb5   : > { %p6816_p0 = pnand %p6815_p10, %p6809_p6 }
  0xb7   : > { %6819 = shalt.err (!%p6816_p0)
}
  0xb8   : > { %s6820_s15 = scalar_lea.vmem %s7578_s17, 3072  ;;  %s7234_s0 = smov [#allocation12]  }
  0xb9   : > { %p6821_p9 = scmp.ne.s32.totalorder %s7578_s17, %s6820_s15  ;;  %s6825_s22 = sshll.u32 %s7234_s0, 4  ;;  %s6826_s22 = int_to_ptr.vmem [resolvable:$false] %s6825_s22 }
  0xba   : > { %s6827_s21 = scalar_lea.vmem %s6826_s22, 6144  ;;  %p6828_p2 = scmp.lt.s32.totalorder %s7578_s17, %s6826_s22 }
  0xbb   : > { %p6823_p11 = pnand %p6821_p9, %p7476_p5  ;;  %p6829_p3 = scmp.lt.s32.totalorder %s6827_s21, %s6820_s15 }
  0xbd   : > { %p6824_p8 = pneg %p6823_p11  ;;  %p6830_p12 = por %p6829_p3, %p6828_p2 }
  0xbf   : > { %p6831_p1 = pnand %p6830_p12, %p6824_p8 }
  0xc1   : > { %6834 = shalt.err (!%p6831_p1)
}
  0xc2   : > { %s7235_s26 = smov 192   ;;  %s7236_s23 = smov 12  }
  0xc3   : > { %6328 = dma.hbm_to_vmem [thread:$0]  (!%p8680_p13), %s7574_s2, 3072, %s7578_s17, %s7470_s24, %s7235_s26, %s7235_s26, %s7236_s23  }
  0xc4   : > { %s6252_s12 = smul.u32 3, %s7417_s28  ;;  %s5522_s29 = sshll.u32 %s7417_s28, 6 }
  0xc5   : > { %s6253_s30 = smul.u32 48, %s7221_s25  ;;  %s5869_s16 = sshll.u32 %s7221_s25, 10 }
  0xc6   : > { %s639_s0 = scalar_lea.vmem [#allocation13], %s6252_s12  ;;  %s7614_s2 = scalar_lea.hbm %s8597_s8, %s5869_s16 }
  0xc7   : > { %s7609_s15 = scalar_lea.hbm %s8596_s7, %s6253_s30  ;;  %s647_s22 = sshll.u32 %s639_s0, 4  ;;  %s648_s22 = int_to_ptr.vmem [resolvable:$true] %s647_s22 }
  0xc8   : > { %s6835_s17 = scalar_lea.hbm %s7609_s15, 48  ;;  %s6840_s30 = scalar_lea.hbm %s8596_s7, 96 }
  0xc9   : > { %p6836_p6 = scmp.ne.s32.totalorder %s7609_s15, %s6835_s17  ;;  %p6841_p10 = scmp.lt.u32.totalorder %s7609_s15, %s8596_s7 }
  0xca   : > { %p6842_p0 = scmp.lt.u32.totalorder %s6840_s30, %s6835_s17  ;;  %p6844_p11 = scmp.lt.u32.totalorder %s6835_s17, %s7609_s15 }
  0xcb   : > { %p6838_p7 = pnand %p6836_p6, %p7476_p5 }
  0xcc   : > { %p6843_p9 = por %p6842_p0, %p6841_p10 }
  0xcd   : > { %p6839_p4 = pneg %p6838_p7 }
  0xce   : > { %p6845_p8 = por %p6844_p11, %p6843_p9 }
  0xd0   : > { %p6846_p2 = pnand %p6845_p8, %p6839_p4 }
  0xd2   : > { %6849 = shalt.err (!%p6846_p2)
}
  0xd3   : > { %s6850_s3 = scalar_lea.vmem %s648_s22, 48  ;;  %s7237_s12 = smov [#allocation13]  }
  0xd4   : > { %p6851_p3 = scmp.ne.s32.totalorder %s648_s22, %s6850_s3  ;;  %s6855_s16 = sshll.u32 %s7237_s12, 4  ;;  %s6856_s16 = int_to_ptr.vmem [resolvable:$false] %s6855_s16 }
  0xd5   : > { %s6857_s0 = scalar_lea.vmem %s6856_s16, 96  ;;  %p6858_p6 = scmp.lt.s32.totalorder %s648_s22, %s6856_s16 }
  0xd6   : > { %p6853_p12 = pnand %p6851_p3, %p7476_p5  ;;  %p6859_p7 = scmp.lt.s32.totalorder %s6857_s0, %s6850_s3 }
  0xd8   : > { %p6854_p1 = pneg %p6853_p12  ;;  %p6860_p13 = por %p6859_p7, %p6858_p6 }
  0xda   : > { %p6861_p0 = pnand %p6860_p13, %p6854_p1 }
  0xdc   : > { %6864 = shalt.err (!%p6861_p0)
}
  0xdd   : > { %p8682_p10 = scmp.ne.s32.totalorder %s8672_s27, 0  ;;  %s658_s21 = scalar_lea.vmem [#allocation14], %s5522_s29 }
  0xde   : > { %s665_s17 = sshll.u32 %s658_s21, 4  ;;  %s6865_s26 = scalar_lea.hbm %s7614_s2, 1024  ;;  %s7636_s17 = int_to_ptr.vmem [resolvable:$true] %s665_s17 }
  0xdf   : > { %6331 = dma.hbm_to_vmem [thread:$0]  (!%p8682_p10), %s7609_s15, 48, %s648_s22, %s7470_s24  }
  0xe0   : > { %p6866_p4 = scmp.ne.s32.totalorder %s7614_s2, %s6865_s26  ;;  %s6870_s13 = scalar_lea.hbm %s8597_s8, 2048 }
  0xe1   : > { %p6871_p11 = scmp.lt.u32.totalorder %s7614_s2, %s8597_s8  ;;  %p6872_p8 = scmp.lt.u32.totalorder %s6870_s13, %s6865_s26 }
  0xe2   : > { %p6868_p13 = pnand %p6866_p4, %p7476_p5  ;;  %p6874_p3 = scmp.lt.u32.totalorder %s6865_s26, %s7614_s2 }
  0xe3   : > { %p6873_p2 = por %p6872_p8, %p6871_p11 }
  0xe4   : > { %p6869_p9 = pneg %p6868_p13 }
  0xe5   : > { %p6875_p12 = por %p6874_p3, %p6873_p2 }
  0xe7   : > { %p6876_p1 = pnand %p6875_p12, %p6869_p9 }
  0xe9   : > { %6879 = shalt.err (!%p6876_p1)
}
  0xea   : > { %s6880_s29 = scalar_lea.vmem %s7636_s17, 1024  ;;  %s7238_s15 = smov [#allocation14]  }
  0xeb   : > { %p6881_p6 = scmp.ne.s32.totalorder %s7636_s17, %s6880_s29  ;;  %s6885_s22 = sshll.u32 %s7238_s15, 4  ;;  %s6886_s22 = int_to_ptr.vmem [resolvable:$false] %s6885_s22 }
  0xec   : > { %s6887_s12 = scalar_lea.vmem %s6886_s22, 2048  ;;  %p6888_p4 = scmp.lt.s32.totalorder %s7636_s17, %s6886_s22 }
  0xed   : > { %p6883_p7 = pnand %p6881_p6, %p7476_p5  ;;  %p6889_p13 = scmp.lt.s32.totalorder %s6887_s12, %s6880_s29 }
  0xef   : > { %p6884_p0 = pneg %p6883_p7  ;;  %p6890_p11 = por %p6889_p13, %p6888_p4 }
  0xf1   : > { %p6891_p8 = pnand %p6890_p11, %p6884_p0 }
  0xf3   : > { %6894 = shalt.err (!%p6891_p8)
}
  0xf4   : > { %s8637_s16 = smov 64   ;;  %s8638_s0 = smov 4  }
  0xf5   : > { %6334 = dma.hbm_to_vmem [thread:$0]  (!%p8682_p10), %s7614_s2, 1024, %s7636_s17, %s7470_s24, %s8637_s16, %s8637_s16, %s8638_s0  }
  0xf6   : > { %s7667_s23 = scalar_lea.hbm %s8598_s9, %s7453_s18  ;;  %s678_s30 = scalar_lea.vmem [#allocation15], %s7417_s28 }
  0xf7   : > { %s685_s13 = sshll.u32 %s678_s30, 4  ;;  %s5526_s14 = sshll.u32 %s7417_s28, 10  ;;  %s686_s13 = int_to_ptr.vmem [resolvable:$true] %s685_s13 }
  0xf8   : > { %s6895_s3 = scalar_lea.hbm %s7667_s23, 16  ;;  %s6900_s17 = scalar_lea.hbm %s8598_s9, 32 }
  0xf9   : > { %p6896_p9 = scmp.ne.s32.totalorder %s7667_s23, %s6895_s3  ;;  %p6901_p12 = scmp.lt.u32.totalorder %s7667_s23, %s8598_s9 }
  0xfa   : > { %p6902_p1 = scmp.lt.u32.totalorder %s6900_s17, %s6895_s3  ;;  %p6904_p7 = scmp.lt.u32.totalorder %s6895_s3, %s7667_s23 }
  0xfb   : > { %p6898_p2 = pnand %p6896_p9, %p7476_p5 }
  0xfc   : > { %p6903_p6 = por %p6902_p1, %p6901_p12 }
  0xfd   : > { %p6899_p3 = pneg %p6898_p2 }
  0xfe   : > { %p6905_p0 = por %p6904_p7, %p6903_p6 }
 0x100   : > { %p6906_p4 = pnand %p6905_p0, %p6899_p3 }
 0x102   : > { %6909 = shalt.err (!%p6906_p4)
}
 0x103   : > { %s6910_s12 = scalar_lea.vmem %s686_s13, 16  ;;  %s7241_s21 = smov [#allocation15]  }
 0x104   : > { %p6911_p13 = scmp.ne.s32.totalorder %s686_s13, %s6910_s12  ;;  %s6915_s26 = sshll.u32 %s7241_s21, 4  ;;  %s6916_s26 = int_to_ptr.vmem [resolvable:$false] %s6915_s26 }
 0x105   : > { %s6917_s30 = scalar_lea.vmem %s6916_s26, 32  ;;  %p6918_p9 = scmp.lt.s32.totalorder %s686_s13, %s6916_s26 }
 0x106   : > { %p6913_p11 = pnand %p6911_p13, %p7476_p5  ;;  %p6919_p2 = scmp.lt.s32.totalorder %s6917_s30, %s6910_s12 }
 0x108   : > { %p6914_p8 = pneg %p6913_p11  ;;  %p6920_p10 = por %p6919_p2, %p6918_p9 }
 0x10a   : > { %p6921_p1 = pnand %p6920_p10, %p6914_p8 }
 0x10c   : > { %6924 = shalt.err (!%p6921_p1)
}
 0x10d   : > { %p8683_p12 = scmp.ne.s32.totalorder %s8672_s27, 0  ;;  %s5870_s3 = sshll.u32 %s7221_s25, 14 }
 0x10e   : > { %s696_s29 = scalar_lea.vmem [#allocation16], %s5526_s14  ;;  %s7697_s22 = scalar_lea.hbm %s8599_s10, %s5870_s3 }
 0x10f   : > { %6337 = dma.hbm_to_vmem [thread:$0]  (!%p8683_p12), %s7667_s23, 16, %s686_s13, %s7470_s24  }
 0x110   : > { %s703_s2 = sshll.u32 %s696_s29, 4  ;;  %s5529_s12 = sshll.u32 %s7417_s28, 4  ;;  %s7699_s2 = int_to_ptr.vmem [resolvable:$true] %s703_s2 }
 0x111   : > { %s6925_s21 = scalar_lea.hbm %s7697_s22, 16384  ;;  %s6930_s26 = scalar_lea.hbm %s8599_s10, 32768 }
 0x112   : > { %p6926_p10 = scmp.ne.s32.totalorder %s7697_s22, %s6925_s21  ;;  %p6931_p7 = scmp.lt.u32.totalorder %s7697_s22, %s8599_s10 }
 0x113   : > { %p6932_p0 = scmp.lt.u32.totalorder %s6930_s26, %s6925_s21  ;;  %p6934_p13 = scmp.lt.u32.totalorder %s6925_s21, %s7697_s22 }
 0x114   : > { %p6928_p3 = pnand %p6926_p10, %p7476_p5 }
 0x115   : > { %p6933_p4 = por %p6932_p0, %p6931_p7 }
 0x116   : > { %p6929_p6 = pneg %p6928_p3 }
 0x117   : > { %p6935_p11 = por %p6934_p13, %p6933_p4 }
 0x119   : > { %p6936_p8 = pnand %p6935_p11, %p6929_p6 }
 0x11b   : > { %6939 = shalt.err (!%p6936_p8)
}
 0x11c   : > { %s6940_s17 = scalar_lea.vmem %s7699_s2, 16384  ;;  %s7242_s15 = smov [#allocation16]  }
 0x11d   : > { %p6941_p9 = scmp.ne.s32.totalorder %s7699_s2, %s6940_s17  ;;  %s6945_s23 = sshll.u32 %s7242_s15, 4  ;;  %s6946_s23 = int_to_ptr.vmem [resolvable:$false] %s6945_s23 }
 0x11e   : > { %s6947_s13 = scalar_lea.vmem %s6946_s23, 32768  ;;  %p6948_p10 = scmp.lt.s32.totalorder %s7699_s2, %s6946_s23 }
 0x11f   : > { %p6943_p2 = pnand %p6941_p9, %p7476_p5  ;;  %p6949_p3 = scmp.lt.s32.totalorder %s6947_s13, %s6940_s17 }
 0x121   : > { %p6944_p1 = pneg %p6943_p2  ;;  %p6950_p7 = por %p6949_p3, %p6948_p10 }
 0x123   : > { %p6951_p0 = pnand %p6950_p7, %p6944_p1 }
 0x125   : > { %6954 = shalt.err (!%p6951_p0)
}
 0x126   : > { %s7243_s21 = smov 1024   ;;  %s5871_s26 = sshll.u32 %s7221_s25, 8 }
 0x127   : > { %6340 = dma.hbm_to_vmem [thread:$0]  (!%p8683_p12), %s7697_s22, 16384, %s7699_s2, %s7470_s24, %s7243_s21, %s7243_s21, %s8637_s16  }
 0x128   : > { %s7729_s15 = scalar_lea.hbm %s8600_s11, %s5871_s26  ;;  %s717_s17 = scalar_lea.vmem [#allocation17], %s5529_s12 }
 0x129   : > { %s725_s23 = sshll.u32 %s717_s17, 4  ;;  %s6955_s13 = scalar_lea.hbm %s7729_s15, 256  ;;  %s726_s23 = int_to_ptr.vmem [resolvable:$true] %s725_s23 }
 0x12a   : > { %p6956_p6 = scmp.ne.s32.totalorder %s7729_s15, %s6955_s13  ;;  %s6960_s21 = scalar_lea.hbm %s8600_s11, 512 }
 0x12b   : > { %p6961_p11 = scmp.lt.u32.totalorder %s7729_s15, %s8600_s11  ;;  %p6962_p8 = scmp.lt.u32.totalorder %s6960_s21, %s6955_s13 }
 0x12c   : > { %p6958_p4 = pnand %p6956_p6, %p7476_p5  ;;  %p6964_p2 = scmp.lt.u32.totalorder %s6955_s13, %s7729_s15 }
 0x12d   : > { %p6963_p9 = por %p6962_p8, %p6961_p11 }
 0x12e   : > { %p6959_p13 = pneg %p6958_p4 }
 0x12f   : > { %p6965_p1 = por %p6964_p2, %p6963_p9 }
 0x131   : > { %p6966_p10 = pnand %p6965_p1, %p6959_p13 }
 0x133   : > { %6969 = shalt.err (!%p6966_p10)
}
 0x134   : > { %s6970_s12 = scalar_lea.vmem %s726_s23, 256  ;;  %s7244_s29 = smov [#allocation17]  }
 0x135   : > { %p6971_p3 = scmp.ne.s32.totalorder %s726_s23, %s6970_s12  ;;  %s6975_s17 = sshll.u32 %s7244_s29, 4  ;;  %s6976_s17 = int_to_ptr.vmem [resolvable:$false] %s6975_s17 }
 0x136   : > { %s6977_s2 = scalar_lea.vmem %s6976_s17, 512  ;;  %p6978_p6 = scmp.lt.s32.totalorder %s726_s23, %s6976_s17 }
 0x137   : > { %p6973_p7 = pnand %p6971_p3, %p7476_p5  ;;  %p6979_p4 = scmp.lt.s32.totalorder %s6977_s2, %s6970_s12 }
 0x139   : > { %p6974_p0 = pneg %p6973_p7  ;;  %p6980_p12 = por %p6979_p4, %p6978_p6 }
 0x13b   : > { %p6981_p8 = pnand %p6980_p12, %p6974_p0 }
 0x13d   : > { %6984 = shalt.err (!%p6981_p8)
}
 0x13e   : > { %p8684_p11 = scmp.ne.s32.totalorder %s8672_s27, 0  ;;  %s7245_s13 = smov [#allocation6]  }
 0x13f   : > { %s510_s22 = sshll.u32 %s7245_s13, 4  ;;  %s8685_s1 = sld [smem:[#allocation41_spill]]  ;;  %s511_s22 = int_to_ptr.vmem [resolvable:$true] %s510_s22 }
 0x140   : > { %6343 = dma.hbm_to_vmem [thread:$0]  (!%p8684_p11), %s7729_s15, 256, %s726_s23, %s7470_s24  }
 0x141   : > { %p8686_p9 = scmp.ne.s32.totalorder %s8669_s20, 0 }
 0x145   : > { %s6985_s26 = scalar_lea.hbm %s8685_s1, 32 }
 0x146   : > { %p6986_p13 = scmp.ne.s32.totalorder %s8685_s1, %s6985_s26  ;;  %p6992_p1 = scmp.lt.u32.totalorder %s6985_s26, %s8685_s1 }
 0x148   : > { %p6988_p12 = pnand %p6986_p13, %p8686_p9 }
 0x14a   : > { %p6989_p2 = pneg %p6988_p12 }
 0x14c   : > { %p6994_p10 = pnand %p6992_p1, %p6989_p2 }
 0x14e   : > { %6997 = shalt.err (!%p6994_p10)
}
 0x14f   : > { %s6998_s15 = scalar_lea.vmem %s511_s22, 32  ;;  %p7006_p6 = scmp.lt.s32.totalorder %s511_s22, %s511_s22 }
 0x150   : > { %p6999_p3 = scmp.ne.s32.totalorder %s511_s22, %s6998_s15  ;;  %p7007_p4 = scmp.lt.s32.totalorder %s6998_s15, %s6998_s15 }
 0x152   : > { %p7001_p7 = pnand %p6999_p3, %p8686_p9  ;;  %p7008_p8 = por %p7007_p4, %p7006_p6 }
 0x154   : > { %p7002_p0 = pneg %p7001_p7 }
 0x156   : > { %p7009_p11 = pnand %p7008_p8, %p7002_p0 }
 0x158   : > { %7012 = shalt.err (!%p7009_p11)
}
 0x159   : > { %s7246_s16 = smov 16   ;;  %s8687_s23 = sld [smem:[#allocation39_spill]] }
 0x15a   : > { %s7247_s2 = smov 1   ;;  %s8689_s29 = sld [smem:[#allocation47_spill]] }
 0x15b   : > { %s736_s17 = scalar_lea.vmem [#allocation18], %s5526_s14  ;;  %s7248_s0 = smov [#allocation20]  }
 0x15c   : > { %s743_s15 = sshll.u32 %s736_s17, 4  ;;  %s7780_s4 = sshll.u32 %s7248_s0, 4  ;;  %s7778_s15 = int_to_ptr.vmem [resolvable:$true] %s743_s15  ;;  %s525_s4 = int_to_ptr.vmem [resolvable:$true] %s7780_s4 }
 0x15f   : > { %p8688_p13 = scmp.ne.s32.totalorder %s8687_s23, 0 }
 0x160   : > { %s7774_s12 = scalar_lea.hbm %s8689_s29, %s5870_s3 }
 0x161   : > { %6306 = dma.hbm_to_vmem [thread:$0]  (!%p8688_p13), %s8685_s1, 32, %s511_s22, [#allocation7], %s7246_s16, %s7246_s16, %s7247_s2  }
 0x162   : > { %s7013_s13 = scalar_lea.hbm %s7774_s12, 16384  ;;  %s7018_s16 = scalar_lea.hbm %s8689_s29, 32768 }
 0x163   : > { %p7014_p11 = scmp.ne.s32.totalorder %s7774_s12, %s7013_s13  ;;  %p7019_p1 = scmp.lt.u32.totalorder %s7774_s12, %s8689_s29 }
 0x164   : > { %p7020_p10 = scmp.lt.u32.totalorder %s7018_s16, %s7013_s13  ;;  %p7022_p7 = scmp.lt.u32.totalorder %s7013_s13, %s7774_s12 }
 0x165   : > { %p7016_p12 = pnand %p7014_p11, %p7476_p5 }
 0x166   : > { %p7021_p3 = por %p7020_p10, %p7019_p1 }
 0x167   : > { %p7017_p2 = pneg %p7016_p12 }
 0x168   : > { %p7023_p0 = por %p7022_p7, %p7021_p3 }
 0x16a   : > { %p7024_p6 = pnand %p7023_p0, %p7017_p2 }
 0x16c   : > { %7027 = shalt.err (!%p7024_p6)
}
 0x16d   : > { %s7028_s0 = scalar_lea.vmem %s7778_s15, 16384  ;;  %s7249_s14 = smov [#allocation18]  }
 0x16e   : > { %p7029_p4 = scmp.ne.s32.totalorder %s7778_s15, %s7028_s0  ;;  %s7033_s30 = sshll.u32 %s7249_s14, 4  ;;  %s7034_s30 = int_to_ptr.vmem [resolvable:$false] %s7033_s30 }
 0x16f   : > { %s7035_s26 = scalar_lea.vmem %s7034_s30, 32768  ;;  %p7036_p12 = scmp.lt.s32.totalorder %s7778_s15, %s7034_s30 }
 0x170   : > { %p7031_p8 = pnand %p7029_p4, %p7476_p5  ;;  %p7037_p13 = scmp.lt.s32.totalorder %s7035_s26, %s7028_s0 }
 0x172   : > { %p7032_p11 = pneg %p7031_p8  ;;  %p7038_p1 = por %p7037_p13, %p7036_p12 }
 0x174   : > { %p7039_p10 = pnand %p7038_p1, %p7032_p11 }
 0x176   : > { %7042 = shalt.err (!%p7039_p10)
}
 0x177   : > { %p8690_p2 = scmp.ne.s32.totalorder %s8672_s27, 0  ;;  %s8691_s17 = smov 4  }
 0x178   : > { %s8692_s13 = smov 64   ;;  %s8693_s16 = sld [smem:[#allocation49_spill]] }
 0x179   : > { %6346 = dma.hbm_to_vmem [thread:$0]  (!%p8690_p2), %s7774_s12, 16384, %s7778_s15, %s7470_s24, %s8692_s13, %s8692_s13, %s8691_s17  }
 0x17e   : > { %s7043_s2 = scalar_lea.hbm %s8693_s16, 16 }
 0x17f   : > { %p7044_p13 = scmp.ne.s32.totalorder %s8693_s16, %s7043_s2  ;;  %p7050_p0 = scmp.lt.u32.totalorder %s7043_s2, %s8693_s16 }
 0x181   : > { %p7046_p3 = pnand %p7044_p13, %p8686_p9 }
 0x183   : > { %p7047_p7 = pneg %p7046_p3 }
 0x185   : > { %p7052_p6 = pnand %p7050_p0, %p7047_p7 }
 0x187   : > { %7055 = shalt.err (!%p7052_p6)
}
 0x188   : > { %s7056_s26 = scalar_lea.vmem %s525_s4, 16  ;;  %s7063_s12 = scalar_lea.vmem %s525_s4, 32 }
 0x189   : > { %p7057_p4 = scmp.ne.s32.totalorder %s525_s4, %s7056_s26  ;;  %p7064_p12 = scmp.lt.s32.totalorder %s525_s4, %s525_s4 }
 0x18a   : > { %p7065_p1 = scmp.lt.s32.totalorder %s7063_s12, %s7056_s26 }
 0x18b   : > { %p7059_p8 = pnand %p7057_p4, %p8686_p9 }
 0x18c   : > { %p7066_p10 = por %p7065_p1, %p7064_p12 }
 0x18d   : > { %p7060_p11 = pneg %p7059_p8 }
 0x18f   : > { %p7067_p2 = pnand %p7066_p10, %p7060_p11 }
 0x191   : > { %7070 = shalt.err (!%p7067_p2)
}
 0x192   : > { %p8694_p13 = scmp.ne.s32.totalorder %s8687_s23, 0  ;;  %s7250_s13 = smov [#allocation21]  }
 0x193   : > { %s535_s22 = sshll.u32 %s7250_s13, 4  ;;  %s8695_s21 = sld [smem:[#allocation48_spill]]  ;;  %s536_s22 = int_to_ptr.vmem [resolvable:$true] %s535_s22 }
 0x194   : > { %6309 = dma.hbm_to_vmem [thread:$0]  (!%p8694_p13), %s8693_s16, 16, %s525_s4, [#allocation7]  }
 0x195   : > { %s8697_s12 = sld [smem:[#allocation50_spill]] }
 0x199   : > { %s8696_s0 = smov %s8695_s21  ;;  %s7830_s14 = scalar_lea.hbm %s8695_s21, %s7453_s18 }
 0x19b   : > { %s7071_s1 = scalar_lea.hbm %s8697_s12, 16 }
 0x19c   : > { %p7072_p2 = scmp.ne.s32.totalorder %s8697_s12, %s7071_s1  ;;  %p7078_p0 = scmp.lt.u32.totalorder %s7071_s1, %s8697_s12 }
 0x19e   : > { %p7074_p3 = pnand %p7072_p2, %p8686_p9 }
 0x1a0   : > { %p7075_p7 = pneg %p7074_p3 }
 0x1a2   : > { %p7080_p6 = pnand %p7078_p0, %p7075_p7 }
 0x1a4   : > { %7083 = shalt.err (!%p7080_p6)
}
 0x1a5   : > { %s7084_s17 = scalar_lea.vmem %s536_s22, 16  ;;  %s7091_s18 = scalar_lea.vmem %s536_s22, 32 }
 0x1a6   : > { %p7085_p4 = scmp.ne.s32.totalorder %s536_s22, %s7084_s17  ;;  %p7092_p12 = scmp.lt.s32.totalorder %s536_s22, %s536_s22 }
 0x1a7   : > { %p7093_p1 = scmp.lt.s32.totalorder %s7091_s18, %s7084_s17 }
 0x1a8   : > { %p7087_p8 = pnand %p7085_p4, %p8686_p9 }
 0x1a9   : > { %p7094_p10 = por %p7093_p1, %p7092_p12 }
 0x1aa   : > { %p7088_p11 = pneg %p7087_p8 }
 0x1ac   : > { %p7095_p5 = pnand %p7094_p10, %p7088_p11 }
 0x1ae   : > { %7098 = shalt.err (!%p7095_p5)
}
 0x1af   : > { %6312 = dma.hbm_to_vmem [thread:$0]  (!%p8694_p13), %s8697_s12, 16, %s536_s22, [#allocation22]  }
 0x1b0   : > { %s756_s1 = scalar_lea.vmem [#allocation19], %s7417_s28  ;;  %s7099_s13 = scalar_lea.hbm %s7830_s14, 16 }
 0x1b1   : > { %s763_s20 = sshll.u32 %s756_s1, 4  ;;  %p7100_p9 = scmp.ne.s32.totalorder %s7830_s14, %s7099_s13  ;;  %s764_s20 = int_to_ptr.vmem [resolvable:$true] %s763_s20 }
 0x1b2   : > { %p8698_p2 = scmp.ne.s32.totalorder %s8675_s19, 0  ;;  %s7104_s2 = scalar_lea.hbm %s8696_s0, 32 }
 0x1b3   : > { %p7105_p7 = scmp.lt.u32.totalorder %s7830_s14, %s8696_s0  ;;  %p7106_p0 = scmp.lt.u32.totalorder %s7104_s2, %s7099_s13 }
 0x1b4   : > { %p7102_p3 = pnand %p7100_p9, %p8698_p2  ;;  %p7108_p4 = scmp.lt.u32.totalorder %s7099_s13, %s7830_s14 }
 0x1b5   : > { %p7107_p6 = por %p7106_p0, %p7105_p7 }
 0x1b6   : > { %p7103_p5 = pneg %p7102_p3 }
 0x1b7   : > { %p7109_p13 = por %p7108_p4, %p7107_p6 }
 0x1b9   : > { %p7110_p8 = pnand %p7109_p13, %p7103_p5 }
 0x1bb   : > { %7113 = shalt.err (!%p7110_p8)
}
 0x1bc   : > { %s7114_s28 = scalar_lea.vmem %s764_s20, 16  ;;  %s7251_s22 = smov [#allocation19]  }
 0x1bd   : > { %p7115_p11 = scmp.ne.s32.totalorder %s764_s20, %s7114_s28  ;;  %s7119_s26 = sshll.u32 %s7251_s22, 4  ;;  %s7120_s26 = int_to_ptr.vmem [resolvable:$false] %s7119_s26 }
 0x1be   : > { %s7121_s4 = scalar_lea.vmem %s7120_s26, 32  ;;  %p7122_p10 = scmp.lt.s32.totalorder %s764_s20, %s7120_s26 }
 0x1bf   : > { %p7117_p12 = pnand %p7115_p11, %p8698_p2  ;;  %p7123_p9 = scmp.lt.s32.totalorder %s7121_s4, %s7114_s28 }
 0x1c1   : > { %p7118_p1 = pneg %p7117_p12  ;;  %p7124_p3 = por %p7123_p9, %p7122_p10 }
 0x1c3   : > { %p7125_p0 = pnand %p7124_p3, %p7118_p1 }
 0x1c5   : > { %7128 = shalt.err (!%p7125_p0)
}
 0x1c6   : > { %p8699_p7 = scmp.ne.s32.totalorder %s8672_s27, 0  ;;  %s8700_s15 = sld [smem:[#allocation38_spill]] }
 0x1c8   : > { %6349 = dma.hbm_to_vmem [thread:$0]  (!%p8699_p7), %s7830_s14, 16, %s764_s20, %s7470_s24  }
 0x1cc   : > { %p8701_p5 = scmp.ne.s32.totalorder %s8700_s15, 0 }
 0x1cd   : > { %s8702_s19 = sld [smem:[#allocation34_spill]] (!%p8701_p5) }
 0x1ce   : > { %772 = sbr.rel (%p8701_p5) target bundleno = 5306 (0x14ba), region = 84 }
 0x1d3   : > { %p8703_p2 = scmp.eq.s32.totalorder (!%p8701_p5), %s8702_s19, 0 }
 0x1d5   : > { %7180 = dma.done.wait (%p8703_p2), [#allocation4], 256   ;;  %p8704_p6 = pmov %p8703_p2 }
 0x1d6   : > { %p8705_p4 = pmov %p8703_p2 }
 0x1d7   : > { %7182 = vsyncadd (%p8704_p6), [#allocation4], 4294967040 }
 0x1d8   : > { %7184 = dma.done.wait (%p8705_p4), [#allocation7], 32   ;;  %p8706_p13 = pmov %p8703_p2 }
 0x1d9   : > { %s8707_s27 = sld [smem:[#allocation30_spill]]  ;;  %s8708_s17 = sld [smem:[#allocation36_spill]] }
 0x1da   : > { %7186 = vsyncadd (%p8706_p13), [#allocation7], 4294967264  ;;  %s782_s18 = sand.u32 1, %s8702_s19  }
 0x1db   : > { %s783_s14 = scalar_lea.sflag [#allocation4], %s782_s18 }
 0x1df   : > { %s7881_s24 = sand.u32 1, %s8707_s27   ;;  %p8709_p8 = scmp.ne.s32.totalorder %s8708_s17, 0 }
 0x1e0   : > { %s785_s5 = scalar_lea.vmem [#allocation8], %s7881_s24 }
 0x1e1   : > { %7188 = dma.done.wait (%p8709_p8), %s783_s14, 37264  }
 0x1e2   : > { %7190 = vsyncadd (%p8709_p8), %s783_s14, 4294930032  ;;  %s6254_s6 = smul.u32 192, %s7881_s24  ;;  %s5539_s20 = sshll.u32 %s7881_s24, 6 }
 0x1e3   : > { %s6255_s1 = smul.u32 3, %s7881_s24  ;;  %s5540_s13 = sshll.u32 %s7881_s24, 10 }
 0x1e4   : > { %s5541_s3 = sshll.u32 %s7881_s24, 4  ;;  %s793_s23 = scalar_lea.vmem [#allocation9], %s7881_s24 }
 0x1e5   : > { %s801_s2 = scalar_lea.vmem [#allocation10], %s7881_s24  ;;  %s809_s21 = scalar_lea.vmem [#allocation11], %s7881_s24 }
 0x1e6   : > { %s7896_s30 = scalar_lea.vmem [#allocation12], %s6254_s6  ;;  %s7898_s28 = scalar_lea.vmem [#allocation13], %s6255_s1 }
 0x1e7   : > { %s7900_s22 = scalar_lea.vmem [#allocation14], %s5539_s20  ;;  %s844_s26 = scalar_lea.vmem [#allocation15], %s7881_s24 }
 0x1e8   : > { %s7903_s4 = scalar_lea.vmem [#allocation16], %s5540_s13  ;;  %s7905_s15 = scalar_lea.vmem [#allocation17], %s5541_s3 }
 0x1e9   : > { %s7907_s27 = scalar_lea.vmem [#allocation18], %s5540_s13  ;;  %s879_s17 = scalar_lea.vmem [#allocation19], %s7881_s24 }
 0x1ea   : > { %p8710_p11 = pmov %p8703_p2 }
 0x1eb   : > { %p8711_p12 = pmov %p8703_p2 }
 0x1ec   : > { %7192 = dma.done.wait (%p8710_p11), [#allocation7], 16  }
 0x1ed   : > { %7194 = vsyncadd (%p8711_p12), [#allocation7], 4294967280  ;;  %p8712_p1 = pmov %p8703_p2 }
 0x1ef   : > { %7196 = dma.done.wait (%p8712_p1), [#allocation22], 16   ;;  %p8713_p10 = pmov %p8712_p1 }
 0x1f0   : > { %s8714_s18 = sld [smem:[#allocation32_spill]] }
 0x1f1   : > { %7198 = vsyncadd (%p8713_p10), [#allocation22], 4294967280 }
 0x1f6   : > { %p5545_p9 = scmp.ne.s32.totalorder %s8714_s18, 0 }
 0x1f7   : > { %v988_v0 = vld [vmem:[#allocation3] sm:$0xff] (!%p5545_p9)  ;;  %v989_v1 = vld [vmem:[#allocation3 + $0x8] sm:$0xff] (!%p5545_p9) }
 0x1f8   : > { %987 = sbr.rel (%p5545_p9) target bundleno = 511 (0x1ff), region = 152  ;;  %990 = vst [vmem:[#allocation2] sm:$0xff] (!%p5545_p9), %v988_v0  ;;  %991 = vst [vmem:[#allocation2 + $0x8] sm:$0xff] (!%p5545_p9), %v989_v1 }
 0x1ff PF: > { %v992_v2 = vld [vmem:[#allocation2] sm:$0xff]  ;;  %v993_v3 = vld [vmem:[#allocation2 + $0x8] sm:$0xff]  ;;  %v7252_v15 = vmov 0.0   ;;  %v7253_v29 = vmov 0   ;;  %vm7254_vm0 = vmmov 0   ;;  %v1087_v1 = vlaneseq  ;;  %s7255_s19 = smov 96  }
 0x200   : > { %998 = vadd.xlane.f32.xlu0 %v992_v2  ;;  %v6431_v12 = vld [vmem:[%s7896_s30 + $0x4] ss:$12 sps:$4 sm:$0xff]   ;;  %v6433_v13 = vld [vmem:[%s7896_s30] ss:$12 sps:$4 sm:$0xff]   ;;  %v6434_v14 = vld [vmem:[%s7896_s30 + $0x8] ss:$12 sps:$4 sm:$0xff]   ;;  %6102 = vmatprep.subr.bf16.mxu1 %v7252_v15 }
 0x201   : > { %1230 = vmatprep.subr.bf16.mxu0 %v6431_v12  ;;  %6103 = vmatpush3.bf16.msra.mxu1 %v6434_v14  ;;  %v6435_v16 = vld [vmem:[%s7896_s30 + $0x1c] ss:$12 sps:$4 sm:$0xff]   ;;  %v6437_v17 = vld [vmem:[%s7896_s30 + $0x18] ss:$12 sps:$4 sm:$0xff]   ;;  %v6438_v18 = vld [vmem:[%s7896_s30 + $0x20] ss:$12 sps:$4 sm:$0xff]  }
 0x202   : > { %1231 = vmatpush1.bf16.msra.mxu0 %v6433_v13  ;;  %6104 = vmatprep.subr.bf16.mxu1 %v7252_v15  ;;  %v6439_v19 = vld [vmem:[%s7896_s30 + $0x34] ss:$12 sps:$4 sm:$0xff]   ;;  %v6441_v20 = vld [vmem:[%s7896_s30 + $0x30] ss:$12 sps:$4 sm:$0xff]   ;;  %v6442_v21 = vld [vmem:[%s7896_s30 + $0x38] ss:$12 sps:$4 sm:$0xff]  }
 0x203   : > { %1232 = vmatprep.subr.bf16.mxu0 %v6435_v16  ;;  %v6443_v22 = vld [vmem:[%s7896_s30 + $0x4c] ss:$12 sps:$4 sm:$0xff]   ;;  %v6445_v23 = vld [vmem:[%s7896_s30 + $0x48] ss:$12 sps:$4 sm:$0xff]   ;;  %v6446_v24 = vld [vmem:[%s7896_s30 + $0x50] ss:$12 sps:$4 sm:$0xff]   ;;  %1262 = vmatprep.mubr.bf16.mxu0 %v7253_v29 }
 0x204   : > { %1000 = vadd.xlane.f32.xlu0 %v993_v3  ;;  %v6447_v25 = vld [vmem:[%s7896_s30 + $0x64] ss:$12 sps:$4 sm:$0xff]   ;;  %v6449_v26 = vld [vmem:[%s7896_s30 + $0x60] ss:$12 sps:$4 sm:$0xff]   ;;  %v6450_v27 = vld [vmem:[%s7896_s30 + $0x68] ss:$12 sps:$4 sm:$0xff]   ;;  %6118 = vmatprep.mubr.msk.bf16.mxu1 %vm7254_vm0, %v7252_v15 }
 0x205   : > { %6105 = vmatpush3.bf16.msra.mxu1 %v6438_v18  ;;  %v6451_v28 = vld [vmem:[%s7896_s30 + $0x7c] ss:$12 sps:$4 sm:$0xff]   ;;  %v6453_v30 = vld [vmem:[%s7896_s30 + $0x78] ss:$12 sps:$4 sm:$0xff]   ;;  %v6454_v31 = vld [vmem:[%s7896_s30 + $0x80] ss:$12 sps:$4 sm:$0xff]  }
 0x206   : > { %1233 = vmatpush1.bf16.msra.mxu0 %v6437_v17  ;;  %6106 = vmatprep.subr.bf16.mxu1 %v7252_v15  ;;  %v6455_v32 = vld [vmem:[%s7896_s30 + $0x94] ss:$12 sps:$4 sm:$0xff]   ;;  %v6457_v33 = vld [vmem:[%s7896_s30 + $0x90] ss:$12 sps:$4 sm:$0xff]   ;;  %v6458_v34 = vld [vmem:[%s7896_s30 + $0x98] ss:$12 sps:$4 sm:$0xff]  }
 0x207   : > { %1234 = vmatprep.subr.bf16.mxu0 %v6439_v19  ;;  %v6459_v35 = vld [vmem:[%s7896_s30 + $0xac] ss:$12 sps:$4 sm:$0xff]   ;;  %v6461_v36 = vld [vmem:[%s7896_s30 + $0xa8] ss:$12 sps:$4 sm:$0xff]   ;;  %v6462_v37 = vld [vmem:[%s7896_s30 + $0xb0] ss:$12 sps:$4 sm:$0xff]  }
 0x208   : > { %v5546_v54 = vld [vmem:[%s785_s5] ss:$0 sm:$0xff]  ;;  %vm1350_vm5 = vcmask 261120   ;;  %vm1471_vm6 = vcmask 1043456   ;;  %vm1443_vm7 = vcmask 64512   ;;  %s7256_s14 = smov 64  }
 0x209   : > { %6107 = vmatpush3.bf16.msra.mxu1 %v6442_v21  ;;  %v5547_v60 = vld [vmem:[%s793_s23] ss:$0 sm:$0xff]  ;;  %s7257_s5 = smov 32   ;;  %s8715_s24 = sld [smem:[#allocation32_spill]] }
 0x20a   : > { %1235 = vmatpush1.bf16.msra.mxu0 %v6441_v20  ;;  %6108 = vmatprep.subr.bf16.mxu1 %v7252_v15 }
 0x20b   : > { %1236 = vmatprep.subr.bf16.mxu0 %v6443_v22 }
 0x20d   : > { %6109 = vmatpush3.bf16.msra.mxu1 %v6446_v24 }
 0x20e   : > { %1237 = vmatpush1.bf16.msra.mxu0 %v6445_v23  ;;  %6110 = vmatprep.subr.bf16.mxu1 %v7252_v15 }
 0x20f   : > { %1238 = vmatprep.subr.bf16.mxu0 %v6447_v25  ;;  %p5862_p3 = scmp.ne.s32.totalorder %s8715_s24, 1 }
 0x211   : > { %6111 = vmatpush3.bf16.msra.mxu1 %v6450_v27 }
 0x212   : > { %1239 = vmatpush1.bf16.msra.mxu0 %v6449_v26  ;;  %6112 = vmatprep.subr.bf16.mxu1 %v7252_v15 }
 0x213   : > { %1240 = vmatprep.subr.bf16.mxu0 %v6451_v28 }
 0x215   : > { %6113 = vmatpush3.bf16.msra.mxu1 %v6454_v31 }
 0x216   : > { %1241 = vmatpush1.bf16.msra.mxu0 %v6453_v30  ;;  %6114 = vmatprep.subr.bf16.mxu1 %v7252_v15 }
 0x217   : > { %1242 = vmatprep.subr.bf16.mxu0 %v6455_v32 }
 0x219   : > { %6115 = vmatpush3.bf16.msra.mxu1 %v6458_v34 }
 0x21a   : > { %1243 = vmatpush1.bf16.msra.mxu0 %v6457_v33  ;;  %6116 = vmatprep.subr.bf16.mxu1 %v7252_v15 }
 0x21b   : > { %1244 = vmatprep.subr.bf16.mxu0 %v6459_v35 }
 0x21d   : > { %6117 = vmatpush3.bf16.msra.mxu1 %v6462_v37 }
 0x21e   : > { %1245 = vmatpush1.bf16.msra.mxu0 %v6461_v36  ;;  %6128 = vmatprep.subr.bf16.mxu1 %v7252_v15 }
 0x21f   : > { %6122 = vmatprep.subr.bf16.mxu0 %v7252_v15 }
 0x28d   : > { %v999_v4 = vpop.xlane.xlu0 %998 }
 0x28e   : > { %v1003_v5 = vmul.f32 0.0078125, %v999_v4  ;;  %v1085_v4 = vld [vmem:[%s7898_s28] sm:$0x7] }
 0x290   : > { %v7919_v6 = vsub.f32 %v992_v2, %v1003_v5  ;;  %v7974_v2 = vshrl.u32 %v1087_v1, 7 }
 0x291   : > { %v1001_v7 = vpop.xlane.xlu0 %1000 }
 0x292   : > { %v1004_v8 = vmul.f32 0.0078125, %v1001_v7  ;;  %v1007_v9 = vmul.f32 %v7919_v6, %v7919_v6  ;;  %v1022_v56 = vmul.f32 %v5546_v54, %v7919_v6  ;;  %v7981_v5 = vsub.s32 0, %v7974_v2 }
 0x293   : > { %v7984_v6 = vsub.s32 2, %v7974_v2 }
 0x294   : > { %v7923_v10 = vsub.f32 %v993_v3, %v1004_v8  ;;  %1009 = vadd.xlane.f32.xlu1 %v1007_v9  ;;  %v7977_v3 = vsub.s32 1, %v7974_v2  ;;  %v1090_v8 = vrot.slane %v1085_v4, %v7981_v5 }
 0x295   : > { %v1098_v13 = vrot.slane %v1085_v4, %v7984_v6 }
 0x296   : > { %v1008_v11 = vmul.f32 %v7923_v10, %v7923_v10  ;;  %v1023_v57 = vmul.f32 %v5546_v54, %v7923_v10  ;;  %v1094_v7 = vrot.slane %v1085_v4, %v7977_v3 }
 0x298   : > { %1011 = vadd.xlane.f32.xlu1 %v1008_v11 }
 0x321   : > { %v1010_v38 = vpop.xlane.xlu1 %1009 }
 0x322   : > { %v1014_v39 = vmul.f32 0.007874016, %v1010_v38  ;;  %v8021_v38 = vld [vmem:[#allocation6] ss:$0 sm:$0xff] }
 0x324   : > { %6599 = vrsqrt.f32 %v1014_v39  ;;  %vm1026_vm1 = vcmp.eq.f32.partialorder %v1014_v39, inf  ;;  %v1029_v44 = vand.u32 2147483648, %v1014_v39  ;;  %vm1028_vm2 = vcmp.eq.f32.partialorder %v1014_v39, 0.0 }
 0x325   : > { %v1012_v40 = vpop.xlane.xlu1 %1011 }
 0x326   : > { %v1015_v41 = vmul.f32 0.007874016, %v1012_v40  ;;  %v8023_v40 = vld [vmem:[#allocation6 + $0x1] ss:$0 sm:$0xff] }
 0x328   : > { %6601 = vrsqrt.f32 %v1015_v41  ;;  %vm1033_vm3 = vcmp.eq.f32.partialorder %v1015_v41, inf  ;;  %v1036_v50 = vand.u32 2147483648, %v1015_v41  ;;  %vm1035_vm4 = vcmp.eq.f32.partialorder %v1015_v41, 0.0 }
 0x32e   : > { %v6600_v42 = vpop.eup %6599 }
 0x32f   : > { %v1025_v43 = vmul.f32 %v6600_v42, %v1014_v39 }
 0x331   : > { %v1027_v45 = vsel %vm1026_vm1, %v1014_v39, %v1025_v43 }
 0x332   : > { %v6602_v46 = vpop.eup %6601  ;;  %v1030_v47 = vsel %vm1028_vm2, %v1029_v44, %v1027_v45 }
 0x333   : > { %v1032_v48 = vmul.f32 %v6602_v46, %v1015_v41  ;;  %v1038_v49 = vadd.f32 1e-06, %v1030_v47 }
 0x335   : > { %v1034_v51 = vsel %vm1033_vm3, %v1015_v41, %v1032_v48  ;;  %6603 = vrcp.f32 %v1038_v49 }
 0x336   : > { %v1037_v52 = vsel %vm1035_vm4, %v1036_v50, %v1034_v51 }
 0x337   : > { %v1039_v53 = vadd.f32 1e-06, %v1037_v52 }
 0x339   : > { %6605 = vrcp.f32 %v1039_v53 }
 0x33f   : > { %v6604_v55 = vpop.eup %6603 }
 0x340   : > { %v1041_v58 = vmul.f32 %v6604_v55, %v1022_v56 }
 0x342   : > { %v1050_v62 = vadd.f32 %v5547_v60, %v1041_v58 }
 0x343   : > { %v6606_v59 = vpop.eup %6605 }
 0x344   : > { %v1043_v61 = vmul.f32 %v6606_v59, %v1023_v57 }
 0x346   : > { %v1051_v63 = vadd.f32 %v5547_v60, %v1043_v61 }
 0x348   : > { %v1052_v0 = vpack.c.bf16 %v1051_v63, %v1050_v62 }
 0x34a   : > { %1263 = vmatmul.mubr.bf16.vlgmr.msra.gmra.mrb[0].mxu0 %v1052_v0  ;;  %6119 = vmatmul.mubr.bf16.vlgmr.msra.gmra.mrb[0].mxu1 %v1052_v0 }
 0x34b   : > { %6124 = vmatprep.mubr.msk.bf16.mxu0 %vm7254_vm0, %v7252_v15  ;;  %6130 = vmatprep.mubr.msk.bf16.mxu1 %vm7254_vm0, %v7252_v15 }
 0x41d   : > { %v1264_v9 = vpop.f32.mrb[0].mxu0  ;;  %v1307_v10 = vpop.f32.mrb[0].mxu1 }
 0x41e   : > { %v1266_v11 = vpop.f32.mrb[1].mxu0  ;;  %v6120_v12 = vpop.f32.mrb[1].mxu1  ;;  %v1265_v20 = vadd.f32 %v1264_v9, %v1090_v8  ;;  %v1308_v23 = vadd.f32 %v1307_v10, %v1098_v13 }
 0x41f   : > { %v1267_v14 = vadd.f32 %v1266_v11, %v1094_v7  ;;  %v1268_v16 = vpop.f32.mrb[2].mxu0  ;;  %v1310_v17 = vpop.f32.mrb[2].mxu1 }
 0x420   : > { %v1270_v18 = vpop.f32.mrb[3].mxu0  ;;  %v6121_v19 = vpop.f32.mrb[3].mxu1  ;;  %v1269_v24 = vadd.f32 %v1268_v16, %v1090_v8  ;;  %v1314_v27 = vmul.f32 0.17677669, %v1265_v20  ;;  %v1311_v28 = vadd.f32 %v1310_v17, %v1098_v13  ;;  %v7998_v31 = vpack.c.bf16 %v1308_v23, %v1308_v23 }
 0x421   : > { %v7989_v21 = vpack.c.bf16 %v1267_v14, %v1267_v14  ;;  %v1271_v22 = vadd.f32 %v1270_v18, %v1094_v7 }
 0x422   : > { %v1315_v32 = vmul.f32 0.17677669, %v1269_v24  ;;  %v8001_v33 = vpack.c.bf16 %v1314_v27, %v1314_v27  ;;  %v8003_v34 = vpack.c.bf16 %v1311_v28, %v1311_v28  ;;  %v1473_v36 = vsel %vm1471_vm6, %v7998_v31, 0 }
 0x423   : > { %v7991_v25 = vpack.c.bf16 %v1271_v22, %v1271_v22  ;;  %v1355_v26 = vsel %vm1350_vm5, %v7989_v21, 0 }
 0x424   : > { %6123 = vmatpush3.bf16.xpose.msra.mxu0 %v1355_v26  ;;  %v8005_v35 = vpack.c.bf16 %v1315_v32, %v1315_v32  ;;  %v1519_v37 = vsel %vm1471_vm6, %v8003_v34, 0 }
 0x425   : > { %v1401_v30 = vsel %vm1350_vm5, %v7991_v25, 0  ;;  %6134 = vmatprep.subr.bf16.mxu0 %v7252_v15 }
 0x426   : > { %6129 = vmatpush3.bf16.xpose.msra.mxu1 %v1401_v30 }
 0x427   : > { %6140 = vmatprep.subr.bf16.mxu1 %v7252_v15 }
 0x42b   : > { %6125 = vmatmul.mubr.msk.bf16.vlgmr.msra.gmra.mrb[4].mxu0 %vm1350_vm5, %v8001_v33 }
 0x42c   : > { %6135 = vmatpush3.bf16.msra.mxu0 %v1473_v36  ;;  %6136 = vmatprep.mubr.msk.bf16.mxu0 %vm7254_vm0, %v7252_v15 }
 0x42d   : > { %6131 = vmatmul.mubr.msk.bf16.vlgmr.msra.gmra.mrb[4].mxu1 %vm1350_vm5, %v8005_v35  ;;  %6146 = vmatprep.subr.bf16.mxu0 %v7252_v15 }
 0x42e   : > { %6141 = vmatpush3.bf16.msra.mxu1 %v1519_v37  ;;  %6142 = vmatprep.mubr.msk.bf16.mxu1 %vm7254_vm0, %v7252_v15 }
 0x42f   : > { %6152 = vmatprep.subr.bf16.mxu1 %v7252_v15 }
 0x4fe   : > { %v1391_v39 = vpop.f32.mrb[4].mxu0 }
 0x4ff   : > { %v1392_v41 = vadd.f32 %v8021_v38, %v1391_v39  ;;  %v6126_v42 = vpop.f32.mrb[5].mxu0 }
 0x500   : > { %v1394_v43 = vpop.f32.mrb[6].mxu0  ;;  %v1437_v44 = vpop.f32.mrb[4].mxu1 }
 0x501   : > { %v1438_v45 = vadd.f32 %v8023_v40, %v1437_v44  ;;  %v6127_v46 = vpop.f32.mrb[7].mxu0  ;;  %v6132_v47 = vpop.f32.mrb[5].mxu1  ;;  %v1444_v48 = vsel %vm1443_vm7, %v1392_v41, -inf }
 0x502   : > { %v1440_v49 = vpop.f32.mrb[6].mxu1  ;;  %1445 = vmax.xlane.f32.xlu0 %v1444_v48 }
 0x503   : > { %v6133_v50 = vpop.f32.mrb[7].mxu1  ;;  %v1447_v51 = vsel %vm1443_vm7, %v1438_v45, -inf }
 0x504   : > { %1448 = vmax.xlane.f32.xlu1 %v1447_v51 }
 0x515   : > { %1618 = vrot.lane.b32.xlu1 %v7991_v25, %s7255_s19 }
 0x58f   : > { %v1446_v52 = vpop.xlane.xlu0 %1445 }
 0x590   : > { %v1450_v53 = vsub.f32 %v1392_v41, %v1446_v52 }
 0x591   : > { %v1449_v54 = vpop.xlane.xlu1 %1448 }
 0x592   : > { %v1452_v55 = vmul.f32 1.442695, %v1450_v53  ;;  %v1451_v56 = vsub.f32 %v1438_v45, %v1449_v54 }
 0x594   : > { %6607 = vpow2.f32 %v1452_v55  ;;  %v1454_v57 = vmul.f32 1.442695, %v1451_v56 }
 0x595   : > { %v1619_v62 = vpop.permute.xlu1 %1618 }
 0x596   : > { %6609 = vpow2.f32 %v1454_v57  ;;  %v1624_v13 = vsel %vm1350_vm5, %v1619_v62, 0 }
 0x59e   : > { %v6608_v58 = vpop.eup %6607 }
 0x59f   : > { %v1456_v59 = vsel %vm1443_vm7, %v6608_v58, 0.0 }
 0x5a0   : > { %v6610_v60 = vpop.eup %6609  ;;  %1457 = vadd.xlane.f32.xlu0 %v1456_v59 }
 0x5a1   : > { %v1459_v61 = vsel %vm1443_vm7, %v6610_v60, 0.0 }
 0x5a2   : > { %1460 = vadd.xlane.f32.xlu1 %v1459_v61 }
 0x5b3   : > { %1563 = vrot.lane.b32.xlu1 %v8001_v33, %s7255_s19 }
 0x5b6   : > { %1566 = vrot.lane.b32.xlu0 %v7989_v21, %s7255_s19 }
 0x5b7   : > { %1615 = vrot.lane.b32.xlu1 %v8005_v35, %s7255_s19 }
 0x62d   : > { %v1458_v63 = vpop.xlane.xlu0 %1457 }
 0x62e   : > { %6611 = vrcp.f32 %v1458_v63 }
 0x62f   : > { %v1461_v0 = vpop.xlane.xlu1 %1460 }
 0x630   : > { %6613 = vrcp.f32 %v1461_v0 }
 0x631   : > { %v1567_v8 = vpop.permute.xlu0 %1566 }
 0x632   : > { %v1572_v11 = vsel %vm1350_vm5, %v1567_v8, 0 }
 0x633   : > { %v1564_v14 = vpop.permute.xlu1 %1563 }
 0x637   : > { %v1616_v16 = vpop.permute.xlu1 %1615 }
 0x638   : > { %v6612_v1 = vpop.eup %6611 }
 0x639   : > { %v1463_v4 = vmul.f32 %v6612_v1, %v6608_v58  ;;  %v6465_v1 = vld [vmem:[%s7900_s22 + $0x10] sm:$0xff]  }
 0x63a   : > { %v6614_v7 = vpop.eup %6613 }
 0x63b   : > { %v1465_v9 = vmul.f32 %v6614_v7, %v6610_v60  ;;  %v1466_v10 = vpack.c.bf16 %v1463_v4, %v1463_v4 }
 0x63d   : > { %6137 = vmatmul.mubr.msk.bf16.vlgmr.msra.gmra.mrb[8].mxu0 %vm1443_vm7, %v1466_v10  ;;  %v1467_v12 = vpack.c.bf16 %v1465_v9, %v1465_v9  ;;  %v6463_v9 = vld [vmem:[%s7900_s22] sm:$0xff]  }
 0x63e   : > { %6147 = vmatpush3.bf16.xpose.msra.mxu0 %v1572_v11  ;;  %6148 = vmatprep.mubr.msk.bf16.mxu0 %vm7254_vm0, %v7252_v15  ;;  %v6466_v11 = vld [vmem:[%s7900_s22 + $0x18] sm:$0xff]  }
 0x63f   : > { %6143 = vmatmul.mubr.msk.bf16.vlgmr.msra.gmra.mrb[8].mxu1 %vm1443_vm7, %v1467_v12  ;;  %6158 = vmatprep.subr.bf16.mxu0 %v7252_v15  ;;  %v6464_v12 = vld [vmem:[%s7900_s22 + $0x8] sm:$0xff]  }
 0x640   : > { %6153 = vmatpush3.bf16.xpose.msra.mxu1 %v1624_v13  ;;  %6154 = vmatprep.mubr.msk.bf16.mxu1 %vm7254_vm0, %v7252_v15 }
 0x641   : > { %6164 = vmatprep.subr.bf16.mxu1 %v7252_v15 }
 0x645   : > { %6149 = vmatmul.mubr.msk.bf16.vlgmr.msra.gmra.mrb[12].mxu0 %vm1350_vm5, %v1564_v14 }
 0x646   : > { %6160 = vmatprep.mubr.msk.bf16.mxu0 %vm7254_vm0, %v7252_v15 }
 0x647   : > { %6155 = vmatmul.mubr.msk.bf16.vlgmr.msra.gmra.mrb[12].mxu1 %vm1350_vm5, %v1616_v16 }
 0x648   : > { %6166 = vmatprep.mubr.msk.bf16.mxu1 %vm7254_vm0, %v7252_v15 }
 0x710   : > { %v8055_v17 = vpop.f32.mrb[8].mxu0 }
 0x711   : > { %v6138_v18 = vpop.f32.mrb[9].mxu0 }
 0x712   : > { %v1512_v19 = vpop.f32.mrb[10].mxu0  ;;  %v8057_v20 = vpop.f32.mrb[8].mxu1 }
 0x713   : > { %v1561_v22 = vpack.c.bf16 %v8057_v20, %v8055_v17  ;;  %v6139_v23 = vpop.f32.mrb[11].mxu0  ;;  %v6144_v24 = vpop.f32.mrb[9].mxu1 }
 0x714   : > { %v1558_v26 = vpop.f32.mrb[10].mxu1 }
 0x715   : > { %v6145_v27 = vpop.f32.mrb[11].mxu1 }
 0x718   : > { %v1608_v28 = vpop.f32.mrb[12].mxu0 }
 0x719   : > { %v1609_v30 = vadd.f32 %v8021_v38, %v1608_v28  ;;  %v6150_v32 = vpop.f32.mrb[13].mxu0 }
 0x71a   : > { %v1611_v36 = vpop.f32.mrb[14].mxu0  ;;  %v1660_v37 = vpop.f32.mrb[12].mxu1 }
 0x71b   : > { %v1661_v39 = vadd.f32 %v8023_v40, %v1660_v37  ;;  %v6151_v41 = vpop.f32.mrb[15].mxu0  ;;  %v6156_v42 = vpop.f32.mrb[13].mxu1  ;;  %v1666_v43 = vsel %vm1443_vm7, %v1609_v30, -inf }
 0x71c   : > { %v1663_v44 = vpop.f32.mrb[14].mxu1  ;;  %1667 = vmax.xlane.f32.xlu0 %v1666_v43 }
 0x71d   : > { %v6157_v45 = vpop.f32.mrb[15].mxu1  ;;  %v1669_v46 = vsel %vm1443_vm7, %v1661_v39, -inf }
 0x71e   : > { %1670 = vmax.xlane.f32.xlu1 %v1669_v46 }
 0x72f   : > { %1740 = vrot.lane.b32.xlu1 %v8003_v34, %s7255_s19 }
 0x733   : > { %1903 = vrot.lane.b32.xlu1 %v7989_v21, %s7256_s14 }
 0x737   : > { %1953 = vrot.lane.b32.xlu1 %v7991_v25, %s7256_s14 }
 0x73b   : > { %1951 = vrot.lane.b32.xlu1 %v8005_v35, %s7256_s14 }
 0x7a9   : > { %v1668_v47 = vpop.xlane.xlu0 %1667 }
 0x7aa   : > { %v1672_v48 = vsub.f32 %v1609_v30, %v1668_v47 }
 0x7ab   : > { %v1671_v49 = vpop.xlane.xlu1 %1670 }
 0x7ac   : > { %v1674_v50 = vmul.f32 1.442695, %v1672_v48  ;;  %v1673_v51 = vsub.f32 %v1661_v39, %v1671_v49 }
 0x7ae   : > { %6615 = vpow2.f32 %v1674_v50  ;;  %v1676_v52 = vmul.f32 1.442695, %v1673_v51 }
 0x7af   : > { %v1741_v53 = vpop.permute.xlu1 %1740 }
 0x7b0   : > { %6617 = vpow2.f32 %v1676_v52  ;;  %v1746_v54 = vsel %vm1471_vm6, %v1741_v53, 0 }
 0x7b1   : > { %6165 = vmatpush3.bf16.msra.mxu1 %v1746_v54 }
 0x7b2   : > { %6178 = vmatprep.subr.bf16.mxu1 %v7252_v15 }
 0x7b3   : > { %v1904_v13 = vpop.permute.xlu1 %1903 }
 0x7b4   : > { %v1909_v28 = vsel %vm1350_vm5, %v1904_v13, 0 }
 0x7b7   : > { %v1954_v14 = vpop.permute.xlu1 %1953 }
 0x7b8   : > { %v6616_v55 = vpop.eup %6615  ;;  %v1959_v16 = vsel %vm1350_vm5, %v1954_v14, 0 }
 0x7b9   : > { %v1678_v56 = vsel %vm1443_vm7, %v6616_v55, 0.0 }
 0x7ba   : > { %v6618_v57 = vpop.eup %6617  ;;  %1679 = vadd.xlane.f32.xlu0 %v1678_v56 }
 0x7bb   : > { %v1681_v58 = vsel %vm1443_vm7, %v6618_v57, 0.0  ;;  %v1952_v18 = vpop.permute.xlu1 %1951 }
 0x7be   : > { %1682 = vadd.xlane.f32.xlu0 %v1681_v58 }
 0x7d4   : > { %1691 = vrot.lane.b32.xlu0 %v7998_v31, %s7255_s19 }
 0x7d8   : > { %1901 = vrot.lane.b32.xlu0 %v8001_v33, %s7256_s14 }
 0x847   : > { %v1680_v59 = vpop.xlane.xlu0 %1679 }
 0x848   : > { %6619 = vrcp.f32 %v1680_v59 }
 0x84b   : > { %v1683_v60 = vpop.xlane.xlu0 %1682 }
 0x84c   : > { %6621 = vrcp.f32 %v1683_v60 }
 0x84f   : > { %v1692_v61 = vpop.permute.xlu0 %1691 }
 0x850   : > { %v1697_v62 = vsel %vm1471_vm6, %v1692_v61, 0 }
 0x851   : > { %6159 = vmatpush3.bf16.msra.mxu0 %v1697_v62 }
 0x852   : > { %v6620_v63 = vpop.eup %6619  ;;  %6170 = vmatprep.subr.bf16.mxu0 %v7252_v15 }
 0x853   : > { %v1685_v0 = vmul.f32 %v6620_v63, %v6616_v55  ;;  %v1902_v37 = vpop.permute.xlu0 %1901 }
 0x855   : > { %v1688_v4 = vpack.c.bf16 %v1685_v0, %v1685_v0 }
 0x856   : > { %v6622_v7 = vpop.eup %6621 }
 0x857   : > { %v1687_v8 = vmul.f32 %v6622_v7, %v6618_v57  ;;  %6161 = vmatmul.mubr.msk.bf16.vlgmr.msra.gmra.mrb[16].mxu0 %vm1443_vm7, %v1688_v4 }
 0x858   : > { %6171 = vmatpush3.bf16.msra.mxu0 %v6465_v1  ;;  %6174 = vmatprep.mubr.msk.bf16.mxu0 %vm7254_vm0, %v7252_v15 }
 0x859   : > { %v1689_v10 = vpack.c.bf16 %v1687_v8, %v1687_v8  ;;  %6172 = vmatprep.subr.bf16.mxu0 %v7252_v15 }
 0x85b   : > { %6167 = vmatmul.mubr.msk.bf16.vlgmr.msra.gmra.mrb[16].mxu1 %vm1443_vm7, %v1689_v10 }
 0x85c   : > { %6179 = vmatpush3.bf16.msra.mxu1 %v6463_v9  ;;  %6182 = vmatprep.mubr.msk.bf16.mxu1 %vm7254_vm0, %v7252_v15 }
 0x85d   : > { %6180 = vmatprep.subr.bf16.mxu1 %v7252_v15  ;;  %6173 = vmatpush3.bf16.msra.mxu0 %v6466_v11 }
 0x85e   : > { %6186 = vmatprep.subr.bf16.mxu0 %v7252_v15 }
 0x860   : > { %6181 = vmatpush3.bf16.msra.mxu1 %v6464_v12 }
 0x861   : > { %6192 = vmatprep.subr.bf16.mxu1 %v7252_v15 }
 0x863   : > { %6183 = vmatmul.mubr.msk.bf16.vlgmr.msra.gmra.mrb[20].mxu1 %vm1350_vm5, %v1561_v22 }
 0x864   : > { %6194 = vmatprep.mubr.msk.bf16.mxu1 %vm7254_vm0, %v7252_v15 }
 0x869   : > { %6193 = vmatpush3.bf16.xpose.msra.mxu1 %v1959_v16 }
 0x86a   : > { %6204 = vmatprep.subr.bf16.mxu1 %v7252_v15 }
 0x870   : > { %6195 = vmatmul.mubr.msk.bf16.vlgmr.msra.gmra.mrb[24].mxu1 %vm1350_vm5, %v1952_v18 }
 0x871   : > { %6206 = vmatprep.mubr.msk.bf16.mxu1 %vm7254_vm0, %v7252_v15 }
 0x92a   : > { %v1733_v19 = vpop.f32.mrb[16].mxu0 }
 0x92b   : > { %v6162_v23 = vpop.f32.mrb[17].mxu0 }
 0x92c   : > { %v1736_v17 = vpop.f32.mrb[18].mxu0 }
 0x92d   : > { %v6163_v20 = vpop.f32.mrb[19].mxu0 }
 0x92e   : > { %v1782_v22 = vpop.f32.mrb[16].mxu1 }
 0x92f   : > { %v1788_v24 = vpack.c.bf16 %v1782_v22, %v1733_v19  ;;  %v6168_v26 = vpop.f32.mrb[17].mxu1  ;;  %v6467_v22 = vld [vmem:[%s7900_s22 + $0x20] sm:$0xff]  }
 0x930   : > { %v1785_v27 = vpop.f32.mrb[18].mxu1 }
 0x931   : > { %v6169_v30 = vpop.f32.mrb[19].mxu1  ;;  %6175 = vmatmul.mubr.msk.bf16.vlgmr.msra.gmra.mrb[20].mxu0 %vm1350_vm5, %v1788_v24 }
 0x932   : > { %6187 = vmatpush3.bf16.xpose.msra.mxu0 %v1909_v28  ;;  %6188 = vmatprep.mubr.msk.bf16.mxu0 %vm7254_vm0, %v7252_v15  ;;  %v6468_v30 = vld [vmem:[%s7900_s22 + $0x28] sm:$0xff]  }
 0x933   : > { %6198 = vmatprep.subr.bf16.mxu0 %v7252_v15 }
 0x936   : > { %v1894_v32 = vpop.f32.mrb[20].mxu1 }
 0x937   : > { %v6184_v36 = vpop.f32.mrb[21].mxu1 }
 0x938   : > { %v1897_v39 = vpop.f32.mrb[22].mxu1 }
 0x939   : > { %v6185_v41 = vpop.f32.mrb[23].mxu1  ;;  %6189 = vmatmul.mubr.msk.bf16.vlgmr.msra.gmra.mrb[24].mxu0 %vm1350_vm5, %v1902_v37 }
 0x93a   : > { %6200 = vmatprep.mubr.msk.bf16.mxu0 %vm7254_vm0, %v7252_v15 }
 0x943   : > { %v1995_v42 = vpop.f32.mrb[24].mxu1 }
 0x944   : > { %v1996_v43 = vadd.f32 %v8023_v40, %v1995_v42  ;;  %v6196_v44 = vpop.f32.mrb[25].mxu1 }
 0x945   : > { %v1998_v45 = vpop.f32.mrb[26].mxu1 }
 0x946   : > { %v6197_v46 = vpop.f32.mrb[27].mxu1  ;;  %v2004_v47 = vsel %vm1443_vm7, %v1996_v43, -inf }
 0x947   : > { %2005 = vmax.xlane.f32.xlu1 %v2004_v47 }
 0x958   : > { %2073 = vrot.lane.b32.xlu1 %v8003_v34, %s7256_s14 }
 0x95c   : > { %2182 = vrot.lane.b32.xlu1 %v7989_v21, %s7257_s5 }
 0x960   : > { %2232 = vrot.lane.b32.xlu1 %v7991_v25, %s7257_s5 }
 0x964   : > { %2230 = vrot.lane.b32.xlu1 %v8005_v35, %s7257_s5 }
 0x9d4   : > { %v2006_v48 = vpop.xlane.xlu1 %2005 }
 0x9d5   : > { %v2008_v51 = vsub.f32 %v1996_v43, %v2006_v48 }
 0x9d7   : > { %v2011_v52 = vmul.f32 1.442695, %v2008_v51 }
 0x9d8   : > { %v2074_v49 = vpop.permute.xlu1 %2073 }
 0x9d9   : > { %v2079_v50 = vsel %vm1471_vm6, %v2074_v49, 0  ;;  %6623 = vpow2.f32 %v2011_v52 }
 0x9da   : > { %6205 = vmatpush3.bf16.msra.mxu1 %v2079_v50 }
 0x9db   : > { %6218 = vmatprep.subr.bf16.mxu1 %v7252_v15 }
 0x9dc   : > { %v2183_v12 = vpop.permute.xlu1 %2182 }
 0x9dd   : > { %v2188_v14 = vsel %vm1350_vm5, %v2183_v12, 0 }
 0x9e0   : > { %v2233_v43 = vpop.permute.xlu1 %2232 }
 0x9e1   : > { %v2238_v48 = vsel %vm1350_vm5, %v2233_v43, 0 }
 0x9e3   : > { %v6624_v62 = vpop.eup %6623 }
 0x9e4   : > { %v2016_v63 = vsel %vm1443_vm7, %v6624_v62, 0.0 }
 0xa04   : > { %v1838_v53 = vpop.f32.mrb[20].mxu0 }
 0xa05   : > { %v8128_v54 = vadd.f32 %v1894_v32, %v1838_v53  ;;  %v6176_v55 = vpop.f32.mrb[21].mxu0 }
 0xa06   : > { %v1841_v21 = vpop.f32.mrb[22].mxu0 }
 0xa07   : > { %v8130_v56 = vadd.f32 %v1897_v39, %v1841_v21  ;;  %v6177_v25 = vpop.f32.mrb[23].mxu0 }
 0xa0c   : > { %v1945_v57 = vpop.f32.mrb[24].mxu0 }
 0xa0d   : > { %v1946_v35 = vadd.f32 %v8021_v38, %v1945_v57  ;;  %v6190_v58 = vpop.f32.mrb[25].mxu0 }
 0xa0e   : > { %v1948_v59 = vpop.f32.mrb[26].mxu0 }
 0xa0f   : > { %v6191_v60 = vpop.f32.mrb[27].mxu0  ;;  %v2001_v61 = vsel %vm1443_vm7, %v1946_v35, -inf }
 0xa10   : > { %2002 = vmax.xlane.f32.xlu0 %v2001_v61 }
 0xa14   : > { %2017 = vadd.xlane.f32.xlu0 %v2016_v63 }
 0xa9d   : > { %v2003_v0 = vpop.xlane.xlu0 %2002 }
 0xa9e   : > { %v2007_v1 = vsub.f32 %v1946_v35, %v2003_v0 }
 0xaa0   : > { %v2009_v4 = vmul.f32 1.442695, %v2007_v1 }
 0xaa1   : > { %v2018_v7 = vpop.xlane.xlu0 %2017 }
 0xaa2   : > { %6625 = vpow2.f32 %v2009_v4 }
 0xaa3   : > { %6627 = vrcp.f32 %v2018_v7 }
 0xaac   : > { %v6626_v8 = vpop.eup %6625 }
 0xaad   : > { %v6628_v9 = vpop.eup %6627  ;;  %v2013_v10 = vsel %vm1443_vm7, %v6626_v8, 0.0 }
 0xaae   : > { %v2022_v11 = vmul.f32 %v6628_v9, %v6624_v62  ;;  %2014 = vadd.xlane.f32.xlu0 %v2013_v10 }
 0xab0   : > { %v2024_v13 = vpack.c.bf16 %v2022_v11, %v2022_v11 }
 0xab2   : > { %6207 = vmatmul.mubr.msk.bf16.vlgmr.msra.gmra.mrb[28].mxu1 %vm1443_vm7, %v2024_v13 }
 0xab3   : > { %6219 = vmatpush3.bf16.xpose.msra.mxu1 %v2188_v14  ;;  %6220 = vmatprep.mubr.msk.bf16.mxu1 %vm7254_vm0, %v7252_v15 }
 0xab4   : > { %6230 = vmatprep.subr.bf16.mxu1 %v7252_v15 }
 0xac4   : > { %2025 = vrot.lane.b32.xlu0 %v7998_v31, %s7256_s14 }
 0xac8   : > { %2180 = vrot.lane.b32.xlu0 %v8001_v33, %s7257_s5 }
 0xb3b   : > { %v2015_v16 = vpop.xlane.xlu0 %2014 }
 0xb3c   : > { %6629 = vrcp.f32 %v2015_v16 }
 0xb3f   : > { %v2026_v18 = vpop.permute.xlu0 %2025 }
 0xb40   : > { %v2031_v19 = vsel %vm1471_vm6, %v2026_v18, 0 }
 0xb41   : > { %6199 = vmatpush3.bf16.msra.mxu0 %v2031_v19 }
 0xb42   : > { %6210 = vmatprep.subr.bf16.mxu0 %v7252_v15 }
 0xb43   : > { %v2181_v23 = vpop.permute.xlu0 %2180 }
 0xb44   : > { %6221 = vmatmul.mubr.msk.bf16.vlgmr.msra.gmra.mrb[32].mxu1 %vm1350_vm5, %v2181_v23  ;;  %v6469_v23 = vld [vmem:[%s7900_s22 + $0x30] sm:$0xff]  }
 0xb45   : > { %6232 = vmatprep.mubr.msk.bf16.mxu1 %vm7254_vm0, %v7252_v15 }
 0xb46   : > { %v6630_v17 = vpop.eup %6629 }
 0xb47   : > { %v2020_v20 = vmul.f32 %v6630_v17, %v6626_v8  ;;  %v6470_v17 = vld [vmem:[%s7900_s22 + $0x38] sm:$0xff]  }
 0xb49   : > { %v2023_v24 = vpack.c.bf16 %v2020_v20, %v2020_v20 }
 0xb4b   : > { %6201 = vmatmul.mubr.msk.bf16.vlgmr.msra.gmra.mrb[28].mxu0 %vm1443_vm7, %v2023_v24 }
 0xb4c   : > { %6211 = vmatpush3.bf16.msra.mxu0 %v6467_v22  ;;  %6214 = vmatprep.mubr.msk.bf16.mxu0 %vm7254_vm0, %v7252_v15 }
 0xb4d   : > { %6212 = vmatprep.subr.bf16.mxu0 %v7252_v15 }
 0xb50   : > { %6213 = vmatpush3.bf16.msra.mxu0 %v6468_v30 }
 0xb51   : > { %6224 = vmatprep.subr.bf16.mxu0 %v7252_v15 }
 0xb85   : > { %v2115_v33 = vpop.f32.mrb[28].mxu1 }
 0xb86   : > { %v6208_v26 = vpop.f32.mrb[29].mxu1 }
 0xb87   : > { %v2118_v27 = vpop.f32.mrb[30].mxu1 }
 0xb88   : > { %v6209_v28 = vpop.f32.mrb[31].mxu1 }
 0xc17   : > { %v2224_v32 = vpop.f32.mrb[32].mxu1 }
 0xc18   : > { %v2225_v36 = vadd.f32 %v8021_v38, %v2224_v32  ;;  %v6222_v37 = vpop.f32.mrb[33].mxu1  ;;  %v2231_v38 = vpop.permute.xlu1 %2230 }
 0xc19   : > { %v2227_v39 = vpop.f32.mrb[34].mxu1 }
 0xc1a   : > { %v6223_v41 = vpop.f32.mrb[35].mxu1  ;;  %v2280_v42 = vsel %vm1443_vm7, %v2225_v36, -inf }
 0xc1b   : > { %2281 = vmax.xlane.f32.xlu0 %v2280_v42  ;;  %v5602_v41 = vld [vmem:[%s844_s26] ss:$0 sm:$0xff] }
 0xc1c   : > { %v6647_v42 = vld [vmem:[#allocation2] sm:$0xff] }
 0xc1e   : > { %v2067_v44 = vpop.f32.mrb[28].mxu0 }
 0xc1f   : > { %v2121_v45 = vpack.c.bf16 %v2115_v33, %v2067_v44  ;;  %v6202_v46 = vpop.f32.mrb[29].mxu0 }
 0xc20   : > { %v2070_v47 = vpop.f32.mrb[30].mxu0  ;;  %v6648_v46 = vld [vmem:[#allocation2 + $0x8] sm:$0xff] }
 0xc21   : > { %v6203_v49 = vpop.f32.mrb[31].mxu0  ;;  %6215 = vmatmul.mubr.msk.bf16.vlgmr.msra.gmra.mrb[32].mxu0 %vm1350_vm5, %v2121_v45 }
 0xc22   : > { %6225 = vmatpush3.bf16.xpose.msra.mxu0 %v2238_v48  ;;  %6226 = vmatprep.mubr.msk.bf16.mxu0 %vm7254_vm0, %v7252_v15 }
 0xc23   : > { %6236 = vmatprep.subr.bf16.mxu0 %v7252_v15 }
 0xc29   : > { %6227 = vmatmul.mubr.msk.bf16.vlgmr.msra.gmra.mrb[36].mxu0 %vm1350_vm5, %v2231_v38 }
 0xc2a   : > { %6238 = vmatprep.mubr.msk.bf16.mxu0 %vm7254_vm0, %v7252_v15 }
 0xca8   : > { %v2282_v50 = vpop.xlane.xlu0 %2281 }
 0xca9   : > { %v2286_v51 = vsub.f32 %v2225_v36, %v2282_v50 }
 0xcab   : > { %v2288_v52 = vmul.f32 1.442695, %v2286_v51 }
 0xcad   : > { %6631 = vpow2.f32 %v2288_v52 }
 0xcb7   : > { %v6632_v53 = vpop.eup %6631 }
 0xcb8   : > { %v2292_v55 = vsel %vm1443_vm7, %v6632_v53, 0.0 }
 0xcb9   : > { %2293 = vadd.xlane.f32.xlu0 %v2292_v55 }
 0xcf4   : > { %v2171_v21 = vpop.f32.mrb[32].mxu0 }
 0xcf5   : > { %v2178_v25 = vadd.f32 %v2171_v21, %v8128_v54  ;;  %v6216_v57 = vpop.f32.mrb[33].mxu0 }
 0xcf6   : > { %v2174_v35 = vpop.f32.mrb[34].mxu0  ;;  %v2525_v57 = vld [vmem:[%s7903_s4] sm:$0xff] }
 0xcf7   : > { %v2179_v58 = vadd.f32 %v2174_v35, %v8130_v56  ;;  %v6217_v59 = vpop.f32.mrb[35].mxu0  ;;  %v2533_v35 = vld [vmem:[%s7903_s4 + $0x40] sm:$0xff] }
 0xcf8   : > { %v5606_v59 = vcombine.high %v2525_v57, %v2533_v35 }
 0xcfc   : > { %v2274_v60 = vpop.f32.mrb[36].mxu0 }
 0xcfd   : > { %v2275_v61 = vadd.f32 %v8023_v40, %v2274_v60  ;;  %v6228_v62 = vpop.f32.mrb[37].mxu0  ;;  %v2534_v60 = vld [vmem:[%s7903_s4 + $0x48] sm:$0xff] }
 0xcfe   : > { %v2277_v63 = vpop.f32.mrb[38].mxu0 }
 0xcff   : > { %v6229_v0 = vpop.f32.mrb[39].mxu0  ;;  %v2283_v1 = vsel %vm1443_vm7, %v2275_v61, -inf }
 0xd00   : > { %2284 = vmax.xlane.f32.xlu1 %v2283_v1  ;;  %v2541_v0 = vld [vmem:[%s7903_s4 + $0x80] sm:$0xff] }
 0xd01   : > { %v2549_v1 = vld [vmem:[%s7903_s4 + $0xc0] sm:$0xff] }
 0xd11   : > { %2352 = vrot.lane.b32.xlu1 %v8003_v34, %s7257_s5 }
 0xd46   : > { %v2294_v10 = vpop.xlane.xlu0 %2293 }
 0xd8d   : > { %v2285_v4 = vpop.xlane.xlu1 %2284 }
 0xd8e   : > { %v2287_v7 = vsub.f32 %v2275_v61, %v2285_v4  ;;  %v5605_v61 = vcombine.low %v2525_v57, %v2533_v35  ;;  %v2542_v4 = vld [vmem:[%s7903_s4 + $0x88] sm:$0xff]  ;;  %v2637_v35 = vld [vmem:[%s7903_s4 + $0x380] sm:$0xff] }
 0xd90   : > { %v2290_v54 = vmul.f32 1.442695, %v2287_v7  ;;  %v5622_v7 = vcombine.high %v2541_v0, %v2549_v1 }
 0xd91   : > { %v2353_v8 = vpop.permute.xlu1 %2352 }
 0xd92   : > { %6633 = vpow2.f32 %v2290_v54  ;;  %v2358_v56 = vsel %vm1471_vm6, %v2353_v8, 0  ;;  %v2550_v54 = vld [vmem:[%s7903_s4 + $0xc8] sm:$0xff]  ;;  %v5621_v8 = vcombine.low %v2541_v0, %v2549_v1  ;;  %v2535_v0 = vld [vmem:[%s7903_s4 + $0x50] sm:$0xff] }
 0xd93   : > { %6237 = vmatpush3.bf16.msra.mxu0 %v2358_v56  ;;  %6635 = vrcp.f32 %v2294_v10  ;;  %v5623_v56 = vcombine.low %v2542_v4, %v2550_v54  ;;  %v2565_v10 = vld [vmem:[%s7903_s4 + $0x140] sm:$0xff] }
 0xd94   : > { %3377 = vmatprep.subr.bf16.mxu0 %v5606_v59  ;;  %v2638_v59 = vld [vmem:[%s7903_s4 + $0x388] sm:$0xff] }
 0xd9c   : > { %v6634_v9 = vpop.eup %6633 }
 0xd9d   : > { %v2295_v40 = vsel %vm1443_vm7, %v6634_v9, 0.0  ;;  %v6636_v11 = vpop.eup %6635 }
 0xd9e   : > { %2296 = vadd.xlane.f32.xlu0 %v2295_v40  ;;  %v2299_v12 = vmul.f32 %v6636_v11, %v6632_v53  ;;  %v2557_v40 = vld [vmem:[%s7903_s4 + $0x100] sm:$0xff]  ;;  %v2558_v11 = vld [vmem:[%s7903_s4 + $0x108] sm:$0xff] }
 0xda0   : > { %v2302_v16 = vpack.c.bf16 %v2299_v12, %v2299_v12  ;;  %v2566_v12 = vld [vmem:[%s7903_s4 + $0x148] sm:$0xff] }
 0xdb4   : > { %2304 = vrot.lane.b32.xlu0 %v7998_v31, %s7257_s5 }
 0xe2b   : > { %v2297_v34 = vpop.xlane.xlu0 %2296 }
 0xe2c   : > { %6637 = vrcp.f32 %v2297_v34  ;;  %v5638_v34 = vcombine.high %v2557_v40, %v2565_v10 }
 0xe2f   : > { %v2305_v13 = vpop.permute.xlu0 %2304 }
 0xe30   : > { %v2310_v14 = vsel %vm1471_vm6, %v2305_v13, 0  ;;  %v5637_v13 = vcombine.low %v2557_v40, %v2565_v10 }
 0xe31   : > { %6231 = vmatpush3.bf16.msra.mxu1 %v2310_v14  ;;  %v5639_v14 = vcombine.low %v2558_v11, %v2566_v12 }
 0xe32   : > { %6242 = vmatprep.subr.bf16.mxu1 %v7252_v15 }
 0xe34   : > { %6233 = vmatmul.mubr.msk.bf16.vlgmr.msra.gmra.mrb[36].mxu1 %vm1443_vm7, %v2302_v16  ;;  %v5640_v16 = vcombine.high %v2558_v11, %v2566_v12 }
 0xe35   : > { %6246 = vmatprep.mubr.msk.bf16.mxu1 %vm7254_vm0, %v7252_v15  ;;  %6243 = vmatpush3.bf16.msra.mxu1 %v6469_v23 }
 0xe36   : > { %v6638_v31 = vpop.eup %6637  ;;  %6244 = vmatprep.subr.bf16.mxu1 %v7252_v15 }
 0xe37   : > { %v2301_v18 = vmul.f32 %v6638_v31, %v6634_v9  ;;  %v5624_v9 = vcombine.high %v2542_v4, %v2550_v54  ;;  %v2573_v31 = vld [vmem:[%s7903_s4 + $0x180] sm:$0xff] }
 0xe39   : > { %v2303_v19 = vpack.c.bf16 %v2301_v18, %v2301_v18  ;;  %6245 = vmatpush3.bf16.msra.mxu1 %v6470_v17  ;;  %v2581_v18 = vld [vmem:[%s7903_s4 + $0x1c0] sm:$0xff]  ;;  %v2582_v17 = vld [vmem:[%s7903_s4 + $0x1c8] sm:$0xff] }
 0xe3a   : > { %v5654_v23 = vcombine.high %v2573_v31, %v2581_v18 }
 0xe3b   : > { %6239 = vmatmul.mubr.msk.bf16.vlgmr.msra.gmra.mrb[40].mxu0 %vm1443_vm7, %v2303_v19  ;;  %v2574_v19 = vld [vmem:[%s7903_s4 + $0x188] sm:$0xff] }
 0xe3c   : > { %3409 = vmatprep.mubr.bf16.mxu0 %v7253_v29  ;;  %3378 = vmatpush1.bf16.msra.mxu0 %v5605_v61 }
 0xe3d   : > { %3379 = vmatprep.subr.bf16.mxu0 %v5622_v7 }
 0xe40   : > { %3380 = vmatpush1.bf16.msra.mxu0 %v5621_v8  ;;  %v2528_v8 = vld [vmem:[%s7903_s4 + $0x18] sm:$0xff] }
 0xe41   : > { %3381 = vmatprep.subr.bf16.mxu0 %v5638_v34 }
 0xe44   : > { %3382 = vmatpush1.bf16.msra.mxu0 %v5637_v13 }
 0xe45   : > { %3383 = vmatprep.subr.bf16.mxu0 %v5654_v23 }
 0xf07   : > { %v2346_v20 = vpop.f32.mrb[36].mxu1 }
 0xf08   : > { %v6234_v22 = vpop.f32.mrb[37].mxu1 }
 0xf09   : > { %v2349_v24 = vpop.f32.mrb[38].mxu1  ;;  %v5655_v22 = vcombine.low %v2574_v19, %v2582_v17 }
 0xf0a   : > { %v6235_v33 = vpop.f32.mrb[39].mxu1  ;;  %v5656_v24 = vcombine.high %v2574_v19, %v2582_v17 }
 0xf0b   : > { %v2589_v33 = vld [vmem:[%s7903_s4 + $0x200] sm:$0xff] }
 0xf0e   : > { %v2394_v26 = vpop.f32.mrb[40].mxu0 }
 0xf0f   : > { %v2400_v27 = vpack.c.bf16 %v2394_v26, %v2346_v20  ;;  %v6240_v28 = vpop.f32.mrb[41].mxu0  ;;  %v5653_v20 = vcombine.low %v2573_v31, %v2581_v18  ;;  %v2597_v26 = vld [vmem:[%s7903_s4 + $0x240] sm:$0xff] }
 0xf10   : > { %v2397_v30 = vpop.f32.mrb[42].mxu0  ;;  %v5670_v28 = vcombine.high %v2589_v33, %v2597_v26 }
 0xf11   : > { %v6241_v32 = vpop.f32.mrb[43].mxu0  ;;  %6247 = vmatmul.mubr.msk.bf16.vlgmr.msra.gmra.mrb[40].mxu1 %vm1350_vm5, %v2400_v27  ;;  %3384 = vmatpush1.bf16.msra.mxu0 %v5653_v20  ;;  %v2590_v27 = vld [vmem:[%s7903_s4 + $0x208] sm:$0xff] }
 0xf12   : > { %3452 = vmatprep.mubr.bf16.mxu1 %v7253_v29  ;;  %v2598_v30 = vld [vmem:[%s7903_s4 + $0x248] sm:$0xff]  ;;  %v5669_v32 = vcombine.low %v2589_v33, %v2597_v26  ;;  %3385 = vmatprep.subr.bf16.mxu0 %v5670_v28 }
 0xf13   : > { %v5603_v26 = vld [vmem:[%s801_s2] ss:$0 sm:$0xff] }
 0xf15   : > { %3386 = vmatpush1.bf16.msra.mxu0 %v5669_v32 }
 0xfe4   : > { %v2450_v36 = vpop.f32.mrb[40].mxu1 }
 0xfe5   : > { %v2457_v37 = vadd.f32 %v2450_v36, %v2178_v25  ;;  %v6248_v39 = vpop.f32.mrb[41].mxu1  ;;  %v5671_v36 = vcombine.low %v2590_v27, %v2598_v30 }
 0xfe6   : > { %v2453_v15 = vpop.f32.mrb[42].mxu1  ;;  %v2605_v39 = vld [vmem:[%s7903_s4 + $0x280] sm:$0xff] }
 0xfe7   : > { %v2459_v43 = vadd.f32 %v6647_v42, %v2457_v37  ;;  %v2458_v44 = vadd.f32 %v2453_v15, %v2179_v58  ;;  %v6249_v45 = vpop.f32.mrb[43].mxu1  ;;  %v2526_v58 = vld [vmem:[%s7903_s4 + $0x8] sm:$0xff]  ;;  %v5672_v37 = vcombine.high %v2590_v27, %v2598_v30  ;;  %v2613_v15 = vld [vmem:[%s7903_s4 + $0x2c0] sm:$0xff] }
 0xfe8   : > { %v5607_v62 = vcombine.low %v2526_v58, %v2534_v60  ;;  %v5608_v63 = vcombine.high %v2526_v58, %v2534_v60  ;;  %v5686_v42 = vcombine.high %v2605_v39, %v2613_v15  ;;  %v2645_v58 = vld [vmem:[%s7903_s4 + $0x3c0] sm:$0xff] }
 0xfe9   : > { %v2460_v47 = vadd.f32 %v6648_v46, %v2458_v44  ;;  %v8192_v48 = vadd.f32 %v5602_v41, %v2459_v43  ;;  %v2614_v43 = vld [vmem:[%s7903_s4 + $0x2c8] sm:$0xff]  ;;  %v5685_v44 = vcombine.low %v2605_v39, %v2613_v15  ;;  %v5717_v60 = vcombine.low %v2637_v35, %v2645_v58  ;;  %v2543_v15 = vld [vmem:[%s7903_s4 + $0x90] sm:$0xff] }
 0xfea   : > { %3420 = vmatprep.subr.bf16.mxu1 %v5608_v63  ;;  %3387 = vmatprep.subr.bf16.mxu0 %v5686_v42  ;;  %v5718_v61 = vcombine.high %v2637_v35, %v2645_v58  ;;  %v8241_v63 = vld [vmem:[%s7903_s4 + $0x10] sm:$0xff]  ;;  %v2544_v42 = vld [vmem:[%s7903_s4 + $0x98] sm:$0xff] }
 0xfeb   : > { %2472 = vadd.xlane.f32.xlu1 %v8192_v48  ;;  %v8195_v49 = vadd.f32 %v5602_v41, %v2460_v47  ;;  %3421 = vmatpush1.bf16.msra.mxu1 %v5607_v62  ;;  %v2606_v41 = vld [vmem:[%s7903_s4 + $0x288] sm:$0xff]  ;;  %v2621_v47 = vld [vmem:[%s7903_s4 + $0x300] sm:$0xff]  ;;  %v5609_v7 = vcombine.low %v8241_v63, %v2535_v0  ;;  %v5610_v54 = vcombine.high %v8241_v63, %v2535_v0  ;;  %v2575_v35 = vld [vmem:[%s7903_s4 + $0x190] sm:$0xff] }
 0xfec   : > { %3422 = vmatprep.subr.bf16.mxu1 %v5624_v9  ;;  %v5687_v45 = vcombine.low %v2606_v41, %v2614_v43  ;;  %v5688_v46 = vcombine.high %v2606_v41, %v2614_v43  ;;  %3388 = vmatpush1.bf16.msra.mxu0 %v5685_v44  ;;  %v2646_v62 = vld [vmem:[%s7903_s4 + $0x3c8] sm:$0xff]  ;;  %v2551_v41 = vld [vmem:[%s7903_s4 + $0xd0] sm:$0xff]  ;;  %v2552_v43 = vld [vmem:[%s7903_s4 + $0xd8] sm:$0xff] }
 0xfed   : > { %2474 = vadd.xlane.f32.xlu0 %v8195_v49  ;;  %v5719_v1 = vcombine.low %v2638_v59, %v2646_v62  ;;  %v5720_v4 = vcombine.high %v2638_v59, %v2646_v62  ;;  %v2583_v58 = vld [vmem:[%s7903_s4 + $0x1d0] sm:$0xff]  ;;  %v2576_v59 = vld [vmem:[%s7903_s4 + $0x198] sm:$0xff] }
 0xfee   : > { %v5658_v63 = vcombine.high %v2575_v35, %v2583_v58 }
 0xfef   : > { %3423 = vmatpush1.bf16.msra.mxu1 %v5623_v56  ;;  %v2536_v56 = vld [vmem:[%s7903_s4 + $0x58] sm:$0xff] }
 0xff0   : > { %3424 = vmatprep.subr.bf16.mxu1 %v5640_v16  ;;  %v5611_v9 = vcombine.low %v2528_v8, %v2536_v56  ;;  %v5612_v40 = vcombine.high %v2528_v8, %v2536_v56  ;;  %v5657_v8 = vcombine.low %v2575_v35, %v2583_v58  ;;  %v2561_v35 = vld [vmem:[%s7903_s4 + $0x120] sm:$0xff] }
 0xff1   : > { %v2569_v58 = vld [vmem:[%s7903_s4 + $0x160] sm:$0xff] }
 0xff3   : > { %3425 = vmatpush1.bf16.msra.mxu1 %v5639_v14 }
 0xff4   : > { %3426 = vmatprep.subr.bf16.mxu1 %v5656_v24 }
 0xff7   : > { %3427 = vmatpush1.bf16.msra.mxu1 %v5655_v22 }
 0xff8   : > { %3428 = vmatprep.subr.bf16.mxu1 %v5672_v37  ;;  %v5604_v37 = vld [vmem:[%s809_s21] ss:$0 sm:$0xff] }
 0xffb   : > { %3429 = vmatpush1.bf16.msra.mxu1 %v5671_v36 }
 0xffc   : > { %3430 = vmatprep.subr.bf16.mxu1 %v5688_v46 }
 0xfff   : > { %3431 = vmatpush1.bf16.msra.mxu1 %v5687_v45 }
0x1078   : > { %v2473_v38 = vpop.xlane.xlu1 %2472 }
0x1079   : > { %v2476_v50 = vmul.f32 0.0078125, %v2473_v38  ;;  %v2629_v38 = vld [vmem:[%s7903_s4 + $0x340] sm:$0xff] }
0x107a   : > { %v2475_v51 = vpop.xlane.xlu0 %2474 }
0x107b   : > { %v8199_v52 = vsub.f32 %v8192_v48, %v2476_v50  ;;  %v2477_v53 = vmul.f32 0.0078125, %v2475_v51  ;;  %v2622_v50 = vld [vmem:[%s7903_s4 + $0x308] sm:$0xff]  ;;  %v5702_v51 = vcombine.high %v2621_v47, %v2629_v38 }
0x107d   : > { %v8202_v55 = vsub.f32 %v8195_v49, %v2477_v53  ;;  %v2480_v21 = vmul.f32 %v8199_v52, %v8199_v52  ;;  %v2630_v53 = vld [vmem:[%s7903_s4 + $0x348] sm:$0xff]  ;;  %3389 = vmatprep.subr.bf16.mxu0 %v5702_v51  ;;  %v2494_v28 = vmul.f32 %v5603_v26, %v8199_v52  ;;  %v5628_v52 = vcombine.high %v2544_v42, %v2552_v43  ;;  %v2568_v51 = vld [vmem:[%s7903_s4 + $0x158] sm:$0xff] }
0x107e   : > { %v5704_v57 = vcombine.high %v2622_v50, %v2630_v53 }
0x107f   : > { %2482 = vadd.xlane.f32.xlu0 %v2480_v21  ;;  %v2481_v25 = vmul.f32 %v8202_v55, %v8202_v55  ;;  %v5701_v21 = vcombine.low %v2621_v47, %v2629_v38  ;;  %v2495_v30 = vmul.f32 %v5603_v26, %v8202_v55  ;;  %v5626_v47 = vcombine.high %v2543_v15, %v2551_v41  ;;  %v2559_v55 = vld [vmem:[%s7903_s4 + $0x110] sm:$0xff] }
0x1080   : > { %3432 = vmatprep.subr.bf16.mxu1 %v5704_v57  ;;  %v2567_v38 = vld [vmem:[%s7903_s4 + $0x150] sm:$0xff] }
0x1081   : > { %2484 = vadd.xlane.f32.xlu1 %v2481_v25  ;;  %v5703_v25 = vcombine.low %v2622_v50, %v2630_v53  ;;  %3390 = vmatpush1.bf16.msra.mxu0 %v5701_v21  ;;  %v2560_v50 = vld [vmem:[%s7903_s4 + $0x118] sm:$0xff]  ;;  %v5625_v53 = vcombine.low %v2543_v15, %v2551_v41  ;;  %v5627_v21 = vcombine.low %v2544_v42, %v2552_v43  ;;  %v2639_v26 = vld [vmem:[%s7903_s4 + $0x390] sm:$0xff]  ;;  %v2529_v15 = vld [vmem:[%s7903_s4 + $0x20] sm:$0xff] }
0x1082   : > { %3391 = vmatprep.subr.bf16.mxu0 %v5718_v61  ;;  %v5644_v57 = vcombine.high %v2560_v50, %v2568_v51  ;;  %v5641_v61 = vcombine.low %v2559_v55, %v2567_v38  ;;  %v5643_v62 = vcombine.low %v2560_v50, %v2568_v51  ;;  %v2537_v41 = vld [vmem:[%s7903_s4 + $0x60] sm:$0xff]  ;;  %v2530_v42 = vld [vmem:[%s7903_s4 + $0x28] sm:$0xff] }
0x1083   : > { %3433 = vmatpush1.bf16.msra.mxu1 %v5703_v25  ;;  %v5642_v25 = vcombine.high %v2559_v55, %v2567_v38  ;;  %v2538_v43 = vld [vmem:[%s7903_s4 + $0x68] sm:$0xff]  ;;  %v2545_v55 = vld [vmem:[%s7903_s4 + $0xa0] sm:$0xff] }
0x1084   : > { %3434 = vmatprep.subr.bf16.mxu1 %v5720_v4  ;;  %v2599_v4 = vld [vmem:[%s7903_s4 + $0x250] sm:$0xff]  ;;  %v2553_v38 = vld [vmem:[%s7903_s4 + $0xe0] sm:$0xff]  ;;  %v2546_v50 = vld [vmem:[%s7903_s4 + $0xa8] sm:$0xff] }
0x1085   : > { %3392 = vmatpush1.bf16.msra.mxu0 %v5717_v60  ;;  %v2584_v60 = vld [vmem:[%s7903_s4 + $0x1d8] sm:$0xff]  ;;  %v2554_v51 = vld [vmem:[%s7903_s4 + $0xe8] sm:$0xff] }
0x1086   : > { %3463 = vmatprep.subr.bf16.mxu0 %v5610_v54  ;;  %v5660_v0 = vcombine.high %v2576_v59, %v2584_v60  ;;  %v2600_v54 = vld [vmem:[%s7903_s4 + $0x258] sm:$0xff]  ;;  %v5659_v56 = vcombine.low %v2576_v59, %v2584_v60  ;;  %v2562_v59 = vld [vmem:[%s7903_s4 + $0x128] sm:$0xff] }
0x1087   : > { %3435 = vmatpush1.bf16.msra.mxu1 %v5719_v1  ;;  %v2591_v1 = vld [vmem:[%s7903_s4 + $0x210] sm:$0xff]  ;;  %v2570_v60 = vld [vmem:[%s7903_s4 + $0x168] sm:$0xff] }
0x1088   : > { %3506 = vmatprep.subr.bf16.mxu1 %v5612_v40 }
0x110c   : > { %v2483_v10 = vpop.xlane.xlu0 %2482 }
0x110d   : > { %v2486_v11 = vmul.f32 0.007874016, %v2483_v10  ;;  %v2607_v10 = vld [vmem:[%s7903_s4 + $0x290] sm:$0xff] }
0x110e   : > { %v2485_v34 = vpop.xlane.xlu1 %2484 }
0x110f   : > { %6639 = vrsqrt.f32 %v2486_v11  ;;  %v2487_v12 = vmul.f32 0.007874016, %v2485_v34  ;;  %vm2498_vm8 = vcmp.eq.f32.partialorder %v2486_v11, inf  ;;  %v2501_v16 = vand.u32 2147483648, %v2486_v11  ;;  %v2608_v34 = vld [vmem:[%s7903_s4 + $0x298] sm:$0xff] }
0x1110   : > { %vm2500_vm9 = vcmp.eq.f32.partialorder %v2486_v11, 0.0 }
0x1111   : > { %6641 = vrsqrt.f32 %v2487_v12  ;;  %vm2505_vm10 = vcmp.eq.f32.partialorder %v2487_v12, inf  ;;  %v2508_v20 = vand.u32 2147483648, %v2487_v12  ;;  %vm2507_vm11 = vcmp.eq.f32.partialorder %v2487_v12, 0.0 }
0x1119   : > { %v6640_v13 = vpop.eup %6639 }
0x111a   : > { %v2497_v14 = vmul.f32 %v6640_v13, %v2486_v11  ;;  %v5673_v13 = vcombine.low %v2591_v1, %v2599_v4 }
0x111b   : > { %v6642_v31 = vpop.eup %6641 }
0x111c   : > { %v2499_v18 = vsel %vm2498_vm8, %v2486_v11, %v2497_v14  ;;  %v2504_v23 = vmul.f32 %v6642_v31, %v2487_v12  ;;  %v2615_v11 = vld [vmem:[%s7903_s4 + $0x2d0] sm:$0xff] }
0x111d   : > { %v2502_v19 = vsel %vm2500_vm9, %v2501_v16, %v2499_v18  ;;  %v5690_v16 = vcombine.high %v2607_v10, %v2615_v11  ;;  %v2623_v18 = vld [vmem:[%s7903_s4 + $0x310] sm:$0xff] }
0x111e   : > { %v2510_v17 = vadd.f32 1e-06, %v2502_v19  ;;  %v2506_v22 = vsel %vm2505_vm10, %v2487_v12, %v2504_v23  ;;  %v2616_v12 = vld [vmem:[%s7903_s4 + $0x2d8] sm:$0xff]  ;;  %v2631_v19 = vld [vmem:[%s7903_s4 + $0x350] sm:$0xff] }
0x111f   : > { %v2509_v24 = vsel %vm2507_vm11, %v2508_v20, %v2506_v22  ;;  %v5692_v31 = vcombine.high %v2608_v34, %v2616_v12  ;;  %v2624_v23 = vld [vmem:[%s7903_s4 + $0x318] sm:$0xff]  ;;  %v5689_v20 = vcombine.low %v2607_v10, %v2615_v11  ;;  %v5691_v22 = vcombine.low %v2608_v34, %v2616_v12  ;;  %v2593_v10 = vld [vmem:[%s7903_s4 + $0x220] sm:$0xff]  ;;  %v2594_v34 = vld [vmem:[%s7903_s4 + $0x228] sm:$0xff] }
0x1120   : > { %6643 = vrcp.f32 %v2510_v17  ;;  %v2511_v33 = vadd.f32 1e-06, %v2509_v24  ;;  %v2632_v17 = vld [vmem:[%s7903_s4 + $0x358] sm:$0xff]  ;;  %v5706_v24 = vcombine.high %v2623_v18, %v2631_v19  ;;  %v2601_v11 = vld [vmem:[%s7903_s4 + $0x260] sm:$0xff]  ;;  %v2602_v12 = vld [vmem:[%s7903_s4 + $0x268] sm:$0xff] }
0x1122   : > { %6645 = vrcp.f32 %v2511_v33  ;;  %v5708_v33 = vcombine.high %v2624_v23, %v2632_v17 }
0x112a   : > { %v6644_v27 = vpop.eup %6643 }
0x112b   : > { %v2513_v32 = vmul.f32 %v6644_v27, %v2494_v28  ;;  %v2647_v27 = vld [vmem:[%s7903_s4 + $0x3d0] sm:$0xff]  ;;  %v2640_v28 = vld [vmem:[%s7903_s4 + $0x398] sm:$0xff] }
0x112c   : > { %v6646_v36 = vpop.eup %6645 }
0x112d   : > { %v2515_v39 = vmul.f32 %v6646_v36, %v2495_v30  ;;  %v2522_v44 = vadd.f32 %v5604_v37, %v2513_v32  ;;  %v2648_v30 = vld [vmem:[%s7903_s4 + $0x3d8] sm:$0xff]  ;;  %v5705_v32 = vcombine.low %v2623_v18, %v2631_v19  ;;  %v5707_v36 = vcombine.low %v2624_v23, %v2632_v17  ;;  %v2609_v18 = vld [vmem:[%s7903_s4 + $0x2a0] sm:$0xff]  ;;  %v2610_v23 = vld [vmem:[%s7903_s4 + $0x2a8] sm:$0xff] }
0x112e   : > { %v2617_v19 = vld [vmem:[%s7903_s4 + $0x2e0] sm:$0xff]  ;;  %v2618_v17 = vld [vmem:[%s7903_s4 + $0x2e8] sm:$0xff] }
0x112f   : > { %v2523_v45 = vadd.f32 %v5604_v37, %v2515_v39  ;;  %v5722_v37 = vcombine.high %v2639_v26, %v2647_v27  ;;  %v5724_v39 = vcombine.high %v2640_v28, %v2648_v30 }
0x1131   : > { %v8258_v46 = vpack.c.bf16 %v2523_v45, %v2522_v44  ;;  %v5721_v44 = vcombine.low %v2639_v26, %v2647_v27  ;;  %v5723_v45 = vcombine.low %v2640_v28, %v2648_v30  ;;  %v2625_v26 = vld [vmem:[%s7903_s4 + $0x320] sm:$0xff]  ;;  %v2626_v28 = vld [vmem:[%s7903_s4 + $0x328] sm:$0xff] }
0x1132   : > { %v2633_v27 = vld [vmem:[%s7903_s4 + $0x360] sm:$0xff]  ;;  %v2634_v30 = vld [vmem:[%s7903_s4 + $0x368] sm:$0xff] }
0x1133   : > { %3410 = vmatmul.mubr.bf16.vlgmr.msra.gmra.mrb[44].mxu0 %v8258_v46  ;;  %3453 = vmatmul.mubr.bf16.vlgmr.msra.gmra.mrb[44].mxu1 %v8258_v46 }
0x1134   : > { %3464 = vmatpush1.bf16.msra.mxu0 %v5609_v7  ;;  %3507 = vmatpush1.bf16.msra.mxu1 %v5611_v9  ;;  %v2592_v7 = vld [vmem:[%s7903_s4 + $0x218] sm:$0xff]  ;;  %v5674_v9 = vcombine.high %v2591_v1, %v2599_v4  ;;  %v2577_v1 = vld [vmem:[%s7903_s4 + $0x1a0] sm:$0xff] }
0x1135   : > { %3465 = vmatprep.subr.bf16.mxu0 %v5626_v47  ;;  %3508 = vmatprep.subr.bf16.mxu1 %v5628_v52  ;;  %v5676_v40 = vcombine.high %v2592_v7, %v2600_v54  ;;  %v5675_v14 = vcombine.low %v2592_v7, %v2600_v54  ;;  %v5614_v47 = vcombine.high %v2529_v15, %v2537_v41  ;;  %v2585_v4 = vld [vmem:[%s7903_s4 + $0x1e0] sm:$0xff]  ;;  %v2578_v7 = vld [vmem:[%s7903_s4 + $0x1a8] sm:$0xff] }
0x1136   : > { %3495 = vmatprep.mubr.bf16.mxu0 %v7253_v29  ;;  %3538 = vmatprep.mubr.bf16.mxu1 %v7253_v29  ;;  %v5616_v52 = vcombine.high %v2530_v42, %v2538_v43  ;;  %v2586_v54 = vld [vmem:[%s7903_s4 + $0x1e8] sm:$0xff] }
0x1138   : > { %3466 = vmatpush1.bf16.msra.mxu0 %v5625_v53  ;;  %3509 = vmatpush1.bf16.msra.mxu1 %v5627_v21  ;;  %v5613_v53 = vcombine.low %v2529_v15, %v2537_v41  ;;  %v5615_v21 = vcombine.low %v2530_v42, %v2538_v43  ;;  %v2641_v15 = vld [vmem:[%s7903_s4 + $0x3a0] sm:$0xff]  ;;  %v2642_v42 = vld [vmem:[%s7903_s4 + $0x3a8] sm:$0xff] }
0x1139   : > { %3467 = vmatprep.subr.bf16.mxu0 %v5642_v25  ;;  %3510 = vmatprep.subr.bf16.mxu1 %v5644_v57  ;;  %v5630_v25 = vcombine.high %v2545_v55, %v2553_v38  ;;  %v5632_v57 = vcombine.high %v2546_v50, %v2554_v51  ;;  %v2649_v41 = vld [vmem:[%s7903_s4 + $0x3e0] sm:$0xff]  ;;  %v2650_v43 = vld [vmem:[%s7903_s4 + $0x3e8] sm:$0xff] }
0x113c   : > { %3468 = vmatpush1.bf16.msra.mxu0 %v5641_v61  ;;  %3511 = vmatpush1.bf16.msra.mxu1 %v5643_v62  ;;  %v5629_v61 = vcombine.low %v2545_v55, %v2553_v38  ;;  %v5631_v62 = vcombine.low %v2546_v50, %v2554_v51  ;;  %v2531_v55 = vld [vmem:[%s7903_s4 + $0x30] sm:$0xff]  ;;  %v2532_v50 = vld [vmem:[%s7903_s4 + $0x38] sm:$0xff] }
0x113d   : > { %3469 = vmatprep.subr.bf16.mxu0 %v5658_v63  ;;  %3512 = vmatprep.subr.bf16.mxu1 %v5660_v0  ;;  %v5646_v63 = vcombine.high %v2561_v35, %v2569_v58  ;;  %v5648_v0 = vcombine.high %v2562_v59, %v2570_v60  ;;  %v2539_v38 = vld [vmem:[%s7903_s4 + $0x70] sm:$0xff]  ;;  %v2540_v51 = vld [vmem:[%s7903_s4 + $0x78] sm:$0xff] }
0x1140   : > { %3470 = vmatpush1.bf16.msra.mxu0 %v5657_v8  ;;  %3513 = vmatpush1.bf16.msra.mxu1 %v5659_v56  ;;  %v5645_v8 = vcombine.low %v2561_v35, %v2569_v58  ;;  %v5647_v56 = vcombine.low %v2562_v59, %v2570_v60  ;;  %v2547_v35 = vld [vmem:[%s7903_s4 + $0xb0] sm:$0xff]  ;;  %v2548_v59 = vld [vmem:[%s7903_s4 + $0xb8] sm:$0xff] }
0x1141   : > { %3471 = vmatprep.subr.bf16.mxu0 %v5674_v9  ;;  %3514 = vmatprep.subr.bf16.mxu1 %v5676_v40  ;;  %v5662_v9 = vcombine.high %v2577_v1, %v2585_v4  ;;  %v5664_v40 = vcombine.high %v2578_v7, %v2586_v54  ;;  %v2555_v58 = vld [vmem:[%s7903_s4 + $0xf0] sm:$0xff]  ;;  %v2556_v60 = vld [vmem:[%s7903_s4 + $0xf8] sm:$0xff] }
0x1144   : > { %3472 = vmatpush1.bf16.msra.mxu0 %v5673_v13  ;;  %3515 = vmatpush1.bf16.msra.mxu1 %v5675_v14  ;;  %v5661_v13 = vcombine.low %v2577_v1, %v2585_v4  ;;  %v5663_v14 = vcombine.low %v2578_v7, %v2586_v54  ;;  %v2563_v1 = vld [vmem:[%s7903_s4 + $0x130] sm:$0xff]  ;;  %v2564_v7 = vld [vmem:[%s7903_s4 + $0x138] sm:$0xff] }
0x1145   : > { %3473 = vmatprep.subr.bf16.mxu0 %v5690_v16  ;;  %3516 = vmatprep.subr.bf16.mxu1 %v5692_v31  ;;  %v5678_v16 = vcombine.high %v2593_v10, %v2601_v11  ;;  %v5680_v31 = vcombine.high %v2594_v34, %v2602_v12  ;;  %v2571_v4 = vld [vmem:[%s7903_s4 + $0x170] sm:$0xff]  ;;  %v2572_v54 = vld [vmem:[%s7903_s4 + $0x178] sm:$0xff] }
0x1148   : > { %3474 = vmatpush1.bf16.msra.mxu0 %v5689_v20  ;;  %3517 = vmatpush1.bf16.msra.mxu1 %v5691_v22  ;;  %v5677_v20 = vcombine.low %v2593_v10, %v2601_v11  ;;  %v5679_v22 = vcombine.low %v2594_v34, %v2602_v12  ;;  %v2579_v10 = vld [vmem:[%s7903_s4 + $0x1b0] sm:$0xff]  ;;  %v2580_v34 = vld [vmem:[%s7903_s4 + $0x1b8] sm:$0xff] }
0x1149   : > { %3475 = vmatprep.subr.bf16.mxu0 %v5706_v24  ;;  %3518 = vmatprep.subr.bf16.mxu1 %v5708_v33  ;;  %v5694_v24 = vcombine.high %v2609_v18, %v2617_v19  ;;  %v5696_v33 = vcombine.high %v2610_v23, %v2618_v17  ;;  %v2587_v11 = vld [vmem:[%s7903_s4 + $0x1f0] sm:$0xff]  ;;  %v2588_v12 = vld [vmem:[%s7903_s4 + $0x1f8] sm:$0xff] }
0x114c   : > { %3476 = vmatpush1.bf16.msra.mxu0 %v5705_v32  ;;  %3519 = vmatpush1.bf16.msra.mxu1 %v5707_v36  ;;  %v5693_v32 = vcombine.low %v2609_v18, %v2617_v19  ;;  %v5695_v36 = vcombine.low %v2610_v23, %v2618_v17  ;;  %v2595_v18 = vld [vmem:[%s7903_s4 + $0x230] sm:$0xff]  ;;  %v2596_v23 = vld [vmem:[%s7903_s4 + $0x238] sm:$0xff] }
0x114d   : > { %3477 = vmatprep.subr.bf16.mxu0 %v5722_v37  ;;  %3520 = vmatprep.subr.bf16.mxu1 %v5724_v39  ;;  %v5710_v37 = vcombine.high %v2625_v26, %v2633_v27  ;;  %v5712_v39 = vcombine.high %v2626_v28, %v2634_v30  ;;  %v2603_v19 = vld [vmem:[%s7903_s4 + $0x270] sm:$0xff]  ;;  %v2604_v17 = vld [vmem:[%s7903_s4 + $0x278] sm:$0xff] }
0x1150   : > { %3478 = vmatpush1.bf16.msra.mxu0 %v5721_v44  ;;  %3521 = vmatpush1.bf16.msra.mxu1 %v5723_v45  ;;  %v5709_v44 = vcombine.low %v2625_v26, %v2633_v27  ;;  %v5711_v45 = vcombine.low %v2626_v28, %v2634_v30  ;;  %v2619_v26 = vld [vmem:[%s7903_s4 + $0x2f0] sm:$0xff]  ;;  %v2612_v27 = vld [vmem:[%s7903_s4 + $0x2b8] sm:$0xff]  ;;  %v5681_v30 = vcombine.low %v2595_v18, %v2603_v19 }
0x1151   : > { %3549 = vmatprep.subr.bf16.mxu0 %v5614_v47  ;;  %3592 = vmatprep.subr.bf16.mxu1 %v5616_v52  ;;  %v5726_v47 = vcombine.high %v2641_v15, %v2649_v41  ;;  %v5728_v52 = vcombine.high %v2642_v42, %v2650_v43  ;;  %v2620_v28 = vld [vmem:[%s7903_s4 + $0x2f8] sm:$0xff] }
0x1153   : > { %3496 = vmatmul.mubr.bf16.vlgmr.msra.gmra.mrb[48].mxu0 %v8258_v46  ;;  %3539 = vmatmul.mubr.bf16.vlgmr.msra.gmra.mrb[48].mxu1 %v8258_v46 }
0x1154   : > { %3550 = vmatpush1.bf16.msra.mxu0 %v5613_v53  ;;  %3593 = vmatpush1.bf16.msra.mxu1 %v5615_v21  ;;  %v5725_v53 = vcombine.low %v2641_v15, %v2649_v41  ;;  %v5727_v21 = vcombine.low %v2642_v42, %v2650_v43  ;;  %v2635_v15 = vld [vmem:[%s7903_s4 + $0x370] sm:$0xff]  ;;  %v2628_v41 = vld [vmem:[%s7903_s4 + $0x338] sm:$0xff] }
0x1155   : > { %3551 = vmatprep.subr.bf16.mxu0 %v5630_v25  ;;  %3594 = vmatprep.subr.bf16.mxu1 %v5632_v57  ;;  %v5618_v25 = vcombine.high %v2531_v55, %v2539_v38  ;;  %v5620_v57 = vcombine.high %v2532_v50, %v2540_v51  ;;  %v2636_v42 = vld [vmem:[%s7903_s4 + $0x378] sm:$0xff] }
0x1156   : > { %3581 = vmatprep.mubr.bf16.mxu0 %v7253_v29  ;;  %3624 = vmatprep.mubr.bf16.mxu1 %v7253_v29 }
0x1158   : > { %3552 = vmatpush1.bf16.msra.mxu0 %v5629_v61  ;;  %3595 = vmatpush1.bf16.msra.mxu1 %v5631_v62  ;;  %v5617_v61 = vcombine.low %v2531_v55, %v2539_v38  ;;  %v5619_v62 = vcombine.low %v2532_v50, %v2540_v51  ;;  %v2651_v55 = vld [vmem:[%s7903_s4 + $0x3f0] sm:$0xff]  ;;  %v2644_v38 = vld [vmem:[%s7903_s4 + $0x3b8] sm:$0xff] }
0x1159   : > { %3553 = vmatprep.subr.bf16.mxu0 %v5646_v63  ;;  %3596 = vmatprep.subr.bf16.mxu1 %v5648_v0  ;;  %v5634_v63 = vcombine.high %v2547_v35, %v2555_v58  ;;  %v5636_v0 = vcombine.high %v2548_v59, %v2556_v60  ;;  %v2652_v50 = vld [vmem:[%s7903_s4 + $0x3f8] sm:$0xff] }
0x115c   : > { %3554 = vmatpush1.bf16.msra.mxu0 %v5645_v8  ;;  %3597 = vmatpush1.bf16.msra.mxu1 %v5647_v56  ;;  %v5633_v8 = vcombine.low %v2547_v35, %v2555_v58  ;;  %v5635_v56 = vcombine.low %v2548_v59, %v2556_v60  ;;  %v5731_v35 = vcombine.low %v2644_v38, %v2652_v50  ;;  %v6471_v58 = vld [vmem:[%s7907_s27 + $0x40] sm:$0xff]  }
0x115d   : > { %3555 = vmatprep.subr.bf16.mxu0 %v5662_v9  ;;  %3598 = vmatprep.subr.bf16.mxu1 %v5664_v40  ;;  %v5650_v9 = vcombine.high %v2563_v1, %v2571_v4  ;;  %v5652_v40 = vcombine.high %v2564_v7, %v2572_v54  ;;  %v6472_v59 = vld [vmem:[%s7907_s27 + $0xc0] sm:$0xff]  }
0x115e   : > { %v6473_v60 = vld [vmem:[%s7907_s27] sm:$0xff]  }
0x1160   : > { %3556 = vmatpush1.bf16.msra.mxu0 %v5661_v13  ;;  %3599 = vmatpush1.bf16.msra.mxu1 %v5663_v14  ;;  %v5649_v13 = vcombine.low %v2563_v1, %v2571_v4  ;;  %v5651_v14 = vcombine.low %v2564_v7, %v2572_v54  ;;  %v6478_v1 = vld [vmem:[%s7907_s27 + $0x88] sm:$0xff]   ;;  %v6479_v4 = vld [vmem:[%s7907_s27 + $0x50] sm:$0xff]  }
0x1161   : > { %3557 = vmatprep.subr.bf16.mxu0 %v5678_v16  ;;  %3600 = vmatprep.subr.bf16.mxu1 %v5680_v31  ;;  %v5666_v16 = vcombine.high %v2579_v10, %v2587_v11  ;;  %v5668_v31 = vcombine.high %v2580_v34, %v2588_v12  ;;  %v6480_v7 = vld [vmem:[%s7907_s27 + $0xd0] sm:$0xff]  }
0x1162   : > { %v6481_v54 = vld [vmem:[%s7907_s27 + $0x10] sm:$0xff]  }
0x1164   : > { %3558 = vmatpush1.bf16.msra.mxu0 %v5677_v20  ;;  %3601 = vmatpush1.bf16.msra.mxu1 %v5679_v22  ;;  %v5665_v20 = vcombine.low %v2579_v10, %v2587_v11  ;;  %v5682_v22 = vcombine.high %v2595_v18, %v2603_v19  ;;  %v6487_v10 = vld [vmem:[%s7907_s27 + $0x60] sm:$0xff]   ;;  %v6495_v18 = vld [vmem:[%s7907_s27 + $0x70] sm:$0xff]  }
0x1165   : > { %3559 = vmatprep.subr.bf16.mxu0 %v5694_v24  ;;  %3602 = vmatprep.subr.bf16.mxu1 %v5696_v33  ;;  %v5684_v24 = vcombine.high %v2596_v23, %v2604_v17  ;;  %v2611_v33 = vld [vmem:[%s7903_s4 + $0x2b0] sm:$0xff]  ;;  %v6488_v11 = vld [vmem:[%s7907_s27 + $0xe0] sm:$0xff]  }
0x1166   : > { %v5697_v43 = vcombine.low %v2611_v33, %v2619_v26  ;;  %v6496_v19 = vld [vmem:[%s7907_s27 + $0xf0] sm:$0xff]  }
0x1168   : > { %3560 = vmatpush1.bf16.msra.mxu0 %v5693_v32  ;;  %3603 = vmatpush1.bf16.msra.mxu1 %v5695_v36  ;;  %v5683_v32 = vcombine.low %v2596_v23, %v2604_v17  ;;  %v5698_v36 = vcombine.high %v2611_v33, %v2619_v26  ;;  %v6497_v23 = vld [vmem:[%s7907_s27 + $0x30] sm:$0xff]   ;;  %v6503_v33 = vld [vmem:[%s7907_s27 + $0x140] sm:$0xff]  }
0x1169   : > { %3561 = vmatprep.subr.bf16.mxu0 %v5710_v37  ;;  %3604 = vmatprep.subr.bf16.mxu1 %v5712_v39  ;;  %v5700_v37 = vcombine.high %v2612_v27, %v2620_v28  ;;  %v2627_v39 = vld [vmem:[%s7903_s4 + $0x330] sm:$0xff]  ;;  %v6504_v26 = vld [vmem:[%s7907_s27 + $0x1c0] sm:$0xff]  }
0x116a   : > { %v5713_v51 = vcombine.low %v2627_v39, %v2635_v15  ;;  %v6498_v17 = vld [vmem:[%s7907_s27 + $0xb0] sm:$0xff]  }
0x116c   : > { %3562 = vmatpush1.bf16.msra.mxu0 %v5709_v44  ;;  %3605 = vmatpush1.bf16.msra.mxu1 %v5711_v45  ;;  %v5699_v44 = vcombine.low %v2612_v27, %v2620_v28  ;;  %v5714_v45 = vcombine.high %v2627_v39, %v2635_v15  ;;  %v8397_v27 = vld [vmem:[%s7905_s15] sm:$0xff]  ;;  %v2671_v28 = vsub.s32 3, %v7974_v2 }
0x116d   : > { %3563 = vmatprep.subr.bf16.mxu0 %v5726_v47  ;;  %3606 = vmatprep.subr.bf16.mxu1 %v5728_v52  ;;  %v5716_v47 = vcombine.high %v2628_v41, %v2636_v42  ;;  %v2643_v52 = vld [vmem:[%s7903_s4 + $0x3b0] sm:$0xff] }
0x1170   : > { %3564 = vmatpush1.bf16.msra.mxu0 %v5725_v53  ;;  %3607 = vmatpush1.bf16.msra.mxu1 %v5727_v21  ;;  %v5715_v53 = vcombine.low %v2628_v41, %v2636_v42  ;;  %v5730_v21 = vcombine.high %v2643_v52, %v2651_v55 }
0x1171   : > { %3635 = vmatprep.subr.bf16.mxu0 %v5618_v25  ;;  %3678 = vmatprep.subr.bf16.mxu1 %v5620_v57  ;;  %v5732_v25 = vcombine.high %v2644_v38, %v2652_v50  ;;  %v5729_v57 = vcombine.low %v2643_v52, %v2651_v55 }
0x1173   : > { %3582 = vmatmul.mubr.bf16.vlgmr.msra.gmra.mrb[52].mxu0 %v8258_v46  ;;  %3625 = vmatmul.mubr.bf16.vlgmr.msra.gmra.mrb[52].mxu1 %v8258_v46 }
0x1174   : > { %3636 = vmatpush1.bf16.msra.mxu0 %v5617_v61  ;;  %3679 = vmatpush1.bf16.msra.mxu1 %v5619_v62  ;;  %v6474_v61 = vld [vmem:[%s7907_s27 + $0x80] sm:$0xff]   ;;  %v6475_v62 = vld [vmem:[%s7907_s27 + $0x48] sm:$0xff]  }
0x1175   : > { %3637 = vmatprep.subr.bf16.mxu0 %v5634_v63  ;;  %3680 = vmatprep.subr.bf16.mxu1 %v5636_v0  ;;  %v6476_v63 = vld [vmem:[%s7907_s27 + $0xc8] sm:$0xff]  }
0x1176   : > { %3667 = vmatprep.mubr.bf16.mxu0 %v7253_v29  ;;  %3710 = vmatprep.mubr.bf16.mxu1 %v7253_v29  ;;  %v5667_v29 = vcombine.low %v2580_v34, %v2588_v12  ;;  %v6477_v0 = vld [vmem:[%s7907_s27 + $0x8] sm:$0xff]   ;;  %v6489_v34 = vld [vmem:[%s7907_s27 + $0x20] sm:$0xff]  }
0x1177   : > { %v6490_v12 = vld [vmem:[%s7907_s27 + $0xa0] sm:$0xff]  }
0x1178   : > { %3638 = vmatpush1.bf16.msra.mxu0 %v5633_v8  ;;  %3681 = vmatpush1.bf16.msra.mxu1 %v5635_v56  ;;  %v6482_v8 = vld [vmem:[%s7907_s27 + $0x90] sm:$0xff]   ;;  %v6484_v56 = vld [vmem:[%s7907_s27 + $0xd8] sm:$0xff]  }
0x1179   : > { %3639 = vmatprep.subr.bf16.mxu0 %v5650_v9  ;;  %3682 = vmatprep.subr.bf16.mxu1 %v5652_v40  ;;  %v6485_v9 = vld [vmem:[%s7907_s27 + $0x18] sm:$0xff]  }
0x117a   : > { %v6486_v40 = vld [vmem:[%s7907_s27 + $0x98] sm:$0xff]  }
0x117c   : > { %3640 = vmatpush1.bf16.msra.mxu0 %v5649_v13  ;;  %3683 = vmatpush1.bf16.msra.mxu1 %v5651_v14  ;;  %v6491_v13 = vld [vmem:[%s7907_s27 + $0x68] sm:$0xff]  }
0x117d   : > { %3641 = vmatprep.subr.bf16.mxu0 %v5666_v16  ;;  %3684 = vmatprep.subr.bf16.mxu1 %v5668_v31  ;;  %v6492_v14 = vld [vmem:[%s7907_s27 + $0xe8] sm:$0xff]  }
0x117e   : > { %v6493_v16 = vld [vmem:[%s7907_s27 + $0x28] sm:$0xff]  }
0x117f   : > { %v6494_v31 = vld [vmem:[%s7907_s27 + $0xa8] sm:$0xff]  }
0x1180   : > { %3642 = vmatpush1.bf16.msra.mxu0 %v5665_v20  ;;  %3685 = vmatpush1.bf16.msra.mxu1 %v5667_v29  ;;  %v6499_v20 = vld [vmem:[%s7907_s27 + $0x78] sm:$0xff]  }
0x1181   : > { %3643 = vmatprep.subr.bf16.mxu0 %v5682_v22  ;;  %3686 = vmatprep.subr.bf16.mxu1 %v5684_v24  ;;  %v6500_v29 = vld [vmem:[%s7907_s27 + $0xf8] sm:$0xff]  }
0x1182   : > { %v6501_v22 = vld [vmem:[%s7907_s27 + $0x38] sm:$0xff]  }
0x1183   : > { %v6502_v24 = vld [vmem:[%s7907_s27 + $0xb8] sm:$0xff]  }
0x1184   : > { %3644 = vmatpush1.bf16.msra.mxu0 %v5681_v30  ;;  %3687 = vmatpush1.bf16.msra.mxu1 %v5683_v32  ;;  %v2660_v30 = vrot.slane %v8397_v27, %v7981_v5  ;;  %v2668_v32 = vrot.slane %v8397_v27, %v7984_v6 }
0x1185   : > { %3645 = vmatprep.subr.bf16.mxu0 %v5698_v36  ;;  %3688 = vmatprep.subr.bf16.mxu1 %v5700_v37  ;;  %v2664_v36 = vrot.slane %v8397_v27, %v7977_v3  ;;  %v2672_v37 = vrot.slane %v8397_v27, %v2671_v28 }
0x1188   : > { %3646 = vmatpush1.bf16.msra.mxu0 %v5697_v43  ;;  %3689 = vmatpush1.bf16.msra.mxu1 %v5699_v44 }
0x1189   : > { %3647 = vmatprep.subr.bf16.mxu0 %v5714_v45  ;;  %3690 = vmatprep.subr.bf16.mxu1 %v5716_v47 }
0x118c   : > { %3648 = vmatpush1.bf16.msra.mxu0 %v5713_v51  ;;  %3691 = vmatpush1.bf16.msra.mxu1 %v5715_v53 }
0x118d   : > { %3649 = vmatprep.subr.bf16.mxu0 %v5730_v21  ;;  %3692 = vmatprep.subr.bf16.mxu1 %v5732_v25 }
0x1190   : > { %3650 = vmatpush1.bf16.msra.mxu0 %v5729_v57  ;;  %3693 = vmatpush1.bf16.msra.mxu1 %v5731_v35 }
0x1191   : > { %5926 = vmatprep.subr.bf16.mxu0 %v6471_v58  ;;  %5948 = vmatprep.subr.bf16.mxu1 %v6472_v59 }
0x1193   : > { %3668 = vmatmul.mubr.bf16.vlgmr.msra.gmra.mrb[56].mxu0 %v8258_v46  ;;  %3711 = vmatmul.mubr.bf16.vlgmr.msra.gmra.mrb[56].mxu1 %v8258_v46  ;;  %v6483_v46 = vld [vmem:[%s7907_s27 + $0x58] sm:$0xff]  }
0x1194   : > { %5927 = vmatpush3.bf16.msra.mxu0 %v6473_v60  ;;  %5949 = vmatpush3.bf16.msra.mxu1 %v6474_v61 }
0x1195   : > { %5928 = vmatprep.subr.bf16.mxu0 %v6475_v62  ;;  %5950 = vmatprep.subr.bf16.mxu1 %v6476_v63 }
0x1198   : > { %5929 = vmatpush3.bf16.msra.mxu0 %v6477_v0  ;;  %5951 = vmatpush3.bf16.msra.mxu1 %v6478_v1 }
0x1199   : > { %5930 = vmatprep.subr.bf16.mxu0 %v6479_v4  ;;  %5952 = vmatprep.subr.bf16.mxu1 %v6480_v7 }
0x119c   : > { %5931 = vmatpush3.bf16.msra.mxu0 %v6481_v54  ;;  %5953 = vmatpush3.bf16.msra.mxu1 %v6482_v8  ;;  %v6505_v54 = vld [vmem:[%s7907_s27 + $0x100] sm:$0xff]  }
0x119d   : > { %5932 = vmatprep.subr.bf16.mxu0 %v6483_v46  ;;  %5954 = vmatprep.subr.bf16.mxu1 %v6484_v56  ;;  %v6506_v8 = vld [vmem:[%s7907_s27 + $0x180] sm:$0xff]   ;;  %v6507_v46 = vld [vmem:[%s7907_s27 + $0x148] sm:$0xff]  }
0x119e   : > { %v6508_v56 = vld [vmem:[%s7907_s27 + $0x1c8] sm:$0xff]  }
0x11a0   : > { %5933 = vmatpush3.bf16.msra.mxu0 %v6485_v9  ;;  %5955 = vmatpush3.bf16.msra.mxu1 %v6486_v40  ;;  %v6509_v9 = vld [vmem:[%s7907_s27 + $0x108] sm:$0xff]  }
0x11a1   : > { %5934 = vmatprep.subr.bf16.mxu0 %v6487_v10  ;;  %5956 = vmatprep.subr.bf16.mxu1 %v6488_v11  ;;  %v6510_v40 = vld [vmem:[%s7907_s27 + $0x188] sm:$0xff]   ;;  %v6511_v10 = vld [vmem:[%s7907_s27 + $0x150] sm:$0xff]  }
0x11a2   : > { %v6512_v11 = vld [vmem:[%s7907_s27 + $0x1d0] sm:$0xff]  }
0x11a4   : > { %5935 = vmatpush3.bf16.msra.mxu0 %v6489_v34  ;;  %5957 = vmatpush3.bf16.msra.mxu1 %v6490_v12  ;;  %v6513_v34 = vld [vmem:[%s7907_s27 + $0x110] sm:$0xff]  }
0x11a5   : > { %5936 = vmatprep.subr.bf16.mxu0 %v6491_v13  ;;  %5958 = vmatprep.subr.bf16.mxu1 %v6492_v14  ;;  %v6514_v12 = vld [vmem:[%s7907_s27 + $0x190] sm:$0xff]   ;;  %v6515_v13 = vld [vmem:[%s7907_s27 + $0x158] sm:$0xff]  }
0x11a6   : > { %v6516_v14 = vld [vmem:[%s7907_s27 + $0x1d8] sm:$0xff]  }
0x11a8   : > { %5937 = vmatpush3.bf16.msra.mxu0 %v6493_v16  ;;  %5959 = vmatpush3.bf16.msra.mxu1 %v6494_v31  ;;  %v6517_v16 = vld [vmem:[%s7907_s27 + $0x118] sm:$0xff]  }
0x11a9   : > { %5938 = vmatprep.subr.bf16.mxu0 %v6495_v18  ;;  %5960 = vmatprep.subr.bf16.mxu1 %v6496_v19  ;;  %v6518_v31 = vld [vmem:[%s7907_s27 + $0x198] sm:$0xff]   ;;  %v6519_v18 = vld [vmem:[%s7907_s27 + $0x160] sm:$0xff]  }
0x11aa   : > { %v6520_v19 = vld [vmem:[%s7907_s27 + $0x1e0] sm:$0xff]  }
0x11ac   : > { %5939 = vmatpush3.bf16.msra.mxu0 %v6497_v23  ;;  %5961 = vmatpush3.bf16.msra.mxu1 %v6498_v17  ;;  %v6521_v23 = vld [vmem:[%s7907_s27 + $0x120] sm:$0xff]  }
0x11ad   : > { %5940 = vmatprep.subr.bf16.mxu0 %v6499_v20  ;;  %5962 = vmatprep.subr.bf16.mxu1 %v6500_v29  ;;  %v6522_v17 = vld [vmem:[%s7907_s27 + $0x1a0] sm:$0xff]   ;;  %v6523_v20 = vld [vmem:[%s7907_s27 + $0x168] sm:$0xff]  }
0x11ae   : > { %v6524_v29 = vld [vmem:[%s7907_s27 + $0x1e8] sm:$0xff]  }
0x11b0   : > { %5941 = vmatpush3.bf16.msra.mxu0 %v6501_v22  ;;  %5963 = vmatpush3.bf16.msra.mxu1 %v6502_v24  ;;  %v2675_v22 = vsub.s32 4, %v7974_v2  ;;  %v2683_v24 = vsub.s32 6, %v7974_v2 }
0x11b1   : > { %5970 = vmatprep.subr.bf16.mxu0 %v6503_v33  ;;  %5992 = vmatprep.subr.bf16.mxu1 %v6504_v26  ;;  %v2679_v33 = vsub.s32 5, %v7974_v2  ;;  %v2687_v26 = vsub.s32 7, %v7974_v2 }
0x1206   : > { %v3411_v39 = vpop.f32.mrb[44].mxu0  ;;  %v3454_v15 = vpop.f32.mrb[44].mxu1 }
0x1207   : > { %v3412_v41 = vadd.f32 %v3411_v39, %v2660_v30  ;;  %v3455_v42 = vadd.f32 %v3454_v15, %v2668_v32  ;;  %v3413_v43 = vpop.f32.mrb[45].mxu0  ;;  %v3456_v44 = vpop.f32.mrb[45].mxu1  ;;  %v6527_v39 = vld [vmem:[%s7907_s27 + $0x170] sm:$0xff]  }
0x1208   : > { %v3414_v45 = vadd.f32 %v3413_v43, %v2664_v36  ;;  %v3457_v47 = vadd.f32 %v3456_v44, %v2672_v37  ;;  %v3415_v52 = vpop.f32.mrb[46].mxu0  ;;  %v3458_v55 = vpop.f32.mrb[46].mxu1  ;;  %v6528_v15 = vld [vmem:[%s7907_s27 + $0x1f0] sm:$0xff]  }
0x1209   : > { %v3416_v38 = vadd.f32 %v3415_v52, %v2660_v30  ;;  %v3459_v50 = vadd.f32 %v3458_v55, %v2668_v32  ;;  %v3417_v51 = vpop.f32.mrb[47].mxu0  ;;  %v3460_v53 = vpop.f32.mrb[47].mxu1  ;;  %v3721_v57 = vmax.f32 %v3412_v41, 0.0  ;;  %v3723_v35 = vmax.f32 %v3455_v42, 0.0  ;;  %v6525_v30 = vld [vmem:[%s7907_s27 + $0x128] sm:$0xff]  }
0x120a   : > { %v3418_v21 = vadd.f32 %v3417_v51, %v2664_v36  ;;  %v3461_v25 = vadd.f32 %v3460_v53, %v2672_v37  ;;  %v3722_v60 = vmax.f32 %v3414_v45, 0.0  ;;  %v3724_v61 = vmax.f32 %v3457_v47, 0.0  ;;  %v6526_v32 = vld [vmem:[%s7907_s27 + $0x1a8] sm:$0xff]   ;;  %v6529_v45 = vld [vmem:[%s7907_s27 + $0x130] sm:$0xff]   ;;  %v6531_v51 = vld [vmem:[%s7907_s27 + $0x178] sm:$0xff]  }
0x120b   : > { %v3737_v58 = vmax.f32 %v3416_v38, 0.0  ;;  %v3739_v59 = vmax.f32 %v3459_v50, 0.0  ;;  %v2676_v36 = vrot.slane %v8397_v27, %v2675_v22  ;;  %v2684_v37 = vrot.slane %v8397_v27, %v2683_v24  ;;  %v6530_v47 = vld [vmem:[%s7907_s27 + $0x1b0] sm:$0xff]   ;;  %v6532_v53 = vld [vmem:[%s7907_s27 + $0x1f8] sm:$0xff]  }
0x120c   : > { %v3738_v62 = vmax.f32 %v3418_v21, 0.0  ;;  %v3740_v63 = vmax.f32 %v3461_v25, 0.0  ;;  %v2680_v41 = vrot.slane %v8397_v27, %v2679_v33  ;;  %v2688_v42 = vrot.slane %v8397_v27, %v2687_v26 }
0x120d   : > { %v3753_v0 = vpack.c.bf16 %v3737_v58, %v3721_v57  ;;  %v3755_v1 = vpack.c.bf16 %v3739_v59, %v3723_v35 }
0x120e   : > { %v3754_v4 = vpack.c.bf16 %v3738_v62, %v3722_v60  ;;  %v3756_v7 = vpack.c.bf16 %v3740_v63, %v3724_v61  ;;  %v6533_v63 = vld [vmem:[%s7907_s27 + $0x138] sm:$0xff]  }
0x1210   : > { %4832 = vmatprep.mubr.bf16.mxu0 %v3754_v4  ;;  %4873 = vmatprep.mubr.bf16.mxu1 %v3756_v7 }
0x1211   : > { %4833 = vmatmul.mubr.bf16.vlgmr.msra.gmra.mrb[60].mxu0 %v3753_v0  ;;  %4874 = vmatmul.mubr.bf16.vlgmr.msra.gmra.mrb[60].mxu1 %v3755_v1  ;;  %v6534_v0 = vld [vmem:[%s7907_s27 + $0x1b8] sm:$0xff]  }
0x1212   : > { %5971 = vmatpush3.bf16.msra.mxu0 %v6505_v54  ;;  %5993 = vmatpush3.bf16.msra.mxu1 %v6506_v8  ;;  %v6535_v8 = vld [vmem:[%s7907_s27 + $0x240] sm:$0xff]  }
0x1213   : > { %5972 = vmatprep.subr.bf16.mxu0 %v6507_v46  ;;  %5994 = vmatprep.subr.bf16.mxu1 %v6508_v56  ;;  %v6536_v46 = vld [vmem:[%s7907_s27 + $0x2c0] sm:$0xff]  }
0x1216   : > { %5973 = vmatpush3.bf16.msra.mxu0 %v6509_v9  ;;  %5995 = vmatpush3.bf16.msra.mxu1 %v6510_v40 }
0x1217   : > { %5974 = vmatprep.subr.bf16.mxu0 %v6511_v10  ;;  %5996 = vmatprep.subr.bf16.mxu1 %v6512_v11 }
0x121a   : > { %5975 = vmatpush3.bf16.msra.mxu0 %v6513_v34  ;;  %5997 = vmatpush3.bf16.msra.mxu1 %v6514_v12 }
0x121b   : > { %5976 = vmatprep.subr.bf16.mxu0 %v6515_v13  ;;  %5998 = vmatprep.subr.bf16.mxu1 %v6516_v14  ;;  %v6537_v14 = vld [vmem:[%s7907_s27 + $0x200] sm:$0xff]  }
0x121e   : > { %5977 = vmatpush3.bf16.msra.mxu0 %v6517_v16  ;;  %5999 = vmatpush3.bf16.msra.mxu1 %v6518_v31  ;;  %v6538_v16 = vld [vmem:[%s7907_s27 + $0x280] sm:$0xff]   ;;  %v6539_v31 = vld [vmem:[%s7907_s27 + $0x248] sm:$0xff]  }
0x121f   : > { %5978 = vmatprep.subr.bf16.mxu0 %v6519_v18  ;;  %6000 = vmatprep.subr.bf16.mxu1 %v6520_v19  ;;  %v6540_v18 = vld [vmem:[%s7907_s27 + $0x2c8] sm:$0xff]  }
0x1220   : > { %v6541_v19 = vld [vmem:[%s7907_s27 + $0x208] sm:$0xff]  }
0x1222   : > { %5979 = vmatpush3.bf16.msra.mxu0 %v6521_v23  ;;  %6001 = vmatpush3.bf16.msra.mxu1 %v6522_v17  ;;  %v6542_v23 = vld [vmem:[%s7907_s27 + $0x288] sm:$0xff]   ;;  %v6543_v17 = vld [vmem:[%s7907_s27 + $0x250] sm:$0xff]  }
0x1223   : > { %5980 = vmatprep.subr.bf16.mxu0 %v6523_v20  ;;  %6002 = vmatprep.subr.bf16.mxu1 %v6524_v29  ;;  %v6544_v20 = vld [vmem:[%s7907_s27 + $0x2d0] sm:$0xff]  }
0x1224   : > { %v6545_v29 = vld [vmem:[%s7907_s27 + $0x210] sm:$0xff]  }
0x1226   : > { %v3497_v43 = vpop.f32.mrb[48].mxu0  ;;  %v3540_v44 = vpop.f32.mrb[48].mxu1  ;;  %5981 = vmatpush3.bf16.msra.mxu0 %v6525_v30  ;;  %6003 = vmatpush3.bf16.msra.mxu1 %v6526_v32  ;;  %v6546_v30 = vld [vmem:[%s7907_s27 + $0x290] sm:$0xff]   ;;  %v6547_v32 = vld [vmem:[%s7907_s27 + $0x258] sm:$0xff]  }
0x1227   : > { %v3498_v52 = vadd.f32 %v3497_v43, %v2676_v36  ;;  %v3541_v55 = vadd.f32 %v3540_v44, %v2684_v37  ;;  %v3499_v38 = vpop.f32.mrb[49].mxu0  ;;  %v3542_v50 = vpop.f32.mrb[49].mxu1  ;;  %5982 = vmatprep.subr.bf16.mxu0 %v6527_v39  ;;  %6004 = vmatprep.subr.bf16.mxu1 %v6528_v15  ;;  %v6550_v39 = vld [vmem:[%s7907_s27 + $0x298] sm:$0xff]   ;;  %v6551_v15 = vld [vmem:[%s7907_s27 + $0x260] sm:$0xff]   ;;  %v6555_v44 = vld [vmem:[%s7907_s27 + $0x268] sm:$0xff]  }
0x1228   : > { %v3500_v21 = vadd.f32 %v3499_v38, %v2680_v41  ;;  %v3543_v25 = vadd.f32 %v3542_v50, %v2688_v42  ;;  %v3501_v57 = vpop.f32.mrb[50].mxu0  ;;  %v3544_v27 = vpop.f32.mrb[50].mxu1  ;;  %v6554_v43 = vld [vmem:[%s7907_s27 + $0x2a0] sm:$0xff]  }
0x1229   : > { %v3502_v35 = vadd.f32 %v3501_v57, %v2676_v36  ;;  %v3545_v58 = vadd.f32 %v3544_v27, %v2684_v37  ;;  %v3503_v59 = vpop.f32.mrb[51].mxu0  ;;  %v3546_v60 = vpop.f32.mrb[51].mxu1  ;;  %v3725_v1 = vmax.f32 %v3498_v52, 0.0  ;;  %v3727_v4 = vmax.f32 %v3541_v55, 0.0  ;;  %v6548_v36 = vld [vmem:[%s7907_s27 + $0x2d8] sm:$0xff]   ;;  %v6557_v52 = vld [vmem:[%s7907_s27 + $0x228] sm:$0xff]  }
0x122a   : > { %v3504_v61 = vadd.f32 %v3503_v59, %v2680_v41  ;;  %v3547_v62 = vadd.f32 %v3546_v60, %v2688_v42  ;;  %5983 = vmatpush3.bf16.msra.mxu0 %v6529_v45  ;;  %6005 = vmatpush3.bf16.msra.mxu1 %v6530_v47  ;;  %v3726_v56 = vmax.f32 %v3500_v21, 0.0  ;;  %v3728_v9 = vmax.f32 %v3543_v25, 0.0  ;;  %v6549_v37 = vld [vmem:[%s7907_s27 + $0x218] sm:$0xff]   ;;  %v6552_v41 = vld [vmem:[%s7907_s27 + $0x2e0] sm:$0xff]   ;;  %v6556_v45 = vld [vmem:[%s7907_s27 + $0x2e8] sm:$0xff]  }
0x122b   : > { %v3741_v7 = vmax.f32 %v3502_v35, 0.0  ;;  %v3743_v54 = vmax.f32 %v3545_v58, 0.0  ;;  %5984 = vmatprep.subr.bf16.mxu0 %v6531_v51  ;;  %6006 = vmatprep.subr.bf16.mxu1 %v6532_v53  ;;  %v6553_v42 = vld [vmem:[%s7907_s27 + $0x220] sm:$0xff]   ;;  %v8478_v47 = vld [vmem:[%s7905_s15 + $0x8] sm:$0xff]  ;;  %v6559_v51 = vld [vmem:[%s7907_s27 + $0x270] sm:$0xff]  }
0x122c   : > { %v3742_v40 = vmax.f32 %v3504_v61, 0.0  ;;  %v3744_v10 = vmax.f32 %v3547_v62, 0.0  ;;  %v6558_v55 = vld [vmem:[%s7907_s27 + $0x2a8] sm:$0xff]   ;;  %v2692_v38 = vrot.slane %v8478_v47, %v7981_v5  ;;  %v2700_v50 = vrot.slane %v8478_v47, %v7984_v6  ;;  %v6560_v53 = vld [vmem:[%s7907_s27 + $0x2f0] sm:$0xff]   ;;  %v6563_v61 = vld [vmem:[%s7907_s27 + $0x278] sm:$0xff]  }
0x122d   : > { %v3757_v11 = vpack.c.bf16 %v3741_v7, %v3725_v1  ;;  %v3759_v34 = vpack.c.bf16 %v3743_v54, %v3727_v4  ;;  %v2696_v21 = vrot.slane %v8478_v47, %v7977_v3  ;;  %v2704_v25 = vrot.slane %v8478_v47, %v2671_v28  ;;  %v6561_v35 = vld [vmem:[%s7907_s27 + $0x230] sm:$0xff]   ;;  %v6564_v3 = vld [vmem:[%s7907_s27 + $0x2f8] sm:$0xff]  }
0x122e   : > { %v3758_v12 = vpack.c.bf16 %v3742_v40, %v3726_v56  ;;  %v3760_v13 = vpack.c.bf16 %v3744_v10, %v3728_v9  ;;  %5985 = vmatpush3.bf16.msra.mxu0 %v6533_v63  ;;  %6007 = vmatpush3.bf16.msra.mxu1 %v6534_v0  ;;  %v6562_v5 = vld [vmem:[%s7907_s27 + $0x2b0] sm:$0xff]   ;;  %v6565_v56 = vld [vmem:[%s7907_s27 + $0x238] sm:$0xff]  }
0x122f   : > { %6014 = vmatprep.subr.bf16.mxu0 %v6535_v8  ;;  %6036 = vmatprep.subr.bf16.mxu1 %v6536_v46  ;;  %v6566_v9 = vld [vmem:[%s7907_s27 + $0x2b8] sm:$0xff]  }
0x1230   : > { %4914 = vmatprep.mubr.bf16.mxu0 %v3758_v12  ;;  %4955 = vmatprep.mubr.bf16.mxu1 %v3760_v13  ;;  %v6567_v12 = vld [vmem:[%s7907_s27 + $0x340] sm:$0xff]  }
0x1231   : > { %4915 = vmatmul.mubr.bf16.vlgmr.msra.gmra.mrb[64].mxu0 %v3757_v11  ;;  %4956 = vmatmul.mubr.bf16.vlgmr.msra.gmra.mrb[64].mxu1 %v3759_v34  ;;  %v6568_v13 = vld [vmem:[%s7907_s27 + $0x3c0] sm:$0xff]  }
0x1232   : > { %6015 = vmatpush3.bf16.msra.mxu0 %v6537_v14  ;;  %6037 = vmatpush3.bf16.msra.mxu1 %v6538_v16 }
0x1233   : > { %6016 = vmatprep.subr.bf16.mxu0 %v6539_v31  ;;  %6038 = vmatprep.subr.bf16.mxu1 %v6540_v18 }
0x1236   : > { %6017 = vmatpush3.bf16.msra.mxu0 %v6541_v19  ;;  %6039 = vmatpush3.bf16.msra.mxu1 %v6542_v23 }
0x1237   : > { %6018 = vmatprep.subr.bf16.mxu0 %v6543_v17  ;;  %6040 = vmatprep.subr.bf16.mxu1 %v6544_v20 }
0x123a   : > { %6019 = vmatpush3.bf16.msra.mxu0 %v6545_v29  ;;  %6041 = vmatpush3.bf16.msra.mxu1 %v6546_v30  ;;  %v6569_v29 = vld [vmem:[%s7907_s27 + $0x300] sm:$0xff]  }
0x123b   : > { %6020 = vmatprep.subr.bf16.mxu0 %v6547_v32  ;;  %6042 = vmatprep.subr.bf16.mxu1 %v6548_v36  ;;  %v6570_v30 = vld [vmem:[%s7907_s27 + $0x380] sm:$0xff]   ;;  %v6571_v32 = vld [vmem:[%s7907_s27 + $0x348] sm:$0xff]  }
0x123c   : > { %v6572_v36 = vld [vmem:[%s7907_s27 + $0x3c8] sm:$0xff]  }
0x123e   : > { %6021 = vmatpush3.bf16.msra.mxu0 %v6549_v37  ;;  %6043 = vmatpush3.bf16.msra.mxu1 %v6550_v39  ;;  %v6573_v37 = vld [vmem:[%s7907_s27 + $0x308] sm:$0xff]  }
0x123f   : > { %6022 = vmatprep.subr.bf16.mxu0 %v6551_v15  ;;  %6044 = vmatprep.subr.bf16.mxu1 %v6552_v41  ;;  %v6574_v39 = vld [vmem:[%s7907_s27 + $0x388] sm:$0xff]   ;;  %v6575_v15 = vld [vmem:[%s7907_s27 + $0x350] sm:$0xff]  }
0x1240   : > { %v6576_v41 = vld [vmem:[%s7907_s27 + $0x3d0] sm:$0xff]  }
0x1242   : > { %6023 = vmatpush3.bf16.msra.mxu0 %v6553_v42  ;;  %6045 = vmatpush3.bf16.msra.mxu1 %v6554_v43  ;;  %v6577_v42 = vld [vmem:[%s7907_s27 + $0x310] sm:$0xff]  }
0x1243   : > { %6024 = vmatprep.subr.bf16.mxu0 %v6555_v44  ;;  %6046 = vmatprep.subr.bf16.mxu1 %v6556_v45  ;;  %v6578_v43 = vld [vmem:[%s7907_s27 + $0x390] sm:$0xff]   ;;  %v6579_v44 = vld [vmem:[%s7907_s27 + $0x358] sm:$0xff]  }
0x1244   : > { %v6580_v45 = vld [vmem:[%s7907_s27 + $0x3d8] sm:$0xff]  }
0x1246   : > { %v3583_v57 = vpop.f32.mrb[52].mxu0  ;;  %v3626_v27 = vpop.f32.mrb[52].mxu1  ;;  %6025 = vmatpush3.bf16.msra.mxu0 %v6557_v52  ;;  %6047 = vmatpush3.bf16.msra.mxu1 %v6558_v55  ;;  %v6581_v52 = vld [vmem:[%s7907_s27 + $0x318] sm:$0xff]  }
0x1247   : > { %v3584_v58 = vadd.f32 %v3583_v57, %v2692_v38  ;;  %v3627_v59 = vadd.f32 %v3626_v27, %v2700_v50  ;;  %v3585_v6 = vpop.f32.mrb[53].mxu0  ;;  %v3628_v60 = vpop.f32.mrb[53].mxu1  ;;  %6026 = vmatprep.subr.bf16.mxu0 %v6559_v51  ;;  %6048 = vmatprep.subr.bf16.mxu1 %v6560_v53  ;;  %v6582_v55 = vld [vmem:[%s7907_s27 + $0x398] sm:$0xff]   ;;  %v6585_v51 = vld [vmem:[%s7907_s27 + $0x320] sm:$0xff]   ;;  %v6589_v57 = vld [vmem:[%s7907_s27 + $0x328] sm:$0xff]  }
0x1248   : > { %v3586_v62 = vadd.f32 %v3585_v6, %v2696_v21  ;;  %v3629_v63 = vadd.f32 %v3628_v60, %v2704_v25  ;;  %v3587_v0 = vpop.f32.mrb[54].mxu0  ;;  %v3630_v28 = vpop.f32.mrb[54].mxu1  ;;  %v6586_v53 = vld [vmem:[%s7907_s27 + $0x3a0] sm:$0xff]   ;;  %v6590_v27 = vld [vmem:[%s7907_s27 + $0x3a8] sm:$0xff]   ;;  %v2712_v6 = vrot.slane %v8478_v47, %v2679_v33  ;;  %v2720_v60 = vrot.slane %v8478_v47, %v2687_v26  ;;  %v6596_v33 = vld [vmem:[%s7907_s27 + $0x3f8] sm:$0xff]  }
0x1249   : > { %v3588_v1 = vadd.f32 %v3587_v0, %v2692_v38  ;;  %v3631_v4 = vadd.f32 %v3630_v28, %v2700_v50  ;;  %v3589_v7 = vpop.f32.mrb[55].mxu0  ;;  %v3632_v54 = vpop.f32.mrb[55].mxu1  ;;  %v3729_v40 = vmax.f32 %v3584_v58, 0.0  ;;  %v3731_v10 = vmax.f32 %v3627_v59, 0.0  ;;  %v6583_v38 = vld [vmem:[%s7907_s27 + $0x360] sm:$0xff]   ;;  %v6591_v58 = vld [vmem:[%s7907_s27 + $0x370] sm:$0xff]  }
0x124a   : > { %v3590_v8 = vadd.f32 %v3589_v7, %v2696_v21  ;;  %v3633_v46 = vadd.f32 %v3632_v54, %v2704_v25  ;;  %6027 = vmatpush3.bf16.msra.mxu0 %v6561_v35  ;;  %6049 = vmatpush3.bf16.msra.mxu1 %v6562_v5  ;;  %v3730_v14 = vmax.f32 %v3586_v62, 0.0  ;;  %v3732_v16 = vmax.f32 %v3629_v63, 0.0  ;;  %v6584_v50 = vld [vmem:[%s7907_s27 + $0x3e0] sm:$0xff]   ;;  %v6587_v21 = vld [vmem:[%s7907_s27 + $0x368] sm:$0xff]   ;;  %v6592_v59 = vld [vmem:[%s7907_s27 + $0x3f0] sm:$0xff]  }
0x124b   : > { %v3745_v11 = vmax.f32 %v3588_v1, 0.0  ;;  %v3747_v34 = vmax.f32 %v3631_v4, 0.0  ;;  %6028 = vmatprep.subr.bf16.mxu0 %v6563_v61  ;;  %6050 = vmatprep.subr.bf16.mxu1 %v6564_v3  ;;  %v6588_v25 = vld [vmem:[%s7907_s27 + $0x3e8] sm:$0xff]   ;;  %v2708_v35 = vrot.slane %v8478_v47, %v2675_v22  ;;  %v2716_v5 = vrot.slane %v8478_v47, %v2683_v24  ;;  %v6593_v22 = vld [vmem:[%s7907_s27 + $0x330] sm:$0xff]   ;;  %v6595_v1 = vld [vmem:[%s7907_s27 + $0x378] sm:$0xff]  }
0x124c   : > { %v3746_v31 = vmax.f32 %v3590_v8, 0.0  ;;  %v3748_v18 = vmax.f32 %v3633_v46, 0.0  ;;  %v6594_v62 = vld [vmem:[%s7907_s27 + $0x3b0] sm:$0xff]  }
0x124d   : > { %v3761_v19 = vpack.c.bf16 %v3745_v11, %v3729_v40  ;;  %v3763_v23 = vpack.c.bf16 %v3747_v34, %v3731_v10  ;;  %v6597_v40 = vld [vmem:[%s7907_s27 + $0x338] sm:$0xff]  }
0x124e   : > { %v3762_v17 = vpack.c.bf16 %v3746_v31, %v3730_v14  ;;  %v3764_v20 = vpack.c.bf16 %v3748_v18, %v3732_v16  ;;  %6029 = vmatpush3.bf16.msra.mxu0 %v6565_v56  ;;  %6051 = vmatpush3.bf16.msra.mxu1 %v6566_v9  ;;  %v6598_v10 = vld [vmem:[%s7907_s27 + $0x3b8] sm:$0xff]  }
0x124f   : > { %6058 = vmatprep.subr.bf16.mxu0 %v6567_v12  ;;  %6080 = vmatprep.subr.bf16.mxu1 %v6568_v13 }
0x1250   : > { %4996 = vmatprep.mubr.bf16.mxu0 %v3762_v17  ;;  %5037 = vmatprep.mubr.bf16.mxu1 %v3764_v20 }
0x1251   : > { %4997 = vmatmul.mubr.bf16.vlgmr.msra.gmra.mrb[68].mxu0 %v3761_v19  ;;  %5038 = vmatmul.mubr.bf16.vlgmr.msra.gmra.mrb[68].mxu1 %v3763_v23 }
0x1252   : > { %6059 = vmatpush3.bf16.msra.mxu0 %v6569_v29  ;;  %6081 = vmatpush3.bf16.msra.mxu1 %v6570_v30 }
0x1253   : > { %6060 = vmatprep.subr.bf16.mxu0 %v6571_v32  ;;  %6082 = vmatprep.subr.bf16.mxu1 %v6572_v36  ;;  %v5733_v32 = vld [vmem:[%s879_s17] ss:$0 sm:$0xff] }
0x1256   : > { %6061 = vmatpush3.bf16.msra.mxu0 %v6573_v37  ;;  %6083 = vmatpush3.bf16.msra.mxu1 %v6574_v39 }
0x1257   : > { %6062 = vmatprep.subr.bf16.mxu0 %v6575_v15  ;;  %6084 = vmatprep.subr.bf16.mxu1 %v6576_v41 }
0x125a   : > { %6063 = vmatpush3.bf16.msra.mxu0 %v6577_v42  ;;  %6085 = vmatpush3.bf16.msra.mxu1 %v6578_v43 }
0x125b   : > { %6064 = vmatprep.subr.bf16.mxu0 %v6579_v44  ;;  %6086 = vmatprep.subr.bf16.mxu1 %v6580_v45 }
0x125e   : > { %6065 = vmatpush3.bf16.msra.mxu0 %v6581_v52  ;;  %6087 = vmatpush3.bf16.msra.mxu1 %v6582_v55 }
0x125f   : > { %6066 = vmatprep.subr.bf16.mxu0 %v6583_v38  ;;  %6088 = vmatprep.subr.bf16.mxu1 %v6584_v50 }
0x1262   : > { %6067 = vmatpush3.bf16.msra.mxu0 %v6585_v51  ;;  %6089 = vmatpush3.bf16.msra.mxu1 %v6586_v53 }
0x1263   : > { %6068 = vmatprep.subr.bf16.mxu0 %v6587_v21  ;;  %6090 = vmatprep.subr.bf16.mxu1 %v6588_v25 }
0x1266   : > { %v3669_v61 = vpop.f32.mrb[56].mxu0  ;;  %v3712_v3 = vpop.f32.mrb[56].mxu1  ;;  %6069 = vmatpush3.bf16.msra.mxu0 %v6589_v57  ;;  %6091 = vmatpush3.bf16.msra.mxu1 %v6590_v27 }
0x1267   : > { %v3670_v63 = vadd.f32 %v3669_v61, %v2708_v35  ;;  %v3713_v24 = vadd.f32 %v3712_v3, %v2716_v5  ;;  %v3671_v0 = vpop.f32.mrb[57].mxu0  ;;  %v3714_v28 = vpop.f32.mrb[57].mxu1  ;;  %6070 = vmatprep.subr.bf16.mxu0 %v6591_v58  ;;  %6092 = vmatprep.subr.bf16.mxu1 %v6592_v59 }
0x1268   : > { %v3672_v4 = vadd.f32 %v3671_v0, %v2712_v6  ;;  %v3715_v2 = vadd.f32 %v3714_v28, %v2720_v60  ;;  %v3673_v7 = vpop.f32.mrb[58].mxu0  ;;  %v3716_v26 = vpop.f32.mrb[58].mxu1 }
0x1269   : > { %v3674_v47 = vadd.f32 %v3673_v7, %v2708_v35  ;;  %v3717_v54 = vadd.f32 %v3716_v26, %v2716_v5  ;;  %v3675_v8 = vpop.f32.mrb[59].mxu0  ;;  %v3718_v46 = vpop.f32.mrb[59].mxu1  ;;  %v3733_v11 = vmax.f32 %v3670_v63, 0.0  ;;  %v3735_v34 = vmax.f32 %v3713_v24, 0.0 }
0x126a   : > { %v3676_v56 = vadd.f32 %v3675_v8, %v2712_v6  ;;  %v3719_v9 = vadd.f32 %v3718_v46, %v2720_v60  ;;  %6071 = vmatpush3.bf16.msra.mxu0 %v6593_v22  ;;  %6093 = vmatpush3.bf16.msra.mxu1 %v6594_v62  ;;  %v3734_v14 = vmax.f32 %v3672_v4, 0.0  ;;  %v3736_v16 = vmax.f32 %v3715_v2, 0.0 }
0x126b   : > { %v3749_v12 = vmax.f32 %v3674_v47, 0.0  ;;  %v3751_v13 = vmax.f32 %v3717_v54, 0.0  ;;  %6072 = vmatprep.subr.bf16.mxu0 %v6595_v1  ;;  %6094 = vmatprep.subr.bf16.mxu1 %v6596_v33 }
0x126c   : > { %v3750_v31 = vmax.f32 %v3676_v56, 0.0  ;;  %v3752_v18 = vmax.f32 %v3719_v9, 0.0 }
0x126d   : > { %v3765_v19 = vpack.c.bf16 %v3749_v12, %v3733_v11  ;;  %v3767_v23 = vpack.c.bf16 %v3751_v13, %v3735_v34 }
0x126e   : > { %v3766_v17 = vpack.c.bf16 %v3750_v31, %v3734_v14  ;;  %v3768_v20 = vpack.c.bf16 %v3752_v18, %v3736_v16  ;;  %6073 = vmatpush3.bf16.msra.mxu0 %v6597_v40  ;;  %6095 = vmatpush3.bf16.msra.mxu1 %v6598_v10 }
0x1270   : > { %5078 = vmatprep.mubr.bf16.mxu0 %v3766_v17  ;;  %5119 = vmatprep.mubr.bf16.mxu1 %v3768_v20 }
0x1271   : > { %5079 = vmatmul.mubr.bf16.vlgmr.msra.gmra.mrb[72].mxu0 %v3765_v19  ;;  %5120 = vmatmul.mubr.bf16.vlgmr.msra.gmra.mrb[72].mxu1 %v3767_v23 }
0x12e4   : > { %v5942_v29 = vpop.f32.mrb[60].mxu0  ;;  %v5964_v30 = vpop.f32.mrb[60].mxu1 }
0x12e5   : > { %v5943_v36 = vpop.f32.mrb[61].mxu0  ;;  %v5965_v37 = vpop.f32.mrb[61].mxu1 }
0x12e6   : > { %v5944_v39 = vadd.f32 %v5943_v36, %v5942_v29  ;;  %v5966_v15 = vadd.f32 %v5965_v37, %v5964_v30  ;;  %v5945_v41 = vpop.f32.mrb[62].mxu0  ;;  %v5967_v42 = vpop.f32.mrb[62].mxu1 }
0x12e7   : > { %v5946_v43 = vpop.f32.mrb[63].mxu0  ;;  %v5968_v44 = vpop.f32.mrb[63].mxu1 }
0x12e8   : > { %v4835_v45 = vadd.f32 %v5944_v39, %v5733_v32  ;;  %v5947_v52 = vadd.f32 %v5946_v43, %v5945_v41  ;;  %v5969_v55 = vadd.f32 %v5968_v44, %v5967_v42 }
0x12ea   : > { %v4876_v38 = vadd.f32 %v5966_v15, %v4835_v45  ;;  %v4838_v50 = vadd.f32 %v5947_v52, %v5733_v32 }
0x12ec   : > { %v4879_v51 = vadd.f32 %v5969_v55, %v4838_v50 }
0x1304   : > { %v5986_v53 = vpop.f32.mrb[64].mxu0  ;;  %v6008_v21 = vpop.f32.mrb[64].mxu1 }
0x1305   : > { %v5987_v25 = vpop.f32.mrb[65].mxu0  ;;  %v6009_v57 = vpop.f32.mrb[65].mxu1 }
0x1306   : > { %v5988_v27 = vadd.f32 %v5987_v25, %v5986_v53  ;;  %v6010_v35 = vadd.f32 %v6009_v57, %v6008_v21  ;;  %v5989_v5 = vpop.f32.mrb[66].mxu0  ;;  %v6011_v58 = vpop.f32.mrb[66].mxu1 }
0x1307   : > { %v5990_v59 = vpop.f32.mrb[67].mxu0  ;;  %v6012_v6 = vpop.f32.mrb[67].mxu1 }
0x1308   : > { %v4917_v60 = vadd.f32 %v5988_v27, %v4876_v38  ;;  %v5991_v61 = vadd.f32 %v5990_v59, %v5989_v5  ;;  %v6013_v3 = vadd.f32 %v6012_v6, %v6011_v58 }
0x130a   : > { %v4958_v22 = vadd.f32 %v6010_v35, %v4917_v60  ;;  %v4920_v62 = vadd.f32 %v5991_v61, %v4879_v51  ;;  %v5863_v60 = vld [vmem:[#allocation20] ss:$0 sm:$0xff] (!%p5862_p3) }
0x130c   : > { %v4961_v63 = vadd.f32 %v6013_v3, %v4920_v62 }
0x1324   : > { %v6030_v24 = vpop.f32.mrb[68].mxu0  ;;  %v6052_v0 = vpop.f32.mrb[68].mxu1 }
0x1325   : > { %v6031_v28 = vpop.f32.mrb[69].mxu0  ;;  %v6053_v1 = vpop.f32.mrb[69].mxu1 }
0x1326   : > { %v6032_v33 = vadd.f32 %v6031_v28, %v6030_v24  ;;  %v6054_v4 = vadd.f32 %v6053_v1, %v6052_v0  ;;  %v6033_v2 = vpop.f32.mrb[70].mxu0  ;;  %v6055_v7 = vpop.f32.mrb[70].mxu1 }
0x1327   : > { %v6034_v26 = vpop.f32.mrb[71].mxu0  ;;  %v6056_v47 = vpop.f32.mrb[71].mxu1 }
0x1328   : > { %v4999_v54 = vadd.f32 %v6032_v33, %v4958_v22  ;;  %v6035_v8 = vadd.f32 %v6034_v26, %v6033_v2  ;;  %v6057_v46 = vadd.f32 %v6056_v47, %v6055_v7  ;;  %v5864_v22 = vld [vmem:[#allocation21] ss:$0 sm:$0xff] (!%p5862_p3) }
0x132a   : > { %v5040_v56 = vadd.f32 %v6054_v4, %v4999_v54  ;;  %v5002_v9 = vadd.f32 %v6035_v8, %v4961_v63 }
0x132c   : > { %v5043_v40 = vadd.f32 %v6057_v46, %v5002_v9 }
0x1344   : > { %v6074_v10 = vpop.f32.mrb[72].mxu0  ;;  %v6096_v11 = vpop.f32.mrb[72].mxu1 }
0x1345   : > { %v6075_v34 = vpop.f32.mrb[73].mxu0  ;;  %v6097_v12 = vpop.f32.mrb[73].mxu1 }
0x1346   : > { %v6076_v13 = vadd.f32 %v6075_v34, %v6074_v10  ;;  %v6098_v14 = vadd.f32 %v6097_v12, %v6096_v11  ;;  %v6077_v16 = vpop.f32.mrb[74].mxu0  ;;  %v6099_v31 = vpop.f32.mrb[74].mxu1 }
0x1347   : > { %v6078_v18 = vpop.f32.mrb[75].mxu0  ;;  %v6100_v19 = vpop.f32.mrb[75].mxu1 }
0x1348   : > { %v5081_v23 = vadd.f32 %v6076_v13, %v5040_v56  ;;  %v6079_v17 = vadd.f32 %v6078_v18, %v6077_v16  ;;  %v6101_v20 = vadd.f32 %v6100_v19, %v6099_v31 }
0x134a   : > { %v5122_v29 = vadd.f32 %v6098_v14, %v5081_v23  ;;  %v5084_v30 = vadd.f32 %v6079_v17, %v5043_v40  ;;  %5135 = sbr.rel (%p5862_p3) target bundleno = 5271 (0x1497), region = 156 }
0x134c   : > { %v5128_v32 = vadd.f32 %v5122_v29, %v8192_v48  ;;  %v5125_v36 = vadd.f32 %v6101_v20, %v5084_v30 }
0x134e   : > { %5130 = vst [vmem:[#allocation2] sm:$0xff] %v5128_v32  ;;  %v5129_v37 = vadd.f32 %v5125_v36, %v8195_v49  ;;  %5138 = vadd.xlane.f32.xlu0 (!%p5862_p3), %v5128_v32 }
0x1350   : > { %5131 = vst [vmem:[#allocation2 + $0x8] sm:$0xff] %v5129_v37 }
0x1352   : > { %5140 = vadd.xlane.f32.xlu0 %v5129_v37 }
0x13db   : > { %v5139_v39 = vpop.xlane.xlu0 %5138 }
0x13dc   : > { %v5142_v15 = vmul.f32 0.0078125, %v5139_v39 }
0x13de   : > { %v5144_v41 = vsub.f32 %v5128_v32, %v5142_v15 }
0x13df   : > { %v5141_v42 = vpop.xlane.xlu0 %5140 }
0x13e0   : > { %v5143_v43 = vmul.f32 0.0078125, %v5141_v42  ;;  %v5146_v44 = vmul.f32 %v5144_v41, %v5144_v41  ;;  %v5160_v61 = vmul.f32 %v5863_v60, %v5144_v41 }
0x13e2   : > { %v5145_v45 = vsub.f32 %v5129_v37, %v5143_v43  ;;  %5148 = vadd.xlane.f32.xlu1 %v5146_v44 }
0x13e4   : > { %v5147_v52 = vmul.f32 %v5145_v45, %v5145_v45  ;;  %v5161_v63 = vmul.f32 %v5863_v60, %v5145_v45 }
0x13e6   : > { %5150 = vadd.xlane.f32.xlu1 %v5147_v52 }
0x146f   : > { %v5149_v48 = vpop.xlane.xlu1 %5148 }
0x1470   : > { %v5152_v55 = vmul.f32 0.007874016, %v5149_v48 }
0x1472   : > { %6649 = vrsqrt.f32 %v5152_v55  ;;  %vm5164_vm12 = vcmp.eq.f32.partialorder %v5152_v55, inf  ;;  %v5167_v53 = vand.u32 2147483648, %v5152_v55  ;;  %vm5166_vm13 = vcmp.eq.f32.partialorder %v5152_v55, 0.0 }
0x1473   : > { %v5151_v49 = vpop.xlane.xlu1 %5150 }
0x1474   : > { %v5153_v38 = vmul.f32 0.007874016, %v5151_v49 }
0x1476   : > { %6651 = vrsqrt.f32 %v5153_v38  ;;  %vm5171_vm14 = vcmp.eq.f32.partialorder %v5153_v38, inf  ;;  %v5174_v5 = vand.u32 2147483648, %v5153_v38  ;;  %vm5173_vm15 = vcmp.eq.f32.partialorder %v5153_v38, 0.0 }
0x147c   : > { %v6650_v50 = vpop.eup %6649 }
0x147d   : > { %v5163_v51 = vmul.f32 %v6650_v50, %v5152_v55 }
0x147f   : > { %v5165_v21 = vsel %vm5164_vm12, %v5152_v55, %v5163_v51 }
0x1480   : > { %v6652_v25 = vpop.eup %6651  ;;  %v5168_v57 = vsel %vm5166_vm13, %v5167_v53, %v5165_v21 }
0x1481   : > { %v5176_v27 = vadd.f32 1e-06, %v5168_v57  ;;  %v5170_v35 = vmul.f32 %v6652_v25, %v5153_v38 }
0x1483   : > { %6653 = vrcp.f32 %v5176_v27  ;;  %v5172_v58 = vsel %vm5171_vm14, %v5153_v38, %v5170_v35 }
0x1484   : > { %v5175_v59 = vsel %vm5173_vm15, %v5174_v5, %v5172_v58 }
0x1485   : > { %v5177_v6 = vadd.f32 1e-06, %v5175_v59 }
0x1487   : > { %6655 = vrcp.f32 %v5177_v6 }
0x148d   : > { %v6654_v3 = vpop.eup %6653 }
0x148e   : > { %v5179_v62 = vmul.f32 %v6654_v3, %v5160_v61 }
0x1490   : > { %v5188_v24 = vadd.f32 %v5864_v22, %v5179_v62 }
0x1491   : > { %v6656_v0 = vpop.eup %6655 }
0x1492   : > { %5190 = vst [vmem:[#allocation23] sm:$0xff] %v5188_v24  ;;  %v5181_v28 = vmul.f32 %v6656_v0, %v5161_v63 }
0x1494   : > { %v5189_v1 = vadd.f32 %v5864_v22, %v5181_v28 }
0x1496   : > { %5191 = vst [vmem:[#allocation23 + $0x8] sm:$0xff] %v5189_v1 }
0x1497 PF: > { %s8716_s6 = sld [smem:[#allocation34_spill]]  ;;  %s7258_s1 = smov [#allocation23]  }
0x1498   : > { %s5201_s20 = sshll.u32 %s7258_s1, 4  ;;  %s5202_s20 = int_to_ptr.vmem [resolvable:$true] %s5201_s20 }
0x1499   : > { %s7129_s13 = scalar_lea.vmem %s5202_s20, 256  ;;  %p7136_p6 = scmp.lt.s32.totalorder %s5202_s20, %s5202_s20 }
0x149a   : > { %p7130_p7 = scmp.ne.s32.totalorder %s5202_s20, %s7129_s13  ;;  %p7137_p4 = scmp.lt.s32.totalorder %s7129_s13, %s7129_s13 }
0x149c   : > { %p7138_p13 = por %p7137_p4, %p7136_p6 }
0x149d   : > { %p6359_p0 = scmp.eq.s32.totalorder %s8716_s6, 1 }
0x149f   : > { %p7131_p5 = pnand %p7130_p7, %p6359_p0 }
0x14a1   : > { %p7132_p2 = pneg %p7131_p5 }
0x14a3   : > { %p7139_p8 = pnand %p7138_p13, %p7132_p2 }
0x14a5   : > { %7142 = shalt.err (!%p7139_p8)
}
0x14a6   : > { %s8717_s2 = sld [smem:[#allocation51_spill]] }
0x14ac   : > { %s7143_s21 = scalar_lea.hbm %s8717_s2, 256 }
0x14ad   : > { %p7144_p11 = scmp.ne.s32.totalorder %s8717_s2, %s7143_s21  ;;  %p7149_p10 = scmp.lt.u32.totalorder %s7143_s21, %s8717_s2 }
0x14af   : > { %p7145_p12 = pnand %p7144_p11, %p6359_p0 }
0x14b1   : > { %p7146_p1 = pneg %p7145_p12 }
0x14b3   : > { %p7151_p9 = pnand %p7149_p10, %p7146_p1 }
0x14b5   : > { %7154 = shalt.err (!%p7151_p9)
}
0x14b6   : > { %s7259_s4 = smov 128   ;;  %s7260_s15 = smov 8  }
0x14b7   : > { %6297 = dma.vmem_to_hbm [thread:$0]  (%p6359_p0), %s5202_s20, 256, %s8717_s2, [#allocation5], %s7259_s4, %s7259_s4, %s7260_s15  }
0x14b8   : > { %7200 = dma.done.wait (%p6359_p0), [#allocation5], 256  }
0x14b9   : > { %7202 = vsyncadd (%p6359_p0), [#allocation5], 4294967040 }
0x14ba PF: > { %s8718_s18 = sld [smem:[#allocation33_spill]]  ;;  %s8719_s21 = sld [smem:[#allocation30_spill]] }
0x14bb   : > { %s8720_s22 = sld [smem:[#allocation31_spill]]  ;;  %s8721_s23 = sld [smem:[#allocation37_spill]] }
0x14bc   : > { %s8722_s19 = sld [smem:[#allocation35_spill]]  ;;  %s8723_s24 = smov %s7221_s25 }
0x14c0   : > { %s30_s26 = sadd.s32 1, %s8718_s18  }
0x14c1   : > { %p27_p3 = scmp.ge.s32.totalorder %s30_s26, 4  }
0x14c2   : > { %s8724_s25 = smov %s8722_s19 }
0x14c3   :  { %29 = sbr.rel (!%p27_p3) target bundleno = 19 (0x13), region = 268 }
0x14ca   :  { %5217 = vsyncpa [#allocation4], 1 }
0x14cb   :  { %5219 = vsyncpa [#allocation4 + $0x1], 1 }
0x14cc   :  { %5220 = vsyncpa [#allocation7], 1 }
0x14cd   :  { %5221 = vsyncpa [#allocation22], 1 }
0x14ce   :  { %5222 = vsyncpa [#allocation5], 1 }
0x14cf   :  { %5224 = vsyncpa [#allocation5 + $0x1], 1 }

</bundles_post_ra>
